<compile_context>
chip_gen: v7x
topology: tpu7x:2x2x1
jax: 0.10.0
libtpu: 0.0.40
codegen_flags: <defaults>
</compile_context>

<pallas_src>
import jax
import jax.numpy as jnp
from jax import lax
from jax.experimental import pallas as pl
from jax.experimental.pallas import tpu as pltpu

EPS = 1e-8   # F.cosine_similarity default eps


# ----------------------------- kernel helpers ------------------------------ #

def _softmax_stats(logits):
    """logits (C,T) f32 -> exp-sum s (1,T), max mx (1,T), argmax (1,T) i32, onehot (C,T) f32."""
    c = logits.shape[0]
    mx = jnp.max(logits, axis=0, keepdims=True)                   # (1,T)
    ex = jnp.exp(logits - mx)
    s = jnp.sum(ex, axis=0, keepdims=True)                        # (1,T)
    iota_c = lax.broadcasted_iota(jnp.int32, logits.shape, 0)
    cand = jnp.where(logits >= mx, iota_c, jnp.int32(c))
    hard = jnp.min(cand, axis=0, keepdims=True)                   # first-argmax
    onehot = (iota_c == hard).astype(jnp.float32)                 # (C,T)
    return s, mx, hard, onehot


def _reliability(feat_ref, onehot, centers_bf, cnorm2):
    """feat_ref (F,T), onehot (C,T) f32, centers_bf (C,F) bf16, cnorm2 (C,1) f32 -> (1,T).

    Reformulated without the (F,T) per-pixel-center intermediate:
      proj = centers @ feat (MXU, bf16 operands, f32 acc);  w12 = sum(oh*proj)
      w2   = sum(oh * ||c||^2);  w1 = sum(feat^2)   (cast per use, no f32 temp copy)
    """
    proj = lax.dot_general(centers_bf, feat_ref[...].astype(jnp.bfloat16),
                           (((1,), (0,)), ((), ())),
                           preferred_element_type=jnp.float32)     # (C,T)
    ff = feat_ref[...].astype(jnp.float32)
    w1 = jnp.sum(ff * ff, axis=0, keepdims=True)                   # (1,T)
    w12 = jnp.sum(onehot * proj, axis=0, keepdims=True)            # (1,T)
    w2 = jnp.sum(onehot * cnorm2, axis=0, keepdims=True)           # (1,T)
    # PyTorch cosine_similarity: clamp each norm separately; rsqrt -> EUP.
    inv = lax.rsqrt(jnp.maximum(w1, EPS * EPS)) * lax.rsqrt(jnp.maximum(w2, EPS * EPS))
    return w12 * inv


# ----------------- pass 1: centers + per-pixel CE / argmax ------------------ #

def _pass1_kernel(w_ref, pm_ref, pa_ref, fm_ref, fa_ref,
                  cm_sum_ref, cm_cnt_ref, ca_sum_ref, ca_cnt_ref,
                  cem_ref, cea_ref, hm_ref, ha_ref):
    t = pl.program_id(2)

    @pl.when(t == 0)
    def _():
        cm_sum_ref[...] = jnp.zeros_like(cm_sum_ref)
        cm_cnt_ref[...] = jnp.zeros_like(cm_cnt_ref)
        ca_sum_ref[...] = jnp.zeros_like(ca_sum_ref)
        ca_cnt_ref[...] = jnp.zeros_like(ca_cnt_ref)

    pm = pm_ref[...].astype(jnp.float32)          # (C, TN)
    pa = pa_ref[...].astype(jnp.float32)
    w_col = w_ref[:, 0:1]                         # (C, 1) class weights

    s_m, mx_m, hard_m, oh_m = _softmax_stats(pm)
    s_a, mx_a, hard_a, oh_a = _softmax_stats(pa)

    # pseudo label: conf_m >= conf_a  <=>  s_m <= s_a  (conf = 1/s, both > 0)
    mask = s_m <= s_a
    oh_pseudo = jnp.where(mask, oh_m, oh_a)                           # (C,TN)
    w_pix = jnp.sum(w_col * oh_pseudo, axis=0, keepdims=True)         # (1,TN)
    lse_m = mx_m + jnp.log(s_m)
    lse_a = mx_a + jnp.log(s_a)
    cem_ref[...] = w_pix * (lse_m - jnp.sum(oh_pseudo * pm, axis=0, keepdims=True))
    cea_ref[...] = w_pix * (lse_a - jnp.sum(oh_pseudo * pa, axis=0, keepdims=True))
    hm_ref[...] = hard_m
    ha_ref[...] = hard_a

    # EUP approx reciprocal; error << bf16 MXU operand error downstream.
    conf_m = pl.reciprocal(s_m, approx=True)
    conf_a = pl.reciprocal(s_a, approx=True)

    def accum(oh, feat_ref, conf, sum_ref, cnt_ref):
        # cast per use — no separately materialized full-tile f32 feature copy
        wfeat = (feat_ref[...].astype(jnp.float32) * conf).astype(jnp.bfloat16)  # (F,TN)
        part = lax.dot_general(oh.astype(jnp.bfloat16), wfeat,
                               (((1,), (1,)), ((), ())),
                               preferred_element_type=jnp.float32)    # (C,F)
        sum_ref[...] += part
        cnt_ref[...] += jnp.sum(oh, axis=1, keepdims=True)            # (C,1)

    accum(oh_m, fm_ref, conf_m, cm_sum_ref, cm_cnt_ref)
    accum(oh_a, fa_ref, conf_a, ca_sum_ref, ca_cnt_ref)


# ------------------------ pass 2: reliability + loss ------------------------ #

def _pass2_kernel(cem_ref, cea_ref, hm_ref, ha_ref, fm_ref, fa_ref,
                  cmb_ref, cab_ref, nm_ref, na_ref, part_ref, s_ref):
    m = pl.program_id(1)

    @pl.when(m == 0)
    def _():
        s_ref[...] = jnp.zeros_like(s_ref)

    c = cmb_ref.shape[1]
    tn = hm_ref.shape[-1]
    iota_c = lax.broadcasted_iota(jnp.int32, (c, tn), 0)
    oh_m = (iota_c == hm_ref[...]).astype(jnp.float32)        # (C,TN)
    oh_a = (iota_c == ha_ref[...]).astype(jnp.float32)

    rel_m = _reliability(fm_ref, oh_m, cmb_ref[m], nm_ref[m])  # (1,TN)
    rel_a = _reliability(fa_ref, oh_a, cab_ref[m], na_ref[m])

    # packed (4,TN) batch-sum accumulator: rows = [ce_m, ce_a, rel_m, rel_a]
    s_ref[...] += jnp.concatenate([cem_ref[...], cea_ref[...], rel_m, rel_a], axis=0)

    @pl.when(m == pl.num_programs(1) - 1)
    def _():
        s = s_ref[...]
        num_main = jnp.sum(s[0:1, :] * s[3:4, :], keepdims=True)   # (1,1)
        num_aux = jnp.sum(s[1:2, :] * s[2:3, :], keepdims=True)
        den_main = jnp.sum(s[2:3, :], keepdims=True)
        den_aux = jnp.sum(s[3:4, :], keepdims=True)
        vals = jnp.concatenate([num_main, num_aux, den_main, den_aux], axis=0)  # (4,1)
        part_ref[...] = jnp.broadcast_to(vals, (4, 128))           # one packed store


# --------------------------------- wrapper ---------------------------------- #

def _vmem_limit_bytes():
    """Generation-aware scoped-VMEM limit (~75% of physical, 64 MiB fallback)."""
    cap = 64 * 1024 * 1024
    try:
        cap = int(pltpu.get_tpu_info().vmem_capacity_bytes)
    except Exception:
        pass
    return min(int(cap * 0.75), cap - (8 << 20))


def _derive_tile_target(c, f, in_bytes, vmem_limit):
    """Largest per-tile pixel count whose working set stays ~under half the limit."""
    per_px = (2 * c + 2 * f) * in_bytes * 2      # double-buffered native input blocks
    per_px += (2 * c + 2 * f) * 6                # in-kernel f32 + bf16 temporaries (rough)
    per_px += 8 * 4 * 2                          # per-pixel ce/argmax streams
    return max(128, (vmem_limit // 2) // per_px)


def _pick_tile(n, target):
    """Largest multiple of 128 that divides n and is <= target (or n itself)."""
    target = max(128, (target // 128) * 128)
    if n <= target:
        return n
    for t in range(target, 0, -128):
        if n % t == 0:
            return t
    return 128


def reliability_co_teaching_loss(pred_main, pred_aux, feat_main, feat_aux,
                                 weight=None, tile_override=None):
    b, c, h, wdt = pred_main.shape
    f = feat_main.shape[1]
    n = h * wdt
    assert n % 128 == 0, "H*W must be a multiple of 128 for lane tiling"
    # TODO(synk): ragged H*W needs lane-masked batch sums (padding would pollute them).

    in_bytes = pred_main.dtype.itemsize
    vmem_limit = _vmem_limit_bytes()
    target = tile_override if tile_override is not None else \
        _derive_tile_target(c, f, in_bytes, vmem_limit)
    tn = _pick_tile(n, target)
    nt = n // tn
    # split pass-1's pixel reduction so both v7x TensorCores stay busy when the
    # batch is small/odd; costs only a tiny (2,B,C,F) add in JAX afterwards.
    n_split = 2 if (nt % 2 == 0 and b < 8) else 1
    nt1 = nt // n_split

    # stream the native dtype (no wrapper up-cast)
    pm = pred_main.reshape(b, c, n)
    pa = pred_aux.reshape(b, c, n)
    fm = feat_main.reshape(b, f, n)
    fa = feat_aux.reshape(b, f, n)
    wvec = jnp.ones((c,), jnp.float32) if weight is None else weight.astype(jnp.float32)
    w2d = jnp.broadcast_to(wvec[:, None], (c, 128))   # lane-dense class weights

    # ------------------- pass 1: centers + CE + argmax -------------------- #
    csum = jax.ShapeDtypeStruct((n_split, b, c, f), jnp.float32)
    ccnt = jax.ShapeDtypeStruct((n_split, b, c, 1), jnp.float32)
    ce_sh = jax.ShapeDtypeStruct((b, 1, n), jnp.float32)
    hd_sh = jax.ShapeDtypeStruct((b, 1, n), jnp.int32)

    pix_idx = lambda s, m, t: (m, 0, s * nt1 + t)
    acc_idx = lambda s, m, t: (s, m, 0, 0)

    (cm_sum, cm_cnt, ca_sum, ca_cnt,
     ce_m, ce_a, hard_m, hard_a) = pl.pallas_call(
        _pass1_kernel,
        out_shape=(csum, ccnt, csum, ccnt, ce_sh, ce_sh, hd_sh, hd_sh),
        grid=(n_split, b, nt1),
        in_specs=[
            pl.BlockSpec((c, 128), lambda s, m, t: (0, 0)),
            pl.BlockSpec((None, c, tn), pix_idx),
            pl.BlockSpec((None, c, tn), pix_idx),
            pl.BlockSpec((None, f, tn), pix_idx),
            pl.BlockSpec((None, f, tn), pix_idx),
        ],
        out_specs=(
            pl.BlockSpec((None, None, c, f), acc_idx),
            pl.BlockSpec((None, None, c, 1), acc_idx),
            pl.BlockSpec((None, None, c, f), acc_idx),
            pl.BlockSpec((None, None, c, 1), acc_idx),
            pl.BlockSpec((None, 1, tn), pix_idx),
            pl.BlockSpec((None, 1, tn), pix_idx),
            pl.BlockSpec((None, 1, tn), pix_idx),
            pl.BlockSpec((None, 1, tn), pix_idx),
        ),
        compiler_params=pltpu.CompilerParams(
            dimension_semantics=("parallel", "parallel", "arbitrary"),
            vmem_limit_bytes=vmem_limit),
    )(w2d, pm, pa, fm, fa)

    # tiny JAX glue: merge the split halves, divide, precompute bf16 / ||c||^2
    cm_sum = jnp.sum(cm_sum, axis=0); cm_cnt = jnp.sum(cm_cnt, axis=0)
    ca_sum = jnp.sum(ca_sum, axis=0); ca_cnt = jnp.sum(ca_cnt, axis=0)
    centers_m = cm_sum / jnp.maximum(cm_cnt, 1.0)        # (B,C,F) f32
    centers_a = ca_sum / jnp.maximum(ca_cnt, 1.0)
    cm_bf = centers_m.astype(jnp.bfloat16)               # hoisted bf16 cast
    ca_bf = centers_a.astype(jnp.bfloat16)
    cn_m = jnp.sum(centers_m * centers_m, axis=2, keepdims=True)   # (B,C,1) f32
    cn_a = jnp.sum(centers_a * centers_a, axis=2, keepdims=True)

    # ------------------ pass 2: reliability + loss partials ----------------- #
    partials = pl.pallas_call(
        _pass2_kernel,
        out_shape=jax.ShapeDtypeStruct((nt, 4, 128), jnp.float32),
        grid=(nt, b),
        in_specs=[
            pl.BlockSpec((None, 1, tn), lambda t, m: (m, 0, t)),
            pl.BlockSpec((None, 1, tn), lambda t, m: (m, 0, t)),
            pl.BlockSpec((None, 1, tn), lambda t, m: (m, 0, t)),
            pl.BlockSpec((None, 1, tn), lambda t, m: (m, 0, t)),
            pl.BlockSpec((None, f, tn), lambda t, m: (m, 0, t)),
            pl.BlockSpec((None, f, tn), lambda t, m: (m, 0, t)),
            pl.BlockSpec((b, c, f), lambda t, m: (0, 0, 0)),   # un-tiled, DMA'd once
            pl.BlockSpec((b, c, f), lambda t, m: (0, 0, 0)),
            pl.BlockSpec((b, c, 1), lambda t, m: (0, 0, 0)),
            pl.BlockSpec((b, c, 1), lambda t, m: (0, 0, 0)),
        ],
        out_specs=pl.BlockSpec((None, 4, 128), lambda t, m: (t, 0, 0)),
        scratch_shapes=[pltpu.VMEM((4, tn), jnp.float32)],
        compiler_params=pltpu.CompilerParams(
            dimension_semantics=("parallel", "arbitrary"),
            vmem_limit_bytes=vmem_limit),
    )(ce_m, ce_a, hard_m, hard_a, fm, fa, cm_bf, ca_bf, cn_m, cn_a)

    p = partials[:, :, 0]                       # (nt, 4) scalar partials
    num_main = jnp.sum(p[:, 0])
    num_aux = jnp.sum(p[:, 1])
    den_main = jnp.sum(p[:, 2])
    den_aux = jnp.sum(p[:, 3])
    return num_main / den_aux + num_aux / den_main


# ----------------------- pure-JAX reference (for check) --------------------- #

def reference_loss(pred_main, pred_aux, feat_main, feat_aux, weight=None):
    b, c, h, wdt = pred_main.shape
    fdim = feat_main.shape[1]
    if weight is None:
        weight = jnp.ones((c,), jnp.float32)
    pm = pred_main.reshape(b, c, -1).astype(jnp.float32)
    pa = pred_aux.reshape(b, c, -1).astype(jnp.float32)
    fm = feat_main.reshape(b, fdim, -1).astype(jnp.float32)
    fa = feat_aux.reshape(b, fdim, -1).astype(jnp.float32)

    def stats(p):
        sm = jax.nn.softmax(p, axis=1)
        conf = jnp.max(sm, axis=1, keepdims=True)
        hard = jnp.argmax(p, axis=1)
        lse = jax.scipy.special.logsumexp(p, axis=1)
        return conf, hard, lse

    conf_m, hard_m, lse_m = stats(pm)
    conf_a, hard_a, lse_a = stats(pa)
    mask = conf_m[:, 0] >= conf_a[:, 0]
    pseudo = jnp.where(mask, hard_m, hard_a)

    def ce(p, lse):
        gathered = jnp.take_along_axis(p, pseudo[:, None, :], axis=1)[:, 0]
        return weight[pseudo] * (lse - gathered)

    ce_m, ce_a = ce(pm, lse_m), ce(pa, lse_a)

    def rel(feat, conf, hard):
        oh = jax.nn.one_hot(hard, c, axis=1, dtype=jnp.float32)
        wfeat = feat * conf
        centers = jnp.einsum('bcn,bfn->bcf', oh, wfeat)
        counts = jnp.sum(oh, axis=2)[..., None]
        centers = centers / jnp.maximum(counts, 1.0)
        cpix = jnp.einsum('bcf,bcn->bfn', centers, oh)
        w12 = jnp.sum(feat * cpix, axis=1)
        n1 = jnp.sqrt(jnp.sum(feat * feat, axis=1))
        n2 = jnp.sqrt(jnp.sum(cpix * cpix, axis=1))
        return w12 / (jnp.maximum(n1, EPS) * jnp.maximum(n2, EPS))

    rel_m, rel_a = rel(fm, conf_m, hard_m), rel(fa, conf_a, hard_a)

    def combine(ce_x, rel_y):
        # reproduce PyTorch broadcasting: (b,N) * (b,1,N) -> (b,b,N)
        prod = ce_x[None, :, :] * rel_y[:, None, :]
        return jnp.sum(prod) / jnp.sum(rel_y)

    return combine(ce_m, rel_a) + combine(ce_a, rel_m)


# ------------------------------------ main ----------------------------------- #

if __name__ == "__main__":
    key = jax.random.PRNGKey(0)
    kp1, kp2, kf1, kf2 = jax.random.split(key, 4)
    B, C, H, W, FDIM = 2, 4, 32, 32, 32   # H*W = 1024 pixels (lane axis)

    pred_main = jax.random.normal(kp1, (B, C, H, W), jnp.float32)
    pred_aux = jax.random.normal(kp2, (B, C, H, W), jnp.float32)
    feat_main = jax.random.normal(kf1, (B, FDIM, H, W), jnp.float32)
    feat_aux = jax.random.normal(kf2, (B, FDIM, H, W), jnp.float32)

    ref = jax.block_until_ready(
        reference_loss(pred_main, pred_aux, feat_main, feat_aux))

    # default (VMEM-derived) tile -> single tile per sample
    loss = jax.block_until_ready(
        reliability_co_teaching_loss(pred_main, pred_aux, feat_main, feat_aux))
    assert jnp.isfinite(loss), "kernel produced non-finite loss"
    assert jnp.allclose(loss, ref, rtol=1e-2, atol=1e-2), (loss, ref)

    # forced small tile -> exercises multi-tile accumulation + split pass-1 grid
    loss_t = jax.block_until_ready(
        reliability_co_teaching_loss(pred_main, pred_aux, feat_main, feat_aux,
                                     tile_override=256))
    assert jnp.isfinite(loss_t), "tiled kernel produced non-finite loss"
    assert jnp.allclose(loss_t, ref, rtol=1e-2, atol=1e-2), (loss_t, ref)

    print("KERNEL_OK")
</pallas_src>

<mosaic_0001>
module attributes {stable_mosaic.version = 11 : i64} {
  func.func @_pass1_kernel(%arg0: i32, %arg1: i32, %arg2: i32, %arg3: memref<4x128xf32, #tpu.memory_space<vmem>>, %arg4: memref<1x4x1024xf32, #tpu.memory_space<vmem>>, %arg5: memref<1x4x1024xf32, #tpu.memory_space<vmem>>, %arg6: memref<1x32x1024xf32, #tpu.memory_space<vmem>>, %arg7: memref<1x32x1024xf32, #tpu.memory_space<vmem>>, %arg8: memref<1x1x4x32xf32, #tpu.memory_space<vmem>>, %arg9: memref<1x1x4x1xf32, #tpu.memory_space<vmem>>, %arg10: memref<1x1x4x32xf32, #tpu.memory_space<vmem>>, %arg11: memref<1x1x4x1xf32, #tpu.memory_space<vmem>>, %arg12: memref<1x1x1024xf32, #tpu.memory_space<vmem>>, %arg13: memref<1x1x1024xf32, #tpu.memory_space<vmem>>, %arg14: memref<1x1x1024xi32, #tpu.memory_space<vmem>>, %arg15: memref<1x1x1024xi32, #tpu.memory_space<vmem>>) attributes {dimension_semantics = [#tpu.dimension_semantics<parallel>, #tpu.dimension_semantics<parallel>, #tpu.dimension_semantics<arbitrary>], iteration_bounds = array<i64: 1, 2, 1>, scalar_prefetch = 0 : i64, scratch_operands = 0 : i64, tpu.core_type = #tpu.core_type<tc>, window_params = [{pipeline_mode = #tpu.pipeline_mode<synchronous>, transform_indices = @transform_0, window_bounds = array<i64: 4, 128>}, {transform_indices = @transform_1, window_bounds = array<i64: 1, 4, 1024>}, {transform_indices = @transform_2, window_bounds = array<i64: 1, 4, 1024>}, {transform_indices = @transform_3, window_bounds = array<i64: 1, 32, 1024>}, {transform_indices = @transform_4, window_bounds = array<i64: 1, 32, 1024>}, {transform_indices = @transform_5, window_bounds = array<i64: 1, 1, 4, 32>}, {transform_indices = @transform_6, window_bounds = array<i64: 1, 1, 4, 1>}, {transform_indices = @transform_7, window_bounds = array<i64: 1, 1, 4, 32>}, {transform_indices = @transform_8, window_bounds = array<i64: 1, 1, 4, 1>}, {transform_indices = @transform_9, window_bounds = array<i64: 1, 1, 1024>}, {transform_indices = @transform_10, window_bounds = array<i64: 1, 1, 1024>}, {transform_indices = @transform_11, window_bounds = array<i64: 1, 1, 1024>}, {transform_indices = @transform_12, window_bounds = array<i64: 1, 1, 1024>}]} {
    %c0_i32 = arith.constant 0 : i32
    %0 = arith.cmpi eq, %arg2, %c0_i32 : i32
    %1 = arith.extui %0 : i1 to i32
    %c0_i32_0 = arith.constant 0 : i32
    %2 = arith.cmpi ne, %1, %c0_i32_0 : i32
    scf.if %2 {
      %cst_71 = arith.constant 0.000000e+00 : f32
      %122 = vector.broadcast %cst_71 : f32 to vector<4x32xf32>
      %c0_72 = arith.constant 0 : index
      %c0_73 = arith.constant 0 : index
      %c0_74 = arith.constant 0 : index
      %c0_75 = arith.constant 0 : index
      %123 = vector.load %arg8[%c0_72, %c0_73, %c0_74, %c0_75] : memref<1x1x4x32xf32, #tpu.memory_space<vmem>>, vector<1x1x4x32xf32>
      %124 = vector.shape_cast %123 : vector<1x1x4x32xf32> to vector<4x32xf32>
      %125 = vector.shape_cast %122 : vector<4x32xf32> to vector<1x1x4x32xf32>
      tpu.vector_store %arg8[%c0_72, %c0_73, %c0_74, %c0_75], %125 {strides = array<i32>} : memref<1x1x4x32xf32, #tpu.memory_space<vmem>>, vector<1x1x4x32xf32>,
      %cst_76 = arith.constant 0.000000e+00 : f32
      %126 = vector.broadcast %cst_76 : f32 to vector<4x1xf32>
      %c0_77 = arith.constant 0 : index
      %c0_78 = arith.constant 0 : index
      %c0_79 = arith.constant 0 : index
      %c0_80 = arith.constant 0 : index
      %127 = vector.load %arg9[%c0_77, %c0_78, %c0_79, %c0_80] : memref<1x1x4x1xf32, #tpu.memory_space<vmem>>, vector<1x1x4x1xf32>
      %128 = vector.shape_cast %127 : vector<1x1x4x1xf32> to vector<4x1xf32>
      %129 = vector.shape_cast %126 : vector<4x1xf32> to vector<1x1x4x1xf32>
      tpu.vector_store %arg9[%c0_77, %c0_78, %c0_79, %c0_80], %129 {strides = array<i32>} : memref<1x1x4x1xf32, #tpu.memory_space<vmem>>, vector<1x1x4x1xf32>,
      %cst_81 = arith.constant 0.000000e+00 : f32
      %130 = vector.broadcast %cst_81 : f32 to vector<4x32xf32>
      %c0_82 = arith.constant 0 : index
      %c0_83 = arith.constant 0 : index
      %c0_84 = arith.constant 0 : index
      %c0_85 = arith.constant 0 : index
      %131 = vector.load %arg10[%c0_82, %c0_83, %c0_84, %c0_85] : memref<1x1x4x32xf32, #tpu.memory_space<vmem>>, vector<1x1x4x32xf32>
      %132 = vector.shape_cast %131 : vector<1x1x4x32xf32> to vector<4x32xf32>
      %133 = vector.shape_cast %130 : vector<4x32xf32> to vector<1x1x4x32xf32>
      tpu.vector_store %arg10[%c0_82, %c0_83, %c0_84, %c0_85], %133 {strides = array<i32>} : memref<1x1x4x32xf32, #tpu.memory_space<vmem>>, vector<1x1x4x32xf32>,
      %cst_86 = arith.constant 0.000000e+00 : f32
      %134 = vector.broadcast %cst_86 : f32 to vector<4x1xf32>
      %c0_87 = arith.constant 0 : index
      %c0_88 = arith.constant 0 : index
      %c0_89 = arith.constant 0 : index
      %c0_90 = arith.constant 0 : index
      %135 = vector.load %arg11[%c0_87, %c0_88, %c0_89, %c0_90] : memref<1x1x4x1xf32, #tpu.memory_space<vmem>>, vector<1x1x4x1xf32>
      %136 = vector.shape_cast %135 : vector<1x1x4x1xf32> to vector<4x1xf32>
      %137 = vector.shape_cast %134 : vector<4x1xf32> to vector<1x1x4x1xf32>
      tpu.vector_store %arg11[%c0_87, %c0_88, %c0_89, %c0_90], %137 {strides = array<i32>} : memref<1x1x4x1xf32, #tpu.memory_space<vmem>>, vector<1x1x4x1xf32>,
    } else {
    }
    %c0 = arith.constant 0 : index
    %c0_1 = arith.constant 0 : index
    %c0_2 = arith.constant 0 : index
    %3 = vector.load %arg4[%c0, %c0_1, %c0_2] : memref<1x4x1024xf32, #tpu.memory_space<vmem>>, vector<1x4x1024xf32>
    %4 = vector.shape_cast %3 : vector<1x4x1024xf32> to vector<4x1024xf32>
    %c0_3 = arith.constant 0 : index
    %c0_4 = arith.constant 0 : index
    %c0_5 = arith.constant 0 : index
    %5 = vector.load %arg5[%c0_3, %c0_4, %c0_5] : memref<1x4x1024xf32, #tpu.memory_space<vmem>>, vector<1x4x1024xf32>
    %6 = vector.shape_cast %5 : vector<1x4x1024xf32> to vector<4x1024xf32>
    %c0_6 = arith.constant 0 : index
    %c0_7 = arith.constant 0 : index
    %7 = vector.load %arg3[%c0_6, %c0_7] : memref<4x128xf32, #tpu.memory_space<vmem>>, vector<4x1xf32>
    %cst = arith.constant dense<0xFF800000> : vector<1024xf32>
    %8 = vector.multi_reduction <maximumf>, %4, %cst [0] : vector<4x1024xf32> to vector<1024xf32>
    %9 = vector.shape_cast %8 : vector<1024xf32> to vector<1x1024xf32>
    %10 = vector.broadcast %9 : vector<1x1024xf32> to vector<4x1024xf32>
    %11 = arith.subf %4, %10 : vector<4x1024xf32>
    %12 = math.exp %11 : vector<4x1024xf32>
    %cst_8 = arith.constant dense<0.000000e+00> : vector<1024xf32>
    %13 = vector.multi_reduction <add>, %12, %cst_8 [0] : vector<4x1024xf32> to vector<1024xf32>
    %14 = vector.shape_cast %13 : vector<1024xf32> to vector<1x1024xf32>
    %15 = tpu.iota {dimensions = array<i32: 0>} : vector<4x1024xi32>
    %16 = vector.broadcast %9 : vector<1x1024xf32> to vector<4x1024xf32>
    %17 = arith.cmpf oge, %4, %16 : vector<4x1024xf32>
    %c4_i32 = arith.constant 4 : i32
    %18 = vector.broadcast %c4_i32 : i32 to vector<4x1024xi32>
    %19 = arith.select %17, %15, %18 : vector<4x1024xi1>, vector<4x1024xi32>
    %cst_9 = arith.constant dense<2147483647> : vector<1024xi32>
    %20 = vector.multi_reduction <minsi>, %19, %cst_9 [0] : vector<4x1024xi32> to vector<1024xi32>
    %21 = vector.shape_cast %20 : vector<1024xi32> to vector<1x1024xi32>
    %22 = vector.broadcast %21 : vector<1x1024xi32> to vector<4x1024xi32>
    %23 = arith.cmpi eq, %15, %22 : vector<4x1024xi32>
    %24 = arith.extui %23 : vector<4x1024xi1> to vector<4x1024xi32>
    %25 = arith.sitofp %24 : vector<4x1024xi32> to vector<4x1024xf32>
    %cst_10 = arith.constant dense<0xFF800000> : vector<1024xf32>
    %26 = vector.multi_reduction <maximumf>, %6, %cst_10 [0] : vector<4x1024xf32> to vector<1024xf32>
    %27 = vector.shape_cast %26 : vector<1024xf32> to vector<1x1024xf32>
    %28 = vector.broadcast %27 : vector<1x1024xf32> to vector<4x1024xf32>
    %29 = arith.subf %6, %28 : vector<4x1024xf32>
    %30 = math.exp %29 : vector<4x1024xf32>
    %cst_11 = arith.constant dense<0.000000e+00> : vector<1024xf32>
    %31 = vector.multi_reduction <add>, %30, %cst_11 [0] : vector<4x1024xf32> to vector<1024xf32>
    %32 = vector.shape_cast %31 : vector<1024xf32> to vector<1x1024xf32>
    %33 = tpu.iota {dimensions = array<i32: 0>} : vector<4x1024xi32>
    %34 = vector.broadcast %27 : vector<1x1024xf32> to vector<4x1024xf32>
    %35 = arith.cmpf oge, %6, %34 : vector<4x1024xf32>
    %c4_i32_12 = arith.constant 4 : i32
    %36 = vector.broadcast %c4_i32_12 : i32 to vector<4x1024xi32>
    %37 = arith.select %35, %33, %36 : vector<4x1024xi1>, vector<4x1024xi32>
    %cst_13 = arith.constant dense<2147483647> : vector<1024xi32>
    %38 = vector.multi_reduction <minsi>, %37, %cst_13 [0] : vector<4x1024xi32> to vector<1024xi32>
    %39 = vector.shape_cast %38 : vector<1024xi32> to vector<1x1024xi32>
    %40 = vector.broadcast %39 : vector<1x1024xi32> to vector<4x1024xi32>
    %41 = arith.cmpi eq, %33, %40 : vector<4x1024xi32>
    %42 = arith.extui %41 : vector<4x1024xi1> to vector<4x1024xi32>
    %43 = arith.sitofp %42 : vector<4x1024xi32> to vector<4x1024xf32>
    %44 = arith.cmpf ole, %14, %32 : vector<1x1024xf32>
    %45 = vector.shape_cast %44 : vector<1x1024xi1> to vector<1x1024xi1>
    %46 = vector.broadcast %45 : vector<1x1024xi1> to vector<4x1024xi1>
    %47 = arith.select %46, %25, %43 : vector<4x1024xi1>, vector<4x1024xf32>
    %48 = vector.broadcast %7 : vector<4x1xf32> to vector<4x1024xf32>
    %49 = arith.mulf %48, %47 : vector<4x1024xf32>
    %cst_14 = arith.constant dense<0.000000e+00> : vector<1024xf32>
    %50 = vector.multi_reduction <add>, %49, %cst_14 [0] : vector<4x1024xf32> to vector<1024xf32>
    %51 = vector.shape_cast %50 : vector<1024xf32> to vector<1x1024xf32>
    %52 = math.log %14 : vector<1x1024xf32>
    %53 = arith.addf %9, %52 : vector<1x1024xf32>
    %54 = math.log %32 : vector<1x1024xf32>
    %55 = arith.addf %27, %54 : vector<1x1024xf32>
    %56 = arith.mulf %47, %4 : vector<4x1024xf32>
    %cst_15 = arith.constant dense<0.000000e+00> : vector<1024xf32>
    %57 = vector.multi_reduction <add>, %56, %cst_15 [0] : vector<4x1024xf32> to vector<1024xf32>
    %58 = vector.shape_cast %57 : vector<1024xf32> to vector<1x1024xf32>
    %59 = arith.subf %53, %58 : vector<1x1024xf32>
    %60 = arith.mulf %51, %59 : vector<1x1024xf32>
    %c0_16 = arith.constant 0 : index
    %c0_17 = arith.constant 0 : index
    %c0_18 = arith.constant 0 : index
    %61 = vector.load %arg12[%c0_16, %c0_17, %c0_18] : memref<1x1x1024xf32, #tpu.memory_space<vmem>>, vector<1x1x1024xf32>
    %62 = vector.shape_cast %61 : vector<1x1x1024xf32> to vector<1x1024xf32>
    %63 = vector.shape_cast %60 : vector<1x1024xf32> to vector<1x1x1024xf32>
    tpu.vector_store %arg12[%c0_16, %c0_17, %c0_18], %63 {strides = array<i32>} : memref<1x1x1024xf32, #tpu.memory_space<vmem>>, vector<1x1x1024xf32>,
    %64 = arith.mulf %47, %6 : vector<4x1024xf32>
    %cst_19 = arith.constant dense<0.000000e+00> : vector<1024xf32>
    %65 = vector.multi_reduction <add>, %64, %cst_19 [0] : vector<4x1024xf32> to vector<1024xf32>
    %66 = vector.shape_cast %65 : vector<1024xf32> to vector<1x1024xf32>
    %67 = arith.subf %55, %66 : vector<1x1024xf32>
    %68 = arith.mulf %51, %67 : vector<1x1024xf32>
    %c0_20 = arith.constant 0 : index
    %c0_21 = arith.constant 0 : index
    %c0_22 = arith.constant 0 : index
    %69 = vector.load %arg13[%c0_20, %c0_21, %c0_22] : memref<1x1x1024xf32, #tpu.memory_space<vmem>>, vector<1x1x1024xf32>
    %70 = vector.shape_cast %69 : vector<1x1x1024xf32> to vector<1x1024xf32>
    %71 = vector.shape_cast %68 : vector<1x1024xf32> to vector<1x1x1024xf32>
    tpu.vector_store %arg13[%c0_20, %c0_21, %c0_22], %71 {strides = array<i32>} : memref<1x1x1024xf32, #tpu.memory_space<vmem>>, vector<1x1x1024xf32>,
    %c0_23 = arith.constant 0 : index
    %c0_24 = arith.constant 0 : index
    %c0_25 = arith.constant 0 : index
    %72 = vector.load %arg14[%c0_23, %c0_24, %c0_25] : memref<1x1x1024xi32, #tpu.memory_space<vmem>>, vector<1x1x1024xi32>
    %73 = vector.shape_cast %72 : vector<1x1x1024xi32> to vector<1x1024xi32>
    %74 = vector.shape_cast %21 : vector<1x1024xi32> to vector<1x1x1024xi32>
    tpu.vector_store %arg14[%c0_23, %c0_24, %c0_25], %74 {strides = array<i32>} : memref<1x1x1024xi32, #tpu.memory_space<vmem>>, vector<1x1x1024xi32>,
    %c0_26 = arith.constant 0 : index
    %c0_27 = arith.constant 0 : index
    %c0_28 = arith.constant 0 : index
    %75 = vector.load %arg15[%c0_26, %c0_27, %c0_28] : memref<1x1x1024xi32, #tpu.memory_space<vmem>>, vector<1x1x1024xi32>
    %76 = vector.shape_cast %75 : vector<1x1x1024xi32> to vector<1x1024xi32>
    %77 = vector.shape_cast %39 : vector<1x1024xi32> to vector<1x1x1024xi32>
    tpu.vector_store %arg15[%c0_26, %c0_27, %c0_28], %77 {strides = array<i32>} : memref<1x1x1024xi32, #tpu.memory_space<vmem>>, vector<1x1x1024xi32>,
    %78 = tpu.reciprocal %14 {approx = true} : vector<1x1024xf32> -> vector<1x1024xf32>
    %79 = tpu.reciprocal %32 {approx = true} : vector<1x1024xf32> -> vector<1x1024xf32>
    %c0_29 = arith.constant 0 : index
    %c0_30 = arith.constant 0 : index
    %c0_31 = arith.constant 0 : index
    %80 = vector.load %arg6[%c0_29, %c0_30, %c0_31] : memref<1x32x1024xf32, #tpu.memory_space<vmem>>, vector<1x32x1024xf32>
    %81 = vector.shape_cast %80 : vector<1x32x1024xf32> to vector<32x1024xf32>
    %82 = vector.broadcast %78 : vector<1x1024xf32> to vector<32x1024xf32>
    %83 = arith.mulf %81, %82 : vector<32x1024xf32>
    %84 = arith.truncf %83 : vector<32x1024xf32> to vector<32x1024xbf16>
    %85 = arith.truncf %25 : vector<4x1024xf32> to vector<4x1024xbf16>
    %cst_32 = arith.constant dense<0.000000e+00> : vector<4x32xf32>
    %86 = tpu.matmul %85, %84, %cst_32 {dimension_numbers = #tpu.dot_dimension_numbers<[1], [1], [0], [0], [0, 0, 1, 0], [], []>} : vector<4x1024xbf16>, vector<32x1024xbf16>, vector<4x32xf32> -> vector<4x32xf32>
    %c0_33 = arith.constant 0 : index
    %c0_34 = arith.constant 0 : index
    %c0_35 = arith.constant 0 : index
    %c0_36 = arith.constant 0 : index
    %87 = vector.load %arg8[%c0_33, %c0_34, %c0_35, %c0_36] : memref<1x1x4x32xf32, #tpu.memory_space<vmem>>, vector<1x1x4x32xf32>
    %88 = vector.shape_cast %87 : vector<1x1x4x32xf32> to vector<4x32xf32>
    %89 = arith.addf %88, %86 : vector<4x32xf32>
    %c0_37 = arith.constant 0 : index
    %c0_38 = arith.constant 0 : index
    %c0_39 = arith.constant 0 : index
    %c0_40 = arith.constant 0 : index
    %90 = vector.load %arg8[%c0_37, %c0_38, %c0_39, %c0_40] : memref<1x1x4x32xf32, #tpu.memory_space<vmem>>, vector<1x1x4x32xf32>
    %91 = vector.shape_cast %90 : vector<1x1x4x32xf32> to vector<4x32xf32>
    %92 = vector.shape_cast %89 : vector<4x32xf32> to vector<1x1x4x32xf32>
    tpu.vector_store %arg8[%c0_37, %c0_38, %c0_39, %c0_40], %92 {strides = array<i32>} : memref<1x1x4x32xf32, #tpu.memory_space<vmem>>, vector<1x1x4x32xf32>,
    %c0_41 = arith.constant 0 : index
    %c0_42 = arith.constant 0 : index
    %c0_43 = arith.constant 0 : index
    %c0_44 = arith.constant 0 : index
    %93 = vector.load %arg9[%c0_41, %c0_42, %c0_43, %c0_44] : memref<1x1x4x1xf32, #tpu.memory_space<vmem>>, vector<1x1x4x1xf32>
    %94 = vector.shape_cast %93 : vector<1x1x4x1xf32> to vector<4x1xf32>
    %cst_45 = arith.constant dense<0.000000e+00> : vector<4xf32>
    %95 = vector.multi_reduction <add>, %25, %cst_45 [1] : vector<4x1024xf32> to vector<4xf32>
    %96 = vector.shape_cast %95 : vector<4xf32> to vector<4x1xf32>
    %97 = arith.addf %94, %96 : vector<4x1xf32>
    %c0_46 = arith.constant 0 : index
    %c0_47 = arith.constant 0 : index
    %c0_48 = arith.constant 0 : index
    %c0_49 = arith.constant 0 : index
    %98 = vector.load %arg9[%c0_46, %c0_47, %c0_48, %c0_49] : memref<1x1x4x1xf32, #tpu.memory_space<vmem>>, vector<1x1x4x1xf32>
    %99 = vector.shape_cast %98 : vector<1x1x4x1xf32> to vector<4x1xf32>
    %100 = vector.shape_cast %97 : vector<4x1xf32> to vector<1x1x4x1xf32>
    tpu.vector_store %arg9[%c0_46, %c0_47, %c0_48, %c0_49], %100 {strides = array<i32>} : memref<1x1x4x1xf32, #tpu.memory_space<vmem>>, vector<1x1x4x1xf32>,
    %c0_50 = arith.constant 0 : index
    %c0_51 = arith.constant 0 : index
    %c0_52 = arith.constant 0 : index
    %101 = vector.load %arg7[%c0_50, %c0_51, %c0_52] : memref<1x32x1024xf32, #tpu.memory_space<vmem>>, vector<1x32x1024xf32>
    %102 = vector.shape_cast %101 : vector<1x32x1024xf32> to vector<32x1024xf32>
    %103 = vector.broadcast %79 : vector<1x1024xf32> to vector<32x1024xf32>
    %104 = arith.mulf %102, %103 : vector<32x1024xf32>
    %105 = arith.truncf %104 : vector<32x1024xf32> to vector<32x1024xbf16>
    %106 = arith.truncf %43 : vector<4x1024xf32> to vector<4x1024xbf16>
    %cst_53 = arith.constant dense<0.000000e+00> : vector<4x32xf32>
    %107 = tpu.matmul %106, %105, %cst_53 {dimension_numbers = #tpu.dot_dimension_numbers<[1], [1], [0], [0], [0, 0, 1, 0], [], []>} : vector<4x1024xbf16>, vector<32x1024xbf16>, vector<4x32xf32> -> vector<4x32xf32>
    %c0_54 = arith.constant 0 : index
    %c0_55 = arith.constant 0 : index
    %c0_56 = arith.constant 0 : index
    %c0_57 = arith.constant 0 : index
    %108 = vector.load %arg10[%c0_54, %c0_55, %c0_56, %c0_57] : memref<1x1x4x32xf32, #tpu.memory_space<vmem>>, vector<1x1x4x32xf32>
    %109 = vector.shape_cast %108 : vector<1x1x4x32xf32> to vector<4x32xf32>
    %110 = arith.addf %109, %107 : vector<4x32xf32>
    %c0_58 = arith.constant 0 : index
    %c0_59 = arith.constant 0 : index
    %c0_60 = arith.constant 0 : index
    %c0_61 = arith.constant 0 : index
    %111 = vector.load %arg10[%c0_58, %c0_59, %c0_60, %c0_61] : memref<1x1x4x32xf32, #tpu.memory_space<vmem>>, vector<1x1x4x32xf32>
    %112 = vector.shape_cast %111 : vector<1x1x4x32xf32> to vector<4x32xf32>
    %113 = vector.shape_cast %110 : vector<4x32xf32> to vector<1x1x4x32xf32>
    tpu.vector_store %arg10[%c0_58, %c0_59, %c0_60, %c0_61], %113 {strides = array<i32>} : memref<1x1x4x32xf32, #tpu.memory_space<vmem>>, vector<1x1x4x32xf32>,
    %c0_62 = arith.constant 0 : index
    %c0_63 = arith.constant 0 : index
    %c0_64 = arith.constant 0 : index
    %c0_65 = arith.constant 0 : index
    %114 = vector.load %arg11[%c0_62, %c0_63, %c0_64, %c0_65] : memref<1x1x4x1xf32, #tpu.memory_space<vmem>>, vector<1x1x4x1xf32>
    %115 = vector.shape_cast %114 : vector<1x1x4x1xf32> to vector<4x1xf32>
    %cst_66 = arith.constant dense<0.000000e+00> : vector<4xf32>
    %116 = vector.multi_reduction <add>, %43, %cst_66 [1] : vector<4x1024xf32> to vector<4xf32>
    %117 = vector.shape_cast %116 : vector<4xf32> to vector<4x1xf32>
    %118 = arith.addf %115, %117 : vector<4x1xf32>
    %c0_67 = arith.constant 0 : index
    %c0_68 = arith.constant 0 : index
    %c0_69 = arith.constant 0 : index
    %c0_70 = arith.constant 0 : index
    %119 = vector.load %arg11[%c0_67, %c0_68, %c0_69, %c0_70] : memref<1x1x4x1xf32, #tpu.memory_space<vmem>>, vector<1x1x4x1xf32>
    %120 = vector.shape_cast %119 : vector<1x1x4x1xf32> to vector<4x1xf32>
    %121 = vector.shape_cast %118 : vector<4x1xf32> to vector<1x1x4x1xf32>
    tpu.vector_store %arg11[%c0_67, %c0_68, %c0_69, %c0_70], %121 {strides = array<i32>} : memref<1x1x4x1xf32, #tpu.memory_space<vmem>>, vector<1x1x4x1xf32>,
    return
  }
  func.func @transform_0(%arg0: i32, %arg1: i32, %arg2: i32) -> (i32, i32) {
    %c0_i32 = arith.constant 0 : i32
    %c0_i32_0 = arith.constant 0 : i32
    %c0_i32_1 = arith.constant 0 : i32
    return %c0_i32, %c0_i32_0 : i32, i32
  }
  func.func @transform_1(%arg0: i32, %arg1: i32, %arg2: i32) -> (i32, i32, i32) {
    %c1_i32 = arith.constant 1 : i32
    %0 = arith.muli %arg0, %c1_i32 : i32
    %1 = arith.addi %0, %arg2 : i32
    %c0_i32 = arith.constant 0 : i32
    %c0_i32_0 = arith.constant 0 : i32
    return %arg1, %c0_i32, %1 : i32, i32, i32
  }
  func.func @transform_2(%arg0: i32, %arg1: i32, %arg2: i32) -> (i32, i32, i32) {
    %c1_i32 = arith.constant 1 : i32
    %0 = arith.muli %arg0, %c1_i32 : i32
    %1 = arith.addi %0, %arg2 : i32
    %c0_i32 = arith.constant 0 : i32
    %c0_i32_0 = arith.constant 0 : i32
    return %arg1, %c0_i32, %1 : i32, i32, i32
  }
  func.func @transform_3(%arg0: i32, %arg1: i32, %arg2: i32) -> (i32, i32, i32) {
    %c1_i32 = arith.constant 1 : i32
    %0 = arith.muli %arg0, %c1_i32 : i32
    %1 = arith.addi %0, %arg2 : i32
    %c0_i32 = arith.constant 0 : i32
    %c0_i32_0 = arith.constant 0 : i32
    return %arg1, %c0_i32, %1 : i32, i32, i32
  }
  func.func @transform_4(%arg0: i32, %arg1: i32, %arg2: i32) -> (i32, i32, i32) {
    %c1_i32 = arith.constant 1 : i32
    %0 = arith.muli %arg0, %c1_i32 : i32
    %1 = arith.addi %0, %arg2 : i32
    %c0_i32 = arith.constant 0 : i32
    %c0_i32_0 = arith.constant 0 : i32
    return %arg1, %c0_i32, %1 : i32, i32, i32
  }
  func.func @transform_5(%arg0: i32, %arg1: i32, %arg2: i32) -> (i32, i32, i32, i32) {
    %c0_i32 = arith.constant 0 : i32
    %c0_i32_0 = arith.constant 0 : i32
    %c0_i32_1 = arith.constant 0 : i32
    return %arg0, %arg1, %c0_i32, %c0_i32_0 : i32, i32, i32, i32
  }
  func.func @transform_6(%arg0: i32, %arg1: i32, %arg2: i32) -> (i32, i32, i32, i32) {
    %c0_i32 = arith.constant 0 : i32
    %c0_i32_0 = arith.constant 0 : i32
    %c0_i32_1 = arith.constant 0 : i32
    return %arg0, %arg1, %c0_i32, %c0_i32_0 : i32, i32, i32, i32
  }
  func.func @transform_7(%arg0: i32, %arg1: i32, %arg2: i32) -> (i32, i32, i32, i32) {
    %c0_i32 = arith.constant 0 : i32
    %c0_i32_0 = arith.constant 0 : i32
    %c0_i32_1 = arith.constant 0 : i32
    return %arg0, %arg1, %c0_i32, %c0_i32_0 : i32, i32, i32, i32
  }
  func.func @transform_8(%arg0: i32, %arg1: i32, %arg2: i32) -> (i32, i32, i32, i32) {
    %c0_i32 = arith.constant 0 : i32
    %c0_i32_0 = arith.constant 0 : i32
    %c0_i32_1 = arith.constant 0 : i32
    return %arg0, %arg1, %c0_i32, %c0_i32_0 : i32, i32, i32, i32
  }
  func.func @transform_9(%arg0: i32, %arg1: i32, %arg2: i32) -> (i32, i32, i32) {
    %c1_i32 = arith.constant 1 : i32
    %0 = arith.muli %arg0, %c1_i32 : i32
    %1 = arith.addi %0, %arg2 : i32
    %c0_i32 = arith.constant 0 : i32
    %c0_i32_0 = arith.constant 0 : i32
    return %arg1, %c0_i32, %1 : i32, i32, i32
  }
  func.func @transform_10(%arg0: i32, %arg1: i32, %arg2: i32) -> (i32, i32, i32) {
    %c1_i32 = arith.constant 1 : i32
    %0 = arith.muli %arg0, %c1_i32 : i32
    %1 = arith.addi %0, %arg2 : i32
    %c0_i32 = arith.constant 0 : i32
    %c0_i32_0 = arith.constant 0 : i32
    return %arg1, %c0_i32, %1 : i32, i32, i32
  }
  func.func @transform_11(%arg0: i32, %arg1: i32, %arg2: i32) -> (i32, i32, i32) {
    %c1_i32 = arith.constant 1 : i32
    %0 = arith.muli %arg0, %c1_i32 : i32
    %1 = arith.addi %0, %arg2 : i32
    %c0_i32 = arith.constant 0 : i32
    %c0_i32_0 = arith.constant 0 : i32
    return %arg1, %c0_i32, %1 : i32, i32, i32
  }
  func.func @transform_12(%arg0: i32, %arg1: i32, %arg2: i32) -> (i32, i32, i32) {
    %c1_i32 = arith.constant 1 : i32
    %0 = arith.muli %arg0, %c1_i32 : i32
    %1 = arith.addi %0, %arg2 : i32
    %c0_i32 = arith.constant 0 : i32
    %c0_i32_0 = arith.constant 0 : i32
    return %arg1, %c0_i32, %1 : i32, i32, i32
  }
}

</mosaic_0001>

<bundles_post_ra>
// kernel: tpu_custom_call.1
= control target key start
LH: loop header
LB: loop body
LE: loop exit
PB: predicated region body
PF: predicated region fallthrough
CT: control target
= control target key end

     0   :  { %s5331_s0 = inlined_call_operand.hbm [shape: f32[4,128], index: 0, kind: input, shape index: {}]   ;;  %s5332_s1 = inlined_call_operand.hbm [shape: f32[2,4,1024], index: 1, kind: input, shape index: {}]   ;;  %s5333_s2 = inlined_call_operand.hbm [shape: f32[2,4,1024], index: 2, kind: input, shape index: {}]   ;;  %s5334_s3 = inlined_call_operand.hbm [shape: f32[2,32,1024], index: 3, kind: input, shape index: {}]   ;;  %s5335_s4 = inlined_call_operand.hbm [shape: f32[2,32,1024], index: 4, kind: input, shape index: {}]   ;;  %s5336_s5 = inlined_call_operand.hbm [shape: f32[1,2,4,32], index: 5, kind: output, shape index: {0}]   ;;  %s5337_s6 = inlined_call_operand.vmem [shape: f32[1,2,4,1], index: 6, kind: output, shape index: {1}]   ;;  %s5338_s7 = inlined_call_operand.hbm [shape: f32[1,2,4,32], index: 7, kind: output, shape index: {2}]   ;;  %s5339_s8 = inlined_call_operand.vmem [shape: f32[1,2,4,1], index: 8, kind: output, shape index: {3}]   ;;  %s5340_s9 = inlined_call_operand.hbm [shape: f32[2,1,1024], index: 9, kind: output, shape index: {4}]   ;;  %s5341_s10 = inlined_call_operand.hbm [shape: f32[2,1,1024], index: 10, kind: output, shape index: {5}]   ;;  %s5342_s11 = inlined_call_operand.hbm [shape: s32[2,1,1024], index: 11, kind: output, shape index: {6}]   ;;  %s5343_s12 = inlined_call_operand.hbm [shape: s32[2,1,1024], index: 12, kind: output, shape index: {7}]  }
   0x1   :  { %5400 = sst [smem:[#allocation58_spill]] %s5332_s1 }
   0x2   :  { %5401 = sst [smem:[#allocation59_spill]] %s5334_s3 }
   0x3   :  { %5402 = sst [smem:[#allocation60_spill]] %s5336_s5 }
   0x4   :  { %5403 = sst [smem:[#allocation61_spill]] %s5338_s7 }
   0x5   :  { %5404 = sst [smem:[#allocation62_spill]] %s5340_s9 }
   0x6   :  { %5405 = sst [smem:[#allocation63_spill]] %s5342_s11 }
   0x7   :  { %5406 = sst [smem:[#allocation64_spill]] %s5343_s12 }
   0x8   :  { %18 = vsyncpa [#allocation3], 0 }
   0x9   :  { %19 = vsyncpa [#allocation6], 0 }
   0xa   :  { %21 = vsyncpa [#allocation6 + $0x1], 0 }
   0xb   :  { %22 = vsyncpa [#allocation9], 0 }
   0xc   :  { %24 = vsyncpa [#allocation9 + $0x1], 0 }
   0xd   :  { %25 = vsyncpa [#allocation4], 0 }
   0xe   :  { %27 = vsyncpa [#allocation4 + $0x1], 0 }
   0xf   :  { %28 = vsyncpa [#allocation13], 0 }
  0x10   :  { %30 = vsyncpa [#allocation13 + $0x1], 0 }
  0x11   :  { %31 = vsyncpa [#allocation16], 0 }
  0x12   :  { %33 = vsyncpa [#allocation16 + $0x1], 0 }
  0x13   :  { %34 = vsyncpa [#allocation19], 0 }
  0x14   :  { %36 = vsyncpa [#allocation19 + $0x1], 0  ;;  %s3757_s21 = smov 0   ;;  %s3759_s22 = smov 0  }
  0x15   :  { %s3761_s23 = smov 0   ;;  %s3763_s24 = smov 0  }
  0x16   :  { %s3765_s25 = smov 0   ;;  %s3767_s26 = smov 0  }
  0x17 LB: > { %5407 = sst [smem:[#allocation27_spill]] %s3652_s21  ;;  %s57_s27 = sadd.s32 1, %s3668_s25  ;;  %s3672_s26 = sphi %s3767_s26, %s42_s26   ;;  %s3668_s25 = sphi %s3765_s25, %s5541_s25   ;;  %s3664_s24 = sphi %s3763_s24, %s5540_s24   ;;  %s3660_s23 = sphi %s3761_s23, %s5536_s23   ;;  %s3656_s22 = sphi %s3759_s22, %s5539_s22   ;;  %s3652_s21 = sphi %s3757_s21, %s5538_s21  }
  0x18   : > { %5408 = sst [smem:[#allocation28_spill]] %s3660_s23  ;;  %s93_s28 = sadd.s32 1, %s3660_s23 }
  0x19   : > { %5409 = sst [smem:[#allocation29_spill]] %s3672_s26  ;;  %p59_p0 = scmp.ge.s32.totalorder %s57_s27, 2 }
  0x1a   : > { %p5349_p1 = scmp.ne.s32.totalorder %s3660_s23, %s3656_s22  ;;  %p101_p2 = scmp.eq.s32.totalorder %s3672_s26, 0 }
  0x1b   : > { %s5543_s27 = smov (%p59_p0, %s57_s27), 0  ;;  %p3130_p5 = scmp.lt.s32.totalorder %s3672_s26, 2 }
  0x1c   : > { %5410 = sst [smem:[#allocation30_spill]] %s5543_s27  ;;  %p102_p4 = por %p101_p2, %p5349_p1 }
  0x1d   : > { %s88_s29 = ssub.s32 %s3668_s25, %s5543_s27  ;;  %s5348_s30 = sand.u32 1, %s3672_s26  }
  0x1e   : > { %p91_p6 = scmp.eq.s32.totalorder %s88_s29, 0  ;;  %s5344_s13 = sand.u32 1, %s3660_s23  }
  0x1f   : > { %s5345_s14 = sshll.u32 %s3668_s25, 9  ;;  %s3809_s16 = sshll.u32 %s5344_s13, 5 }
  0x20   : > { %s3805_s15 = scalar_select %p91_p6, %s3660_s23, %s93_s28  }
  0x21   : > { %s5412_s1 = sld [smem:[#allocation58_spill]]  ;;  %p3818_p7 = pnand %p3130_p5, %p102_p4 }
  0x22   : > { %5411 = sst [smem:[#allocation31_spill]] %s3805_s15  ;;  %s467_s28 = scalar_lea.vmem [#allocation5], %s3809_s16 }
  0x23   : > { %s478_s29 = sshll.u32 %s467_s28, 4  ;;  %s3827_s13 = scalar_lea.sflag [#allocation6], %s5348_s30  ;;  %s3823_s29 = int_to_ptr.vmem [resolvable:$true] %s478_s29 }
  0x24   : > { %p3833_p9 = pneg %p3818_p7 }
  0x27   : > { %s3816_s19 = scalar_lea.hbm %s5412_s1, %s5345_s14  ;;  %s3287_s28 = scalar_lea.hbm %s5412_s1, 1024 }
  0x28   : > { %s3282_s17 = scalar_lea.hbm %s3816_s19, 512  ;;  %p3288_p12 = scmp.lt.u32.totalorder %s3816_s19, %s5412_s1 }
  0x29   : > { %p3283_p8 = scmp.ne.s32.totalorder %s3816_s19, %s3282_s17  ;;  %p3289_p13 = scmp.lt.u32.totalorder %s3287_s28, %s3282_s17 }
  0x2a   : > { %p3291_p2 = scmp.lt.u32.totalorder %s3282_s17, %s3816_s19 }
  0x2b   : > { %p3285_p10 = pnand %p3833_p9, %p3283_p8  ;;  %p3290_p0 = por %p3289_p13, %p3288_p12 }
  0x2d   : > { %p3286_p11 = pneg %p3285_p10  ;;  %p3292_p4 = por %p3291_p2, %p3290_p0 }
  0x2f   : > { %p3293_p5 = pnand %p3292_p4, %p3286_p11 }
  0x31   : > { %3296 = shalt.err (!%p3293_p5)
}
  0x32   : > { %s3297_s30 = scalar_lea.vmem %s3823_s29, 512  ;;  %s3674_s27 = smov [#allocation5]  }
  0x33   : > { %p3298_p6 = scmp.ne.s32.totalorder %s3823_s29, %s3297_s30  ;;  %s3302_s14 = sshll.u32 %s3674_s27, 4  ;;  %s3303_s14 = int_to_ptr.vmem [resolvable:$false] %s3302_s14 }
  0x34   : > { %s3304_s9 = scalar_lea.vmem %s3303_s14, 1024  ;;  %p3305_p3 = scmp.lt.s32.totalorder %s3823_s29, %s3303_s14 }
  0x35   : > { %p3300_p8 = pnand %p3298_p6, %p3833_p9  ;;  %p3306_p1 = scmp.lt.s32.totalorder %s3304_s9, %s3297_s30 }
  0x37   : > { %p3301_p10 = pneg %p3300_p8  ;;  %p3307_p12 = por %p3306_p1, %p3305_p3 }
  0x39   : > { %p3308_p13 = pnand %p3307_p12, %p3301_p10 }
  0x3b   : > { %3311 = shalt.err (!%p3308_p13)
}
  0x3c   : > { %3100 = dma.hbm_to_vmem [thread:$0]  (!%p3818_p7), %s3816_s19, 512, %s3823_s29, %s3827_s13  }
  0x3d   : > { %s5415_s15 = sand.u32 1, %s3660_s23   ;;  %s5354_s28 = sshll.u32 %s3668_s25, 12 }
  0x3e   : > { %s2975_s17 = sshll.u32 %s5415_s15, 8  ;;  %s5416_s27 = sshll.u32 %s3668_s25, 9 }
  0x3f   : > { %s3865_s9 = scalar_lea.hbm %s5333_s2, %s5416_s27  ;;  %s511_s1 = scalar_lea.vmem [#allocation8], %s2975_s17 }
  0x40   : > { %s521_s7 = sshll.u32 %s511_s1, 4  ;;  %s5417_s3 = sld [smem:[#allocation59_spill]]  ;;  %s3874_s7 = int_to_ptr.vmem [resolvable:$true] %s521_s7 }
  0x41   : > { %s535_s19 = scalar_lea.vmem [#allocation10], %s2975_s17  ;;  %s5418_s15 = sand.u32 1, %s3672_s26  }
  0x42   : > { %s3876_s29 = sshll.u32 %s535_s19, 4  ;;  %s3880_s27 = scalar_lea.sflag [#allocation9], %s5418_s15  ;;  %s3938_s29 = int_to_ptr.vmem [resolvable:$true] %s3876_s29 }
  0x46   : > { %s3872_s11 = scalar_lea.hbm %s5417_s3, %s5354_s28  ;;  %s3317_s12 = scalar_lea.hbm %s5417_s3, 8192 }
  0x47   : > { %s3312_s30 = scalar_lea.hbm %s3872_s11, 4096  ;;  %p3318_p0 = scmp.lt.u32.totalorder %s3872_s11, %s5417_s3 }
  0x48   : > { %p3313_p1 = scmp.ne.s32.totalorder %s3872_s11, %s3312_s30  ;;  %p3319_p2 = scmp.lt.u32.totalorder %s3317_s12, %s3312_s30 }
  0x49   : > { %p3321_p5 = scmp.lt.u32.totalorder %s3312_s30, %s3872_s11 }
  0x4a   : > { %p3315_p3 = pnand %p3313_p1, %p3833_p9  ;;  %p3320_p4 = por %p3319_p2, %p3318_p0 }
  0x4c   : > { %p3316_p11 = pneg %p3315_p3  ;;  %p3322_p6 = por %p3321_p5, %p3320_p4 }
  0x4e   : > { %p3323_p8 = pnand %p3322_p6, %p3316_p11 }
  0x50   : > { %3326 = shalt.err (!%p3323_p8)
}
  0x51   : > { %s3327_s17 = scalar_lea.vmem %s3874_s7, 4096  ;;  %s3675_s19 = smov [#allocation8]  }
  0x52   : > { %p3328_p10 = scmp.ne.s32.totalorder %s3874_s7, %s3327_s17  ;;  %s3332_s15 = sshll.u32 %s3675_s19, 4  ;;  %s3333_s15 = int_to_ptr.vmem [resolvable:$false] %s3332_s15 }
  0x53   : > { %s3334_s28 = scalar_lea.vmem %s3333_s15, 8192  ;;  %p3335_p1 = scmp.lt.s32.totalorder %s3874_s7, %s3333_s15 }
  0x54   : > { %p3330_p12 = pnand %p3328_p10, %p3833_p9  ;;  %p3336_p3 = scmp.lt.s32.totalorder %s3334_s28, %s3327_s17 }
  0x56   : > { %p3331_p13 = pneg %p3330_p12  ;;  %p3337_p0 = por %p3336_p3, %p3335_p1 }
  0x58   : > { %p3338_p2 = pnand %p3337_p0, %p3331_p13 }
  0x5a   : > { %3341 = shalt.err (!%p3338_p2)
}
  0x5b   : > { %s5356_s30 = smov 1024   ;;  %s5357_s1 = smov 64  }
  0x5c   : > { %3106 = dma.hbm_to_vmem [thread:$0]  (!%p3818_p7), %s3872_s11, 4096, %s3874_s7, %s3880_s27, %s5356_s30, %s5356_s30, %s5357_s1  }
  0x5d   : > { %s3908_s5 = sadd.s32 4294967295, %s3672_s26   ;;  %s5355_s12 = sadd.s32 4294967294, %s3672_s26  }
  0x5e   : > { %p106_p11 = scmp.ne.s32.totalorder %s3656_s22, %s3652_s21  ;;  %p5363_p4 = scmp.eq.s32.totalorder %s3908_s5, 0 }
  0x5f   : > { %p222_p5 = scmp.eq.s32.totalorder %s3908_s5, 1  ;;  %p228_p6 = scmp.eq.s32.totalorder %s5355_s12, 1 }
  0x60   : > { %p3919_p8 = por %p5363_p4, %p106_p11  ;;  %p2966_p10 = scmp.ge.s32.totalorder %s3672_s26, 1 }
  0x61   : > { %p5420_p12 = scmp.ne.s32.totalorder %s3660_s23, %s3656_s22  ;;  %p3931_p1 = por %p228_p6, %p106_p11 }
  0x62   : > { %s5419_s14 = scalar_select %p3919_p8, 1, 0 }
  0x63   : > { %p3927_p13 = por %p222_p5, %p5420_p12  ;;  %p439_p3 = scmp.lt.s32.totalorder %s3672_s26, 3 }
  0x64   : > { %s5422_s11 = scalar_select %p3931_p1, 1, 0 }
  0x65   : > { %s5421_s7 = scalar_select %p3927_p13, 1, 0 }
  0x66   : > { %5423 = sst [smem:[#allocation32_spill]] %s5422_s11  ;;  %s489_s17 = scalar_lea.vmem [#allocation7], %s3809_s16 }
  0x67   : > { %s500_s19 = sshll.u32 %s489_s17, 4  ;;  %p3940_p0 = pnand %p2966_p10, %p439_p3  ;;  %s3946_s19 = int_to_ptr.vmem [resolvable:$true] %s500_s19 }
  0x68   : > { %s3678_s28 = smov [#allocation2]   ;;  %s5425_s30 = sshll.u32 %s3668_s25, 12 }
  0x69   : > { %s5424_s15 = scalar_select %p3940_p0, 1, 0 }
  0x6a   : > { %s3944_s12 = sshll.u32 %s3678_s28, 4  ;;  %s3953_s23 = scalar_lea.hbm %s5335_s4, %s5425_s30  ;;  %s3980_s12 = int_to_ptr.vmem [resolvable:$true] %s3944_s12 }
  0x6b   : > { %s3342_s16 = scalar_lea.hbm %s3865_s9, 512  ;;  %s3347_s28 = scalar_lea.hbm %s5333_s2, 1024 }
  0x6c   : > { %p3343_p11 = scmp.ne.s32.totalorder %s3865_s9, %s3342_s16  ;;  %p3348_p10 = scmp.lt.u32.totalorder %s3865_s9, %s5333_s2 }
  0x6d   : > { %p3349_p12 = scmp.lt.u32.totalorder %s3347_s28, %s3342_s16  ;;  %p3351_p4 = scmp.lt.u32.totalorder %s3342_s16, %s3865_s9 }
  0x6e   : > { %p3345_p5 = pnand %p3343_p11, %p3833_p9 }
  0x6f   : > { %p3350_p3 = por %p3349_p12, %p3348_p10 }
  0x70   : > { %p3346_p6 = pneg %p3345_p5 }
  0x71   : > { %p3352_p1 = por %p3351_p4, %p3350_p3 }
  0x73   : > { %p3353_p13 = pnand %p3352_p1, %p3346_p6 }
  0x75   : > { %3356 = shalt.err (!%p3353_p13)
}
  0x76   : > { %s3357_s3 = scalar_lea.vmem %s3946_s19, 512  ;;  %s3679_s26 = smov [#allocation7]  }
  0x77   : > { %p3358_p11 = scmp.ne.s32.totalorder %s3946_s19, %s3357_s3  ;;  %s3362_s30 = sshll.u32 %s3679_s26, 4  ;;  %s3363_s30 = int_to_ptr.vmem [resolvable:$false] %s3362_s30 }
  0x78   : > { %s3364_s21 = scalar_lea.vmem %s3363_s30, 1024  ;;  %p3365_p8 = scmp.lt.s32.totalorder %s3946_s19, %s3363_s30 }
  0x79   : > { %p3360_p5 = pnand %p3358_p11, %p3833_p9  ;;  %p3366_p0 = scmp.lt.s32.totalorder %s3364_s21, %s3357_s3 }
  0x7b   : > { %p3361_p2 = pneg %p3360_p5  ;;  %p3367_p10 = por %p3366_p0, %p3365_p8 }
  0x7d   : > { %p3368_p12 = pnand %p3367_p10, %p3361_p2 }
  0x7f   : > { %3371 = shalt.err (!%p3368_p12)
}
  0x80   : > { %3103 = dma.hbm_to_vmem [thread:$0]  (!%p3818_p7), %s3865_s9, 512, %s3946_s19, %s3827_s13  }
  0x81   : > { %p5426_p4 = scmp.eq.s32.totalorder %s3908_s5, 0  ;;  %p5427_p8 = scmp.ne.s32.totalorder %s5424_s15, 0 }
  0x82   : > { %s3372_s11 = scalar_lea.hbm %s3953_s23, 4096  ;;  %s3377_s28 = scalar_lea.hbm %s5335_s4, 8192 }
  0x83   : > { %p5428_p13 = pneg %p5427_p8  ;;  %p3373_p0 = scmp.ne.s32.totalorder %s3953_s23, %s3372_s11 }
  0x84   : > { %p3378_p3 = scmp.lt.u32.totalorder %s3953_s23, %s5335_s4  ;;  %p3379_p11 = scmp.lt.u32.totalorder %s3377_s28, %s3372_s11 }
  0x85   : > { %p3987_p1 = pnand %p5428_p13, %p5426_p4  ;;  %p3375_p2 = pnand %p3373_p0, %p3833_p9 }
  0x86   : > { %p3380_p5 = por %p3379_p11, %p3378_p3  ;;  %p3381_p10 = scmp.lt.u32.totalorder %s3372_s11, %s3953_s23 }
  0x87   : > { %s5429_s1 = scalar_select %p3987_p1, 1, 0 }
  0x88   : > { %p3376_p6 = pneg %p3375_p2  ;;  %p3382_p12 = por %p3381_p10, %p3380_p5 }
  0x8a   : > { %p3383_p4 = pnand %p3382_p12, %p3376_p6 }
  0x8c   : > { %3386 = shalt.err (!%p3383_p4)
}
  0x8d   : > { %s3387_s9 = scalar_lea.vmem %s3938_s29, 4096  ;;  %s3680_s19 = smov [#allocation10]  }
  0x8e   : > { %p3388_p13 = scmp.ne.s32.totalorder %s3938_s29, %s3387_s9  ;;  %s3392_s26 = sshll.u32 %s3680_s19, 4  ;;  %s3393_s26 = int_to_ptr.vmem [resolvable:$false] %s3392_s26 }
  0x8f   : > { %s3394_s30 = scalar_lea.vmem %s3393_s26, 8192  ;;  %p3395_p8 = scmp.lt.s32.totalorder %s3938_s29, %s3393_s26 }
  0x90   : > { %p3390_p0 = pnand %p3388_p13, %p3833_p9  ;;  %p3396_p1 = scmp.lt.s32.totalorder %s3394_s30, %s3387_s9 }
  0x92   : > { %p3391_p2 = pneg %p3390_p0  ;;  %p3397_p3 = por %p3396_p1, %p3395_p8 }
  0x94   : > { %p3398_p11 = pnand %p3397_p3, %p3391_p2 }
  0x96   : > { %3401 = shalt.err (!%p3398_p11)
}
  0x97   : > { %s5430_s21 = smov 64   ;;  %s5431_s11 = smov 1024  }
  0x98   : > { %3109 = dma.hbm_to_vmem [thread:$0]  (!%p3818_p7), %s3953_s23, 4096, %s3938_s29, %s3880_s27, %s5431_s11, %s5431_s11, %s5430_s21  }
  0x99   : > { %s3402_s17 = scalar_lea.hbm %s5331_s0, 64  ;;  %p5432_p8 = scmp.ne.s32.totalorder %s5429_s1, 0 }
  0x9a   : > { %p3403_p9 = scmp.ne.s32.totalorder %s5331_s0, %s3402_s17  ;;  %p3409_p10 = scmp.lt.u32.totalorder %s3402_s17, %s5331_s0 }
  0x9b   : > { %p3404_p1 = pneg %p5432_p8 }
  0x9d   : > { %p3405_p6 = pnand %p3404_p1, %p3403_p9 }
  0x9f   : > { %p3406_p5 = pneg %p3405_p6 }
  0xa1   : > { %p3411_p12 = pnand %p3409_p10, %p3406_p5 }
  0xa3   : > { %3414 = shalt.err (!%p3411_p12)
}
  0xa4   : > { %s3415_s23 = scalar_lea.vmem %s3980_s12, 64  ;;  %p3423_p0 = scmp.lt.s32.totalorder %s3980_s12, %s3980_s12 }
  0xa5   : > { %p3416_p7 = scmp.ne.s32.totalorder %s3980_s12, %s3415_s23  ;;  %p3424_p2 = scmp.lt.s32.totalorder %s3415_s23, %s3415_s23 }
  0xa7   : > { %p3418_p4 = pnand %p3416_p7, %p3404_p1  ;;  %p3425_p3 = por %p3424_p2, %p3423_p0 }
  0xa9   : > { %p3419_p13 = pneg %p3418_p4 }
  0xab   : > { %p3426_p11 = pnand %p3425_p3, %p3419_p13 }
  0xad   : > { %3429 = shalt.err (!%p3426_p11)
}
  0xae   : > { %3096 = dma.hbm_to_vmem [thread:$0]  (!%p5432_p8), %s5331_s0, 64, %s3980_s12, [#allocation3]  }
  0xaf   : > { %p5433_p9 = scmp.ne.s32.totalorder %s5424_s15, 0 }
  0xb1   : > { %557 = sbr.rel (%p5433_p9) target bundleno = 669 (0x29d), region = 40 }
  0xb8   : > { %p5434_p6 = scmp.eq.s32.totalorder %s3908_s5, 0 }
  0xba   : > { %3623 = dma.done.wait (%p5434_p6), [#allocation3], 64   ;;  %p5435_p1 = pmov %p5434_p6 }
  0xbb   : > { %s4044_s9 = sand.u32 1, %s3908_s5   ;;  %s4047_s1 = sand.u32 1, %s3656_s22  }
  0xbc   : > { %3625 = vsyncadd (%p5435_p1), [#allocation3], 4294967232  ;;  %s2983_s19 = sshll.u32 %s4047_s1, 5  ;;  %s564_s12 = scalar_lea.sflag [#allocation6], %s4044_s9 }
  0xbd   : > { %s4051_s26 = scalar_lea.vmem [#allocation5], %s2983_s19  ;;  %p5436_p8 = scmp.ne.s32.totalorder %s5419_s14, 0 }
  0xbf   : > { %3627 = dma.done.wait (%p5436_p8), %s564_s12, 1024  }
  0xc0   : > { %3629 = vsyncadd (%p5436_p8), %s564_s12, 4294966272  ;;  %s2985_s15 = sshll.u32 %s4047_s1, 8  ;;  %s4058_s5 = scalar_lea.vmem [#allocation7], %s2983_s19 }
  0xc1   : > { %s582_s30 = scalar_lea.sflag [#allocation9], %s4044_s9  ;;  %s4063_s21 = scalar_lea.vmem [#allocation8], %s2985_s15 }
  0xc2   : > { %3631 = dma.done.wait (%p5436_p8), %s582_s30, 8192  }
  0xc3   : > { %3633 = vsyncadd (%p5436_p8), %s582_s30, 4294959104  ;;  %vm755_vm0 = vcmask 1043456   ;;  %v4070_v0 = vld [vmem:[%s4051_s26] sm:$0xff]  ;;  %v4079_v3 = vld [vmem:[%s4051_s26 + $0x8] sm:$0xff]  ;;  %v908_v4 = vlaneseq  ;;  %v3681_v8 = vmov 839922192  }
  0xc4   : > { %v4074_v1 = vcombine.high %v4070_v0, %v4070_v0  ;;  %v756_v2 = vsel %vm755_vm0, %v4070_v0, -inf  ;;  %v4083_v6 = vcombine.high %v4079_v3, %v4079_v3  ;;  %v770_v7 = vsel %vm755_vm0, %v4079_v3, -inf  ;;  %v4094_v21 = vld [vmem:[%s4051_s26 + $0x10] sm:$0xff]  ;;  %v4103_v26 = vld [vmem:[%s4051_s26 + $0x18] sm:$0xff]  ;;  %s4544_s14 = scalar_lea.vmem [#allocation10], %s2985_s15  ;;  %s2987_s11 = sshll.u32 %s4047_s1, 2 }
  0xc5   : > { %v757_v5 = vrot.slane %v756_v2, 4  ;;  %v915_v9 = vunpack.c.l.s4 %v3681_v8  ;;  %v771_v11 = vrot.slane %v770_v7, 4  ;;  %v4091_v19 = vshrl.u32 %v908_v4, 7  ;;  %s4808_s18 = scalar_lea.vmem [#allocation11], %s2987_s11  ;;  %p701_p5 = scmp.lt.s32.totalorder %s3664_s24, 1 }
  0xc6   : > { %5437 = vst [vmem:[#allocation33_spill] sm:$0xff] %v4083_v6  ;;  %v763_v10 = vsel %vm755_vm0, %v4074_v1, -inf  ;;  %v777_v14 = vsel %vm755_vm0, %v4083_v6, -inf  ;;  %v4098_v24 = vcombine.high %v4094_v21, %v4094_v21  ;;  %v784_v25 = vsel %vm755_vm0, %v4094_v21, -inf  ;;  %s5045_s16 = scalar_lea.vmem [#allocation12], %s2987_s11  ;;  %s5062_s3 = sshll.u32 %s4047_s1, 3 }
  0xc7   : > { %v758_v12 = vmax.f32 %v756_v2, %v757_v5  ;;  %v764_v13 = vrot.slane %v763_v10, 4  ;;  %v772_v15 = vmax.f32 %v770_v7, %v771_v11  ;;  %v778_v16 = vrot.slane %v777_v14, 4  ;;  %s702_s17 = scalar_select %p701_p5, %s3664_s24, 1 }
  0xc8   : > { %v916_v20 = vunpack.c.0.s8 %v915_v9  ;;  %5438 = vst [vmem:[#allocation34_spill] sm:$0xff] %v4098_v24  ;;  %v785_v29 = vrot.slane %v784_v25, 4  ;;  %v791_v32 = vsel %vm755_vm0, %v4098_v24, -inf  ;;  %v4109_v33 = vcombine.high %v4103_v26, %v4103_v26  ;;  %s676_s12 = scalar_lea.vmem [#allocation15], %s5062_s3  ;;  %s5111_s15 = sshll.u32 %s3664_s24, 7 }
  0xc9   : > { %v759_v17 = vrot.slane %v758_v12, 2  ;;  %v765_v18 = vmax.f32 %v763_v10, %v764_v13  ;;  %v773_v22 = vrot.slane %v772_v15, 2  ;;  %v779_v23 = vmax.f32 %v777_v14, %v778_v16  ;;  %s2993_s28 = sshll.u32 %s702_s17, 2  ;;  %s2432_s11 = scalar_lea.sflag [#allocation16], %s4044_s9 }
  0xca   : > { %5439 = vst [vmem:[#allocation35_spill] sm:$0xff] %v4109_v33  ;;  %v786_v36 = vmax.f32 %v784_v25, %v785_v29  ;;  %v792_v37 = vrot.slane %v791_v32, 4  ;;  %v919_v40 = vsub.s32 %v916_v20, %v4091_v19  ;;  %v798_v41 = vsel %vm755_vm0, %v4103_v26, -inf  ;;  %s5068_s23 = scalar_lea.vmem %s5339_s8, %s2993_s28  ;;  %s5073_s19 = scalar_lea.vmem %s5337_s6, %s2993_s28 }
  0xcb   : > { %v760_v27 = vmax.f32 %v758_v12, %v759_v17  ;;  %v766_v28 = vrot.slane %v765_v18, 2  ;;  %v774_v30 = vmax.f32 %v772_v15, %v773_v22  ;;  %v780_v31 = vrot.slane %v779_v23, 2  ;;  %p5522_p12 = scmp.ne.s32.totalorder %s5421_s7, 0  ;;  %s3686_s28 = smov [#allocation15]  }
  0xcc   : > { %v787_v44 = vrot.slane %v786_v36, 2  ;;  %v793_v45 = vmax.f32 %v791_v32, %v792_v37  ;;  %v3682_v48 = vmov 1966171168   ;;  %v805_v53 = vsel %vm755_vm0, %v4109_v33, -inf  ;;  %s3434_s20 = sshll.u32 %s3686_s28, 4  ;;  %s3435_s20 = int_to_ptr.vmem [resolvable:$false] %s3434_s20 }
  0xcd   : > { %v761_v34 = vrot.slane %v760_v27, 1  ;;  %v767_v35 = vmax.f32 %v765_v18, %v766_v28  ;;  %v775_v38 = vrot.slane %v774_v30, 1  ;;  %v781_v39 = vmax.f32 %v779_v23, %v780_v31  ;;  %s3436_s13 = scalar_lea.vmem %s3435_s20, 256 }
  0xce   : > { %v4118_v49 = vunpack.c.l.s4 %v3682_v48  ;;  %v788_v51 = vmax.f32 %v786_v36, %v787_v44  ;;  %v794_v52 = vrot.slane %v793_v45, 2  ;;  %v4127_v55 = vrot.slane %v4091_v19, %v919_v40 }
  0xcf   : > { %v4114_v42 = vmax.f32 %v760_v27, %v761_v34  ;;  %v768_v43 = vrot.slane %v767_v35, 1  ;;  %v4116_v46 = vmax.f32 %v774_v30, %v775_v38  ;;  %v782_v47 = vrot.slane %v781_v39, 1 }
  0xd0   : > { %v799_v56 = vrot.slane %v798_v41, 4  ;;  %v789_v58 = vrot.slane %v788_v51, 1  ;;  %v795_v59 = vmax.f32 %v793_v45, %v794_v52  ;;  %v1556_v61 = vunpack.c.0.s8 %v4118_v49 }
  0xd1   : > { %5440 = vst [vmem:[#allocation36_spill] sm:$0xff] %v4114_v42  ;;  %5441 = vst [vmem:[#allocation37_spill] sm:$0xff] %v4116_v46  ;;  %v4120_v50 = vmax.f32 %v767_v35, %v768_v43  ;;  %v4124_v54 = vmax.f32 %v781_v39, %v782_v47  ;;  %v806_v62 = vrot.slane %v805_v53, 4 }
  0xd2   : > { %v4136_v2 = vmax.f32 %v788_v51, %v789_v58  ;;  %v796_v4 = vrot.slane %v795_v59, 1  ;;  %v4141_v8 = vmax.f32 %v798_v41, %v799_v56  ;;  %v4162_v43 = vsub.s32 %v1556_v61, %v4091_v19 }
  0xd3   : > { %5442 = vst [vmem:[#allocation38_spill] sm:$0xff] %v4120_v50  ;;  %5443 = vst [vmem:[#allocation39_spill] sm:$0xff] %v4124_v54  ;;  %v820_v57 = vcombine.low %v4114_v42, %v4120_v50  ;;  %v821_v60 = vcombine.low %v4116_v46, %v4124_v54  ;;  %v4147_v15 = vmax.f32 %v805_v53, %v806_v62 }
  0xd4   : > { %5444 = vst [vmem:[#allocation40_spill] sm:$0xff] %v4136_v2  ;;  %v4144_v12 = vmax.f32 %v795_v59, %v796_v4  ;;  %5446 = vst [vmem:[#allocation42_spill] sm:$0xff] %v4162_v43  ;;  %v801_v49 = vrot.slane %v4141_v8, 2 }
  0xd5   : > { %v828_v63 = vsub.f32 %v4070_v0, %v820_v57  ;;  %vm910_vm1 = vcmp.ge.f32.partialorder %v4070_v0, %v820_v57  ;;  %v829_v5 = vsub.f32 %v4079_v3, %v821_v60  ;;  %vm911_vm2 = vcmp.ge.f32.partialorder %v4079_v3, %v821_v60 }
  0xd6   : > { %v921_v7 = vsel %vm910_vm1, %v4127_v55, 4  ;;  %5445 = vst [vmem:[#allocation41_spill] sm:$0xff] %v4144_v12  ;;  %v922_v0 = vsel %vm911_vm2, %v4127_v55, 4  ;;  %v822_v3 = vcombine.low %v4136_v2, %v4144_v12  ;;  %v808_v51 = vrot.slane %v4147_v15, 2 }
  0xd7   : > { %v832_v9 = vmul.f32 1.442695, %v828_v63  ;;  %v925_v10 = vcombine.high %v921_v7, %v921_v7  ;;  %v929_v11 = vsel %vm755_vm0, %v921_v7, 2147483647  ;;  %v834_v13 = vmul.f32 1.442695, %v829_v5 }
  0xd8   : > { %v930_v14 = vrot.slane %v929_v11, 4  ;;  %v926_v17 = vcombine.high %v922_v0, %v922_v0  ;;  %v949_v20 = vsel %vm755_vm0, %v922_v0, 2147483647  ;;  %v830_v23 = vsub.f32 %v4094_v21, %v822_v3 }
  0xd9   : > { %3198 = vpow2.f32 %v832_v9  ;;  %v939_v16 = vsel %vm755_vm0, %v925_v10, 2147483647  ;;  %vm912_vm4 = vcmp.ge.f32.partialorder %v4094_v21, %v822_v3  ;;  %v950_v25 = vrot.slane %v949_v20, 4 }
  0xda   : > { %3200 = vpow2.f32 %v834_v13  ;;  %vm931_vm3 = vcmp.lt.s32.totalorder %v929_v11, %v930_v14  ;;  %v940_v18 = vrot.slane %v939_v16, 4  ;;  %v4156_v28 = vsel %vm912_vm4, %v4127_v55, 4 }
  0xdb   : > { %v932_v22 = vsel %vm931_vm3, %v929_v11, %v930_v14  ;;  %v959_v29 = vsel %vm755_vm0, %v926_v17, 2147483647  ;;  %v836_v31 = vmul.f32 1.442695, %v830_v23  ;;  %vm951_vm6 = vcmp.lt.s32.totalorder %v949_v20, %v950_v25 }
  0xdc   : > { %v933_v27 = vrot.slane %v932_v22, 2  ;;  %vm941_vm5 = vcmp.lt.s32.totalorder %v939_v16, %v940_v18  ;;  %v960_v32 = vrot.slane %v959_v29, 4  ;;  %v952_v35 = vsel %vm951_vm6, %v949_v20, %v950_v25 }
  0xdd   : > { %v942_v30 = vsel %vm941_vm5, %v939_v16, %v940_v18  ;;  %v969_v36 = vsel %vm755_vm0, %v4156_v28, 2147483647  ;;  %3202 = vpow2.f32 %v836_v31  ;;  %v953_v21 = vrot.slane %v952_v35, 2 }
  0xde   : > { %vm934_vm7 = vcmp.lt.s32.totalorder %v932_v22, %v933_v27  ;;  %v943_v34 = vrot.slane %v942_v30, 2  ;;  %vm961_vm8 = vcmp.lt.s32.totalorder %v959_v29, %v960_v32  ;;  %v970_v44 = vrot.slane %v969_v36, 4 }
  0xdf   : > { %v935_v37 = vsel %vm934_vm7, %v932_v22, %v933_v27  ;;  %v962_v39 = vsel %vm961_vm8, %v959_v29, %v960_v32  ;;  %vm954_vm10 = vcmp.lt.s32.totalorder %v952_v35, %v953_v21  ;;  %v5369_v0 = vmov 1.0|1.0  }
  0xe0   : > { %v936_v38 = vrot.slane %v935_v37, 1  ;;  %vm944_vm9 = vcmp.lt.s32.totalorder %v942_v30, %v943_v34  ;;  %v963_v48 = vrot.slane %v962_v39, 2  ;;  %v4171_v57 = vsel %vm954_vm10, %v952_v35, %v953_v21 }
  0xe1   : > { %v945_v40 = vsel %vm944_vm9, %v942_v30, %v943_v34  ;;  %vm4179_vm14 = vcmp.lt.s32.totalorder %v969_v36, %v970_v44  ;;  %v956_v16 = vrot.slane %v4171_v57, 1  ;;  %v802_v20 = vmax.f32 %v4141_v8, %v801_v49 }
  0xe2   : > { %v946_v41 = vrot.slane %v945_v40, 1  ;;  %vm4164_vm11 = vcmp.lt.s32.totalorder %v935_v37, %v936_v38  ;;  %v4198_v22 = vmax.f32 %v4147_v15, %v808_v51  ;;  %vm964_vm1 = vcmp.lt.s32.totalorder %v962_v39, %v963_v48 }
  0xe3   : > { %v3199_v45 = vpop.eup %3198  ;;  %v4186_v10 = vsel %vm4164_vm11, %v935_v37, %v936_v38  ;;  %v972_v27 = vsel %vm4179_vm14, %v969_v36, %v970_v44  ;;  %vm4204_vm2 = vcmp.lt.s32.totalorder %v4171_v57, %v956_v16 }
  0xe4   : > { %v3201_v52 = vpop.eup %3200  ;;  %v844_v53 = vcombine.high %v3199_v45, %v3199_v45  ;;  %v852_v56 = vsel %vm755_vm0, %v3199_v45, 0.0  ;;  %vm947_vm12 = vcmp.lt.s32.totalorder %v945_v40, %v946_v41  ;;  %vm1009_vm9 = vcmp.eq.s32.totalorder %v4091_v19, %v4186_v10 }
  0xe5   : > { %v845_v58 = vcombine.high %v3201_v52, %v3201_v52  ;;  %v853_v59 = vrot.slane %v852_v56, 4  ;;  %v866_v60 = vsel %vm755_vm0, %v3201_v52, 0.0  ;;  %v4174_v61 = vsel %vm947_vm12, %v945_v40, %v946_v41 }
  0xe6   : > { %v859_v62 = vsel %vm755_vm0, %v844_v53, 0.0  ;;  %v867_v63 = vrot.slane %v866_v60, 4  ;;  %vm1010_vm13 = vcmp.eq.s32.totalorder %v4091_v19, %v4174_v61  ;;  %v1740_v14 = vcombine.low %v4186_v10, %v4174_v61 }
  0xe7   : > { %v860_v5 = vrot.slane %v859_v62, 4  ;;  %v873_v7 = vsel %vm755_vm0, %v845_v58, 0.0  ;;  %v854_v9 = vadd.f32 %v853_v59, %v852_v56  ;;  %vm3011_vm15 = vmpackc.low %vm1010_vm13, %vm1010_vm13  ;;  %v3203_v3 = vpop.eup %3202  ;;  %v965_v40 = vsel %vm964_vm1, %v962_v39, %v963_v48 }
  0xe8   : > { %v874_v11 = vrot.slane %v873_v7, 4  ;;  %v868_v13 = vadd.f32 %v867_v63, %v866_v60  ;;  %3012 = vmatprep.mubr.msk.bf16.mxu0 %vm3011_vm15, %v5369_v0  ;;  %v846_v31 = vcombine.high %v3203_v3, %v3203_v3  ;;  %v880_v32 = vsel %vm755_vm0, %v3203_v3, 0.0 }
  0xe9   : > { %v861_v17 = vadd.f32 %v860_v5, %v859_v62  ;;  %v855_v18 = vrot.slane %v854_v9, 2  ;;  %v881_v37 = vrot.slane %v880_v32, 4  ;;  %v966_v51 = vrot.slane %v965_v40, 1 }
  0xea   : > { %v875_v23 = vadd.f32 %v874_v11, %v873_v7  ;;  %v869_v25 = vrot.slane %v868_v13, 2  ;;  %v887_v38 = vsel %vm755_vm0, %v846_v31, 0.0  ;;  %v973_v52 = vrot.slane %v972_v27, 2 }
  0xeb   : > { %v862_v29 = vrot.slane %v861_v17, 2  ;;  %v856_v30 = vadd.f32 %v855_v18, %v854_v9  ;;  %v882_v44 = vadd.f32 %v881_v37, %v880_v32  ;;  %v888_v45 = vrot.slane %v887_v38, 4  ;;  %v1857_v32 = vld [vmem:[%s4063_s21 + $0x8] sm:$0xff]  ;;  %v1883_v37 = vld [vmem:[%s4063_s21 + $0xd8] sm:$0xff] }
  0xec   : > { %v876_v34 = vrot.slane %v875_v23, 2  ;;  %v870_v35 = vadd.f32 %v869_v25, %v868_v13  ;;  %vm967_vm3 = vcmp.lt.s32.totalorder %v965_v40, %v966_v51  ;;  %vm974_vm4 = vcmp.lt.s32.totalorder %v972_v27, %v973_v52  ;;  %v4231_v13 = vld [vmem:[%s4058_s5] sm:$0xff] }
  0xed   : > { %v863_v15 = vadd.f32 %v862_v29, %v861_v17  ;;  %v857_v21 = vrot.slane %v856_v30, 1  ;;  %v883_v58 = vrot.slane %v882_v44, 2  ;;  %v889_v59 = vadd.f32 %v888_v45, %v887_v38  ;;  %v1856_v29 = vld [vmem:[%s4063_s21] sm:$0xff]  ;;  %v1882_v45 = vld [vmem:[%s4063_s21 + $0xd0] sm:$0xff] }
  0xee   : > { %v877_v41 = vadd.f32 %v876_v34, %v875_v23  ;;  %v871_v36 = vrot.slane %v870_v35, 1  ;;  %v4223_v63 = vsel %vm4204_vm2, %v4171_v57, %v956_v16  ;;  %v4225_v4 = vsel %vm967_vm3, %v965_v40, %v966_v51  ;;  %v1864_v34 = vld [vmem:[%s4063_s21 + $0x40] sm:$0xff]  ;;  %v1874_v40 = vld [vmem:[%s4063_s21 + $0x90] sm:$0xff] }
  0xef   : > { %v864_v47 = vrot.slane %v863_v15, 1  ;;  %v4209_v49 = vadd.f32 %v857_v21, %v856_v30  ;;  %v884_v48 = vadd.f32 %v883_v58, %v882_v44  ;;  %v890_v62 = vrot.slane %v889_v59, 2  ;;  %v1866_v21 = vld [vmem:[%s4063_s21 + $0x50] sm:$0xff]  ;;  %v1880_v38 = vld [vmem:[%s4063_s21 + $0xc0] sm:$0xff]  ;;  %v1873_v44 = vld [vmem:[%s4063_s21 + $0x88] sm:$0xff] }
  0xf0   : > { %v878_v53 = vrot.slane %v877_v41, 1  ;;  %v4211_v56 = vadd.f32 %v871_v36, %v870_v35  ;;  %v803_v5 = vrot.slane %v802_v20, 1  ;;  %v4228_v11 = vsel %vm974_vm4, %v972_v27, %v973_v52  ;;  %v1858_v35 = vld [vmem:[%s4063_s21 + $0x10] sm:$0xff]  ;;  %v1865_v36 = vld [vmem:[%s4063_s21 + $0x48] sm:$0xff]  ;;  %v1867_v58 = vld [vmem:[%s4063_s21 + $0x58] sm:$0xff] }
  0xf1   : > { %v4213_v60 = vadd.f32 %v864_v47, %v863_v15  ;;  %3204 = vrcp.f32 %v4209_v49  ;;  %v885_v7 = vrot.slane %v884_v48, 1  ;;  %v891_v9 = vadd.f32 %v890_v62, %v889_v59  ;;  %v1881_v62 = vld [vmem:[%s4063_s21 + $0xc8] sm:$0xff]  ;;  %vm4373_vm4 = vmpackc.low %vm1009_vm9, %vm1009_vm9 }
  0xf2   : > { %v4216_v39 = vadd.f32 %v878_v53, %v877_v41  ;;  %3206 = vrcp.f32 %v4211_v56  ;;  %v4234_v3 = vrot.slane %v1740_v14, %v4162_v43  ;;  %vm1012_vm5 = vcmp.eq.s32.totalorder %v4091_v19, %v4225_v4  ;;  %v1859_v53 = vld [vmem:[%s4063_s21 + $0x18] sm:$0xff] }
  0xf3   : > { %3208 = vrcp.f32 %v4213_v60  ;;  %v1741_v57 = vcombine.low %v4223_v63, %v4225_v4  ;;  %v810_v16 = vrot.slane %v4198_v22, 1  ;;  %v4241_v17 = vadd.f32 %v885_v7, %v884_v48  ;;  %vm3015_vm6 = vmpackc.low %vm1012_vm5, %vm1012_vm5  ;;  %v2145_v4 = vld [vmem:[%s4544_s14 + $0x80] sm:$0xff] }
  0xf4   : > { %3210 = vrcp.f32 %v4216_v39  ;;  %5453 = vst [vmem:[#allocation43_spill] sm:$0xff] %v4234_v3  ;;  %v892_v18 = vrot.slane %v891_v9, 1  ;;  %v976_v14 = vrot.slane %v4228_v11, 1  ;;  %3016 = vmatprep.mubr.msk.bf16.mxu1 %vm3015_vm6, %v5369_v0  ;;  %v4252_v25 = vmax.f32 %v802_v20, %v803_v5  ;;  %v1872_v20 = vld [vmem:[%s4063_s21 + $0x80] sm:$0xff] }
  0xf5   : > { %v4249_v23 = vrot.slane %v1741_v57, %v4162_v43  ;;  %v4256_v27 = vcombine.high %v4231_v13, %v4231_v13  ;;  %3212 = vrcp.f32 %v4241_v17  ;;  %v1045_v31 = vsel %vm755_vm0, %v4231_v13, -inf }
  0xf6   : > { %5455 = vst [vmem:[#allocation45_spill] sm:$0xff] %v4252_v25  ;;  %v4259_v30 = vadd.f32 %v892_v18, %v891_v9  ;;  %v4271_v8 = vmax.f32 %v4198_v22, %v810_v16  ;;  %v927_v15 = vcombine.high %v4156_v28, %v4156_v28  ;;  %vm4283_vm7 = vcmp.lt.s32.totalorder %v4228_v11, %v976_v14  ;;  %v1875_v18 = vld [vmem:[%s4063_s21 + $0x98] sm:$0xff] }
  0xf7   : > { %5454 = vst [vmem:[#allocation44_spill] sm:$0xff] %v4249_v23  ;;  %v1046_v22 = vrot.slane %v1045_v31, 4  ;;  %v4291_v51 = vsel %vm755_vm0, %v4256_v27, -inf  ;;  %vm1011_vm11 = vcmp.eq.s32.totalorder %v4091_v19, %v4223_v63 }
  0xf8   : > { %5456 = vst [vmem:[#allocation46_spill] sm:$0xff] %v4271_v8  ;;  %3214 = vrcp.f32 %v4259_v30  ;;  %v823_v28 = vcombine.low %v4252_v25, %v4271_v8  ;;  %v4299_v7 = vsel %vm755_vm0, %v927_v15, 2147483647 }
  0xfa   : > { %vm913_vm8 = vcmp.ge.f32.partialorder %v4103_v26, %v823_v28 }
  0xfb   : > { %v3205_v41 = vpop.eup %3204  ;;  %v924_v47 = vsel %vm913_vm8, %v4127_v55, 4 }
  0xfc   : > { %v3207_v52 = vpop.eup %3206  ;;  %v1888_v59 = vmul.f32 %v3205_v41, %v1856_v29  ;;  %v1896_v48 = vmul.f32 %v3205_v41, %v1864_v34  ;;  %v4296_v5 = vmul.f32 %v3205_v41, %v1872_v20  ;;  %v4303_v0 = vmul.f32 %v3205_v41, %v1880_v38 }
  0xfd   : > { %v3209_v9 = vpop.eup %3208  ;;  %v1890_v57 = vmul.f32 %v3207_v52, %v1858_v35  ;;  %v1898_v16 = vmul.f32 %v3207_v52, %v1866_v21  ;;  %v4305_v23 = vmul.f32 %v3207_v52, %v1874_v40  ;;  %v4307_v20 = vmul.f32 %v3207_v52, %v1882_v45 }
  0xfe   : > { %v3211_v3 = vpop.eup %3210  ;;  %v1889_v8 = vmul.f32 %v3209_v9, %v1857_v32  ;;  %v1897_v29 = vmul.f32 %v3209_v9, %v1865_v36  ;;  %v1905_v34 = vmul.f32 %v3209_v9, %v1873_v44  ;;  %v1920_v2 = vpack.c.bf16 %v1896_v48, %v1888_v59  ;;  %v1861_v36 = vld [vmem:[%s4063_s21 + $0x28] sm:$0xff]  ;;  %v1860_v44 = vld [vmem:[%s4063_s21 + $0x20] sm:$0xff] }
  0xff   : > { %v1891_v25 = vmul.f32 %v3211_v3, %v1859_v53  ;;  %v1899_v15 = vmul.f32 %v3211_v3, %v1867_v58  ;;  %v1913_v35 = vmul.f32 %v3209_v9, %v1881_v62  ;;  %v1922_v38 = vpack.c.bf16 %v1898_v16, %v1890_v57  ;;  %v3213_v52 = vpop.eup %3212  ;;  %v1868_v59 = vld [vmem:[%s4063_s21 + $0x60] sm:$0xff]  ;;  %v4348_v16 = vld [vmem:[%s4058_s5 + $0x8] sm:$0xff] }
 0x100   : > { %v1921_v21 = vpack.c.bf16 %v1897_v29, %v1889_v8  ;;  %v1907_v41 = vmul.f32 %v3211_v3, %v1875_v18  ;;  %v1915_v40 = vmul.f32 %v3211_v3, %v1883_v37  ;;  %v4312_v32 = vsel %vm4283_vm7, %v4228_v11, %v976_v14  ;;  %v1869_v8 = vld [vmem:[%s4063_s21 + $0x68] sm:$0xff]  ;;  %v1876_v3 = vld [vmem:[%s4063_s21 + $0xa0] sm:$0xff]  ;;  %vm3017_vm7 = vmpackc.low %vm1011_vm11, %vm1011_vm11 }
 0x101   : > { %v1923_v12 = vpack.c.bf16 %v1899_v15, %v1891_v25  ;;  %v1929_v46 = vpack.c.bf16 %v1913_v35, %v1905_v34  ;;  %v1047_v45 = vmax.f32 %v1045_v31, %v1046_v22  ;;  %v831_v58 = vsub.f32 %v4103_v26, %v823_v28  ;;  %v1877_v31 = vld [vmem:[%s4063_s21 + $0xa8] sm:$0xff]  ;;  %v1884_v37 = vld [vmem:[%s4063_s21 + $0xe0] sm:$0xff] }
 0x102   : > { %1944 = vmatprep.subr.bf16.mxu0 %v1921_v21  ;;  %v1931_v53 = vpack.c.bf16 %v1915_v40, %v1907_v41  ;;  %v980_v25 = vrot.slane %v4299_v7, 4  ;;  %v1928_v11 = vpack.c.bf16 %v4303_v0, %v4296_v5  ;;  %v1930_v14 = vpack.c.bf16 %v4307_v20, %v4305_v23  ;;  %v3215_v48 = vpop.eup %3214 }
 0x103   : > { %1984 = vmatprep.subr.bf16.mxu1 %v1923_v12  ;;  %1945 = vmatpush1.bf16.xpose.msra.mxu0 %v1920_v2  ;;  %v1053_v22 = vrot.slane %v4291_v51, 4  ;;  %v838_v26 = vmul.f32 1.442695, %v831_v58  ;;  %v4332_v2 = vmul.f32 %v3213_v52, %v1860_v44  ;;  %v1885_v12 = vld [vmem:[%s4063_s21 + $0xe8] sm:$0xff]  ;;  %v928_v0 = vcombine.high %v924_v47, %v924_v47 }
 0x104   : > { %1985 = vmatpush1.bf16.xpose.msra.mxu1 %v1922_v38  ;;  %1946 = vmatprep.subr.bf16.mxu0 %v1929_v46  ;;  %vm981_vm10 = vcmp.lt.s32.totalorder %v4299_v7, %v980_v25  ;;  %v1893_v23 = vmul.f32 %v3215_v48, %v1861_v36  ;;  %v1901_v28 = vmul.f32 %v3215_v48, %v1869_v8  ;;  %v989_v34 = vsel %vm755_vm0, %v924_v47, 2147483647 }
 0x105   : > { %1986 = vmatprep.subr.bf16.mxu1 %v1931_v53  ;;  %v4338_v62 = vmul.f32 %v3213_v52, %v1868_v59  ;;  %v4340_v46 = vmul.f32 %v3213_v52, %v1876_v3  ;;  %3216 = vpow2.f32 %v838_v26  ;;  %v4342_v5 = vmul.f32 %v3215_v48, %v1877_v31 }
 0x106   : > { %v4344_v9 = vmul.f32 %v3213_v52, %v1884_v37  ;;  %v982_v57 = vsel %vm981_vm10, %v4299_v7, %v980_v25  ;;  %v4350_v18 = vmul.f32 %v3215_v48, %v1885_v12  ;;  %v999_v20 = vsel %vm755_vm0, %v928_v0, 2147483647 }
 0x107   : > { %v983_v29 = vrot.slane %v982_v57, 2  ;;  %v1925_v15 = vpack.c.bf16 %v1901_v28, %v1893_v23  ;;  %v990_v35 = vrot.slane %v989_v34, 4  ;;  %v1000_v21 = vrot.slane %v999_v20, 4 }
 0x108   : > { %v1048_v38 = vrot.slane %v1047_v45, 2  ;;  %v1054_v41 = vmax.f32 %v4291_v51, %v1053_v22  ;;  %v4357_v40 = vcombine.high %v4348_v16, %v4348_v16  ;;  %v1059_v7 = vsel %vm755_vm0, %v4348_v16, -inf }
 0x109   : > { %vm984_vm12 = vcmp.lt.s32.totalorder %v982_v57, %v983_v29  ;;  %vm991_vm14 = vcmp.lt.s32.totalorder %v989_v34, %v990_v35  ;;  %vm1001_vm15 = vcmp.lt.s32.totalorder %v999_v20, %v1000_v21  ;;  %v1924_v51 = vpack.c.bf16 %v4338_v62, %v4332_v2 }
 0x10a   : > { %v985_v36 = vsel %vm984_vm12, %v982_v57, %v983_v29  ;;  %v1049_v44 = vmax.f32 %v1047_v45, %v1048_v38  ;;  %v992_v53 = vsel %vm991_vm14, %v989_v34, %v990_v35  ;;  %v1002_v8 = vsel %vm1001_vm15, %v999_v20, %v1000_v21 }
 0x10b   : > { %1947 = vmatpush1.bf16.xpose.msra.mxu0 %v1928_v11  ;;  %v986_v52 = vrot.slane %v985_v36, 1  ;;  %v1055_v58 = vrot.slane %v1054_v41, 2  ;;  %v993_v59 = vrot.slane %v992_v53, 2  ;;  %v1003_v3 = vrot.slane %v1002_v8, 2 }
 0x10c   : > { %1987 = vmatpush1.bf16.xpose.msra.mxu1 %v1930_v14  ;;  %2024 = vmatprep.subr.bf16.mxu0 %v1925_v15  ;;  %v1050_v25 = vrot.slane %v1049_v44, 1  ;;  %v1933_v31 = vpack.c.bf16 %v4350_v18, %v4342_v5  ;;  %v1060_v47 = vrot.slane %v1059_v7, 4  ;;  %v1066_v11 = vsel %vm755_vm0, %v4357_v40, -inf }
 0x10d   : > { %vm987_vm1 = vcmp.lt.s32.totalorder %v985_v36, %v986_v52  ;;  %v1056_v37 = vmax.f32 %v1054_v41, %v1055_v58  ;;  %vm994_vm2 = vcmp.lt.s32.totalorder %v992_v53, %v993_v59  ;;  %vm1004_vm3 = vcmp.lt.s32.totalorder %v1002_v8, %v1003_v3 }
 0x10e   : > { %v4365_v45 = vsel %vm987_vm1, %v985_v36, %v986_v52  ;;  %v995_v48 = vsel %vm994_vm2, %v992_v53, %v993_v59  ;;  %v1005_v26 = vsel %vm1004_vm3, %v1002_v8, %v1003_v3  ;;  %v4385_v23 = vmax.f32 %v1049_v44, %v1050_v25 }
 0x10f   : > { %vm1014_vm6 = vcmp.eq.s32.totalorder %v4091_v19, %v4365_v45  ;;  %v1742_v22 = vcombine.low %v4312_v32, %v4365_v45  ;;  %v3217_v2 = vpop.eup %3216  ;;  %v996_v12 = vrot.slane %v995_v48, 1  ;;  %v1006_v0 = vrot.slane %v1005_v26, 1 }
 0x110   : > { %v1057_v28 = vrot.slane %v1056_v37, 1  ;;  %v847_v62 = vcombine.high %v3217_v2, %v3217_v2  ;;  %v894_v5 = vsel %vm755_vm0, %v3217_v2, 0.0  ;;  %vm4395_vm8 = vmpackc.low %vm1014_vm6, %vm1014_vm6  ;;  %v1061_v29 = vmax.f32 %v1059_v7, %v1060_v47 }
 0x111   : > { %v4389_v57 = vrot.slane %v1742_v22, %v4162_v43  ;;  %v5464_v34 = vmov 1.0|1.0   ;;  %v895_v20 = vrot.slane %v894_v5, 4  ;;  %vm997_vm10 = vcmp.lt.s32.totalorder %v995_v48, %v996_v12 }
 0x112   : > { %3014 = vmatmul.mubr.msk.bf16.vlgmr.msra.gmra.mrb[0].mxu0 %vm4373_vm4, %v5464_v34  ;;  %vm1007_vm12 = vcmp.lt.s32.totalorder %v1005_v26, %v1006_v0  ;;  %v4402_v15 = vmax.f32 %v1056_v37, %v1057_v28  ;;  %v901_v35 = vsel %vm755_vm0, %v847_v62, 0.0  ;;  %v4406_v21 = vsel %vm997_vm10, %v995_v48, %v996_v12 }
 0x113   : > { %5461 = vst [vmem:[#allocation47_spill] sm:$0xff] %v4389_v57  ;;  %3018 = vmatmul.mubr.msk.bf16.vlgmr.msra.gmra.mrb[0].mxu1 %vm3017_vm7, %v5464_v34  ;;  %2025 = vmatpush1.bf16.xpose.msra.mxu0 %v1924_v51  ;;  %v4408_v38 = vsel %vm1007_vm12, %v1005_v26, %v1006_v0  ;;  %v1062_v41 = vrot.slane %v1061_v29, 2  ;;  %v902_v7 = vrot.slane %v901_v35, 4  ;;  %v896_v36 = vadd.f32 %v895_v20, %v894_v5 }
 0x114   : > { %2026 = vmatprep.subr.bf16.mxu0 %v1933_v31  ;;  %3020 = vmatprep.mubr.msk.bf16.mxu0 %vm4395_vm8, %v5464_v34  ;;  %vm1016_vm14 = vcmp.eq.s32.totalorder %v4091_v19, %v4408_v38  ;;  %v1743_v44 = vcombine.low %v4406_v21, %v4408_v38  ;;  %v1109_v52 = vcombine.low %v4385_v23, %v4402_v15  ;;  %v1067_v8 = vrot.slane %v1066_v11, 4 }
 0x115   : > { %vm3023_vm15 = vmpackc.low %vm1016_vm14, %vm1016_vm14  ;;  %v1063_v53 = vmax.f32 %v1061_v29, %v1062_v41  ;;  %v903_v58 = vadd.f32 %v902_v7, %v901_v35  ;;  %v897_v51 = vrot.slane %v896_v36, 2  ;;  %v1932_v3 = vpack.c.bf16 %v4344_v9, %v4340_v46 }
 0x116   : > { %v4424_v59 = vrot.slane %v1743_v44, %v4162_v43  ;;  %3024 = vmatprep.mubr.msk.bf16.mxu1 %vm3023_vm15, %v5464_v34  ;;  %v1117_v25 = vsub.f32 %v4231_v13, %v1109_v52  ;;  %v1068_v31 = vmax.f32 %v1066_v11, %v1067_v8  ;;  %vm1197_vm1 = vcmp.ge.f32.partialorder %v4231_v13, %v1109_v52 }
 0x117   : > { %v904_v37 = vrot.slane %v903_v58, 2  ;;  %v898_v47 = vadd.f32 %v897_v51, %v896_v36  ;;  %v1201_v22 = vsel %vm1197_vm1, %v4127_v55, 4  ;;  %v1064_v26 = vrot.slane %v1063_v53, 1 }
 0x118   : > { %5465 = vst [vmem:[#allocation48_spill] sm:$0xff] %v4424_v59  ;;  %v1121_v48 = vmul.f32 1.442695, %v1117_v25  ;;  %v1069_v2 = vrot.slane %v1068_v31, 2  ;;  %v1205_v12 = vcombine.high %v1201_v22, %v1201_v22  ;;  %v1209_v46 = vsel %vm755_vm0, %v1201_v22, 2147483647 }
 0x119   : > { %v905_v0 = vadd.f32 %v904_v37, %v903_v58  ;;  %v899_v28 = vrot.slane %v898_v47, 1  ;;  %v1210_v11 = vrot.slane %v1209_v46, 4  ;;  %vm1013_vm2 = vcmp.eq.s32.totalorder %v4091_v19, %v4312_v32 }
 0x11a   : > { %3218 = vpow2.f32 %v1121_v48  ;;  %v1070_v9 = vmax.f32 %v1068_v31, %v1069_v2  ;;  %v1219_v62 = vsel %vm755_vm0, %v1205_v12, 2147483647  ;;  %v4440_v20 = vmax.f32 %v1063_v53, %v1064_v26  ;;  %vm3021_vm7 = vmpackc.low %vm1013_vm2, %vm1013_vm2  ;;  %v1862_v26 = vld [vmem:[%s4063_s21 + $0x30] sm:$0xff] }
 0x11b   : > { %2027 = vmatpush1.bf16.xpose.msra.mxu0 %v1932_v3  ;;  %v906_v5 = vrot.slane %v905_v0, 1  ;;  %v4438_v18 = vadd.f32 %v899_v28, %v898_v47  ;;  %v1220_v29 = vrot.slane %v1219_v62, 4  ;;  %vm1211_vm3 = vcmp.lt.s32.totalorder %v1209_v46, %v1210_v11  ;;  %v1870_v2 = vld [vmem:[%s4063_s21 + $0x70] sm:$0xff] }
 0x11c   : > { %v1071_v35 = vrot.slane %v1070_v9, 1  ;;  %v1212_v7 = vsel %vm1211_vm3, %v1209_v46, %v1210_v11  ;;  %v1863_v46 = vld [vmem:[%s4063_s21 + $0x38] sm:$0xff] }
 0x11d   : > { %v4442_v41 = vadd.f32 %v906_v5, %v905_v0  ;;  %3220 = vrcp.f32 %v4438_v18  ;;  %vm1221_vm4 = vcmp.lt.s32.totalorder %v1219_v62, %v1220_v29  ;;  %v1213_v44 = vrot.slane %v1212_v7, 2 }
 0x11e   : > { %v4449_v36 = vmax.f32 %v1070_v9, %v1071_v35  ;;  %v1222_v52 = vsel %vm1221_vm4, %v1219_v62, %v1220_v29  ;;  %v1871_v29 = vld [vmem:[%s4063_s21 + $0x78] sm:$0xff] }
 0x11f   : > { %3222 = vrcp.f32 %v4442_v41  ;;  %v1223_v53 = vrot.slane %v1222_v52, 2  ;;  %vm1214_vm8 = vcmp.lt.s32.totalorder %v1212_v7, %v1213_v44  ;;  %v1879_v35 = vld [vmem:[%s4063_s21 + $0xb8] sm:$0xff] }
 0x120   : > { %v1110_v8 = vcombine.low %v4440_v20, %v4449_v36  ;;  %v1215_v58 = vsel %vm1214_vm8, %v1212_v7, %v1213_v44  ;;  %v1878_v7 = vld [vmem:[%s4063_s21 + $0xb0] sm:$0xff] }
 0x121   : > { %vm1224_vm10 = vcmp.lt.s32.totalorder %v1222_v52, %v1223_v53  ;;  %v1216_v3 = vrot.slane %v1215_v58, 1 }
 0x122   : > { %3022 = vmatmul.mubr.msk.bf16.vlgmr.msra.gmra.mrb[4].mxu0 %vm3021_vm7, %v5464_v34  ;;  %v1118_v51 = vsub.f32 %v4348_v16, %v1110_v8  ;;  %v1225_v25 = vsel %vm1224_vm10, %v1222_v52, %v1223_v53  ;;  %vm1198_vm12 = vcmp.ge.f32.partialorder %v4348_v16, %v1110_v8 }
 0x123   : > { %v1226_v31 = vrot.slane %v1225_v25, 1  ;;  %v1202_v37 = vsel %vm1198_vm12, %v4127_v55, 4  ;;  %vm1217_vm15 = vcmp.lt.s32.totalorder %v1215_v58, %v1216_v3 }
 0x124   : > { %v3219_v47 = vpop.eup %3218  ;;  %v1123_v22 = vmul.f32 1.442695, %v1118_v51  ;;  %v1206_v48 = vcombine.high %v1202_v37, %v1202_v37  ;;  %v1229_v28 = vsel %vm755_vm0, %v1202_v37, 2147483647  ;;  %v4463_v11 = vsel %vm1217_vm15, %v1215_v58, %v1216_v3  ;;  %v1887_v51 = vld [vmem:[%s4063_s21 + $0xf8] sm:$0xff] }
 0x125   : > { %v1133_v12 = vcombine.high %v3219_v47, %v3219_v47  ;;  %v1141_v0 = vsel %vm755_vm0, %v3219_v47, 0.0  ;;  %vm1227_vm1 = vcmp.lt.s32.totalorder %v1225_v25, %v1226_v31  ;;  %v1230_v58 = vrot.slane %v1229_v28, 4 }
 0x126   : > { %3224 = vpow2.f32 %v1123_v22  ;;  %v1142_v9 = vrot.slane %v1141_v0, 4  ;;  %v4465_v62 = vsel %vm1227_vm1, %v1225_v25, %v1226_v31  ;;  %v1886_v25 = vld [vmem:[%s4063_s21 + $0xf0] sm:$0xff]  ;;  %v1239_v47 = vsel %vm755_vm0, %v1206_v48, 2147483647 }
 0x127   : > { %v3221_v5 = vpop.eup %3220  ;;  %v1148_v44 = vsel %vm755_vm0, %v1133_v12, 0.0  ;;  %vm1290_vm3 = vcmp.eq.s32.totalorder %v4091_v19, %v4465_v62  ;;  %vm1231_vm7 = vcmp.lt.s32.totalorder %v1229_v28, %v1230_v58  ;;  %v1240_v50 = vrot.slane %v1239_v47, 4 }
 0x128   : > { %v1894_v53 = vmul.f32 %v3221_v5, %v1862_v26  ;;  %v1902_v8 = vmul.f32 %v3221_v5, %v1870_v2  ;;  %vm3027_vm4 = vmpackc.low %vm1290_vm3, %vm1290_vm3  ;;  %v1149_v31 = vrot.slane %v1148_v44, 4  ;;  %v1143_v37 = vadd.f32 %v1142_v9, %v1141_v0 }
 0x129   : > { %v3223_v3 = vpop.eup %3222  ;;  %3028 = vmatprep.mubr.msk.bf16.mxu0 %vm3027_vm4, %v5464_v34  ;;  %v1910_v26 = vmul.f32 %v3221_v5, %v1878_v7  ;;  %v1918_v54 = vmul.f32 %v3221_v5, %v1886_v25  ;;  %v1232_v0 = vsel %vm1231_vm7, %v1229_v28, %v1230_v58  ;;  %v5388_v9 = vmov 0.0  }
 0x12a   : > { %v1895_v22 = vmul.f32 %v3223_v3, %v1863_v46  ;;  %v1903_v12 = vmul.f32 %v3223_v3, %v1871_v29  ;;  %v1911_v14 = vmul.f32 %v3223_v3, %v1879_v35  ;;  %v1926_v2 = vpack.c.bf16 %v1902_v8, %v1894_v53 }
 0x12b   : > { %v1919_v52 = vmul.f32 %v3223_v3, %v1887_v51  ;;  %v1150_v59 = vadd.f32 %v1149_v31, %v1148_v44  ;;  %v1144_v57 = vrot.slane %v1143_v37, 2  ;;  %v4487_v48 = vsel %vm1009_vm9, 1.0, %v5388_v9 }
 0x12c   : > { %v1927_v42 = vpack.c.bf16 %v1903_v12, %v1895_v22  ;;  %v1233_v46 = vrot.slane %v1232_v0, 2  ;;  %vm1241_vm8 = vcmp.lt.s32.totalorder %v1239_v47, %v1240_v50  ;;  %v4493_v5 = vsel %vm1010_vm13, 1.0, %v5388_v9 }
 0x12d   : > { %v1935_v33 = vpack.c.bf16 %v1919_v52, %v1911_v14  ;;  %v1151_v24 = vrot.slane %v1150_v59, 2  ;;  %v1145_v6 = vadd.f32 %v1144_v57, %v1143_v37  ;;  %v1242_v28 = vsel %vm1241_vm8, %v1239_v47, %v1240_v50 }
 0x12e   : > { %2064 = vmatprep.subr.bf16.mxu1 %v1927_v42  ;;  %v1934_v35 = vpack.c.bf16 %v1918_v54, %v1910_v26  ;;  %vm1015_vm9 = vcmp.eq.s32.totalorder %v4091_v19, %v4406_v21  ;;  %v4501_v42 = vsel %vm1290_vm3, 1.0, %v5388_v9  ;;  %vm1234_vm10 = vcmp.lt.s32.totalorder %v1232_v0, %v1233_v46 }
 0x12f   : > { %2065 = vmatpush1.bf16.xpose.msra.mxu1 %v1926_v2  ;;  %v1152_v14 = vadd.f32 %v1151_v24, %v1150_v59  ;;  %v1146_v57 = vrot.slane %v1145_v6, 1  ;;  %v1243_v61 = vrot.slane %v1242_v28, 2  ;;  %v1235_v59 = vsel %vm1234_vm10, %v1232_v0, %v1233_v46  ;;  %vm3025_vm8 = vmpackc.low %vm1015_vm9, %vm1015_vm9 }
 0x130   : > { %v3225_v29 = vpop.eup %3224  ;;  %2066 = vmatprep.subr.bf16.mxu1 %v1935_v33  ;;  %vm1289_vm12 = vcmp.eq.s32.totalorder %v4091_v19, %v4463_v11  ;;  %v1236_v52 = vrot.slane %v1235_v59, 1  ;;  %v5466_v0 = vcombine.low %v4463_v11, %v4465_v62  ;;  %v2129_v62 = vld [vmem:[%s4544_s14] sm:$0xff] }
 0x131   : > { %v1153_v10 = vrot.slane %v1152_v14, 1  ;;  %v1134_v7 = vcombine.high %v3225_v29, %v3225_v29  ;;  %v1147_v44 = vadd.f32 %v1146_v57, %v1145_v6  ;;  %v1155_v24 = vsel %vm755_vm0, %v3225_v29, 0.0 }
 0x132   : > { %v1156_v50 = vrot.slane %v1155_v24, 4  ;;  %vm1244_vm13 = vcmp.lt.s32.totalorder %v1242_v28, %v1243_v61  ;;  %vm1237_vm3 = vcmp.lt.s32.totalorder %v1235_v59, %v1236_v52  ;;  %v4521_v47 = vsel %vm1289_vm12, 1.0, %v5388_v9 }
 0x133   : > { %v1154_v33 = vadd.f32 %v1153_v10, %v1152_v14  ;;  %v1162_v54 = vsel %vm755_vm0, %v1134_v7, 0.0  ;;  %3226 = vrcp.f32 %v1147_v44  ;;  %v1245_v51 = vsel %vm1244_vm13, %v1242_v28, %v1243_v61 }
 0x134   : > { %v1163_v53 = vrot.slane %v1162_v54, 4  ;;  %v1157_v8 = vadd.f32 %v1156_v50, %v1155_v24  ;;  %vm1313_vm15 = vcmp.le.f32.partialorder %v4209_v49, %v1147_v44  ;;  %v1246_v6 = vrot.slane %v1245_v51, 1 }
 0x135   : > { %3228 = vrcp.f32 %v1154_v33  ;;  %vm1314_vm1 = vcmp.le.f32.partialorder %v4213_v60, %v1154_v33  ;;  %v4515_v37 = vsel %vm1237_vm3, %v1235_v59, %v1236_v52  ;;  %v4527_v2 = vsel %vm1313_vm15, %v4487_v48, %v4521_v47  ;;  %v2130_v59 = vld [vmem:[%s4544_s14 + $0x8] sm:$0xff]  ;;  %vm3029_vm15 = vmpackc.low %vm1289_vm12, %vm1289_vm12 }
 0x136   : > { %v1164_v58 = vadd.f32 %v1163_v53, %v1162_v54  ;;  %v1158_v3 = vrot.slane %v1157_v8, 2  ;;  %v4511_v25 = vsel %vm1314_vm1, %v4493_v5, %v4501_v42  ;;  %3230 = vlog2.f32 %v1154_v33  ;;  %v2138_v33 = vld [vmem:[%s4544_s14 + $0x48] sm:$0xff] }
 0x137   : > { %2067 = vmatpush1.bf16.xpose.msra.mxu1 %v1934_v35  ;;  %v1602_v31 = vmul.f32 %v4511_v25, %v4256_v27  ;;  %vm1247_vm4 = vcmp.lt.s32.totalorder %v1245_v51, %v1246_v6  ;;  %v4534_v46 = vrot.slane %v5466_v0, %v4162_v43  ;;  %v2137_v35 = vld [vmem:[%s4544_s14 + $0x40] sm:$0xff]  ;;  %3232 = vlog2.f32 %v1147_v44  ;;  %v2146_v44 = vld [vmem:[%s4544_s14 + $0x88] sm:$0xff] }
 0x138   : > { %v1165_v22 = vrot.slane %v1164_v58, 2  ;;  %v1159_v12 = vadd.f32 %v1158_v3, %v1157_v8  ;;  %v1248_v26 = vsel %vm1247_vm4, %v1245_v51, %v1246_v6  ;;  %v2154_v51 = vld [vmem:[%s4544_s14 + $0xc8] sm:$0xff]  ;;  %vm1291_vm13 = vcmp.eq.s32.totalorder %v4091_v19, %v4515_v37 }
 0x139   : > { %v1616_v27 = vsel %vm755_vm0, %v1602_v31, 0.0  ;;  %5467 = vst [vmem:[#allocation49_spill] sm:$0xff] %v4534_v46  ;;  %vm1292_vm7 = vcmp.eq.s32.totalorder %v4091_v19, %v1248_v26  ;;  %v1791_v14 = vcombine.low %v4515_v37, %v1248_v26 }
 0x13a   : > { %v1166_v57 = vadd.f32 %v1165_v22, %v1164_v58  ;;  %v1160_v28 = vrot.slane %v1159_v12, 1  ;;  %v1617_v29 = vrot.slane %v1616_v27, 4  ;;  %vm3031_vm10 = vmpackc.low %vm1292_vm7, %vm1292_vm7  ;;  %v4568_v58 = vsel %vm1012_vm5, 1.0, %v5388_v9 }
 0x13b   : > { %v4549_v61 = vrot.slane %v1791_v14, %v4162_v43 }
 0x13c   : > { %v1167_v10 = vrot.slane %v1166_v57, 1  ;;  %v4551_v7 = vadd.f32 %v1160_v28, %v1159_v12  ;;  %v1618_v24 = vadd.f32 %v1617_v29, %v1616_v27  ;;  %v4574_v27 = vsel %vm1292_vm7, 1.0, %v5388_v9 }
 0x13d   : > { %5468 = vst [vmem:[#allocation50_spill] sm:$0xff] %v4549_v61  ;;  %v3227_v50 = vpop.eup %3226  ;;  %v2155_v61 = vld [vmem:[%s4544_s14 + $0xd0] sm:$0xff] }
 0x13e   : > { %3026 = vmatmul.mubr.msk.bf16.vlgmr.msra.gmra.mrb[4].mxu1 %vm3025_vm8, %v5464_v34  ;;  %v1168_v52 = vadd.f32 %v1167_v10, %v1166_v57  ;;  %v2161_v53 = vmul.f32 %v3227_v50, %v2129_v62  ;;  %v2169_v8 = vmul.f32 %v3227_v50, %v2137_v35  ;;  %3234 = vrcp.f32 %v4551_v7  ;;  %v2153_v62 = vld [vmem:[%s4544_s14 + $0xc0] sm:$0xff] }
 0x13f   : > { %v3229_v6 = vpop.eup %3228  ;;  %v1619_v3 = vrot.slane %v1618_v24, 2  ;;  %3032 = vmatprep.mubr.msk.bf16.mxu1 %vm3031_vm10, %v5464_v34  ;;  %v1601_v10 = vmul.f32 %v4527_v2, %v4231_v13  ;;  %v2177_v13 = vmul.f32 %v3227_v50, %v2145_v4 }
 0x140   : > { %v3231_v31 = vpop.eup %3230  ;;  %v2162_v22 = vmul.f32 %v3229_v6, %v2130_v59  ;;  %v2170_v12 = vmul.f32 %v3229_v6, %v2138_v33  ;;  %3236 = vrcp.f32 %v1168_v52  ;;  %v2193_v0 = vpack.c.bf16 %v2169_v8, %v2161_v53 }
 0x141   : > { %v2178_v14 = vmul.f32 %v3229_v6, %v2146_v44  ;;  %v2186_v57 = vmul.f32 %v3229_v6, %v2154_v51  ;;  %v1441_v28 = vmul.f32 0.6931472, %v3231_v31  ;;  %v1620_v35 = vadd.f32 %v1619_v3, %v1618_v24  ;;  %v3233_v8 = vpop.eup %3232  ;;  %v4591_v51 = vld [vmem:[%s4058_s5 + $0x10] sm:$0xff] }
 0x142   : > { %v2194_v29 = vpack.c.bf16 %v2170_v12, %v2162_v22  ;;  %vm1316_vm5 = vcmp.le.f32.partialorder %v4216_v39, %v1168_v52  ;;  %3238 = vlog2.f32 %v1168_v52  ;;  %v2185_v44 = vmul.f32 %v3227_v50, %v2153_v62  ;;  %v2139_v6 = vld [vmem:[%s4544_s14 + $0x50] sm:$0xff] }
 0x143   : > { %v2202_v59 = vpack.c.bf16 %v2186_v57, %v2178_v14  ;;  %v4582_v26 = vadd.f32 %v1441_v28, %v4402_v15  ;;  %v4586_v33 = vsel %vm1316_vm5, %v4568_v58, %v4574_v27  ;;  %v1621_v53 = vrot.slane %v1620_v35, 1  ;;  %v2131_v15 = vld [vmem:[%s4544_s14 + $0x10] sm:$0xff]  ;;  %v2140_v14 = vld [vmem:[%s4544_s14 + $0x58] sm:$0xff] }
 0x144   : > { %2217 = vmatprep.subr.bf16.mxu0 %v2194_v29  ;;  %v1604_v24 = vmul.f32 %v4586_v33, %v4357_v40  ;;  %v1609_v31 = vsel %vm755_vm0, %v1601_v10, 0.0  ;;  %v1439_v22 = vmul.f32 0.6931472, %v3233_v8  ;;  %v2997_v50 = vsel %vm1011_vm11, 1.0, %v5388_v9  ;;  %v2148_v57 = vld [vmem:[%s4544_s14 + $0x98] sm:$0xff] }
 0x145   : > { %2218 = vmatpush1.bf16.xpose.msra.mxu0 %v2193_v0  ;;  %v4595_v3 = vadd.f32 %v1621_v53, %v1620_v35  ;;  %v2132_v0 = vld [vmem:[%s4544_s14 + $0x18] sm:$0xff]  ;;  %v4610_v29 = vcombine.high %v4591_v51, %v4591_v51  ;;  %v2201_v10 = vpack.c.bf16 %v2185_v44, %v2177_v13  ;;  %vm1315_vm11 = vcmp.le.f32.partialorder %v4211_v56, %v4551_v7 }
 0x146   : > { %2219 = vmatprep.subr.bf16.mxu0 %v2202_v59  ;;  %v1630_v52 = vsel %vm755_vm0, %v1604_v24, 0.0  ;;  %v2156_v35 = vld [vmem:[%s4544_s14 + $0xd8] sm:$0xff]  ;;  %v1610_v59 = vrot.slane %v1609_v31, 4  ;;  %v4614_v63 = vadd.f32 %v1439_v22, %v4385_v23  ;;  %v1073_v8 = vsel %vm755_vm0, %v4591_v51, -inf  ;;  %v2147_v22 = vld [vmem:[%s4544_s14 + $0x90] sm:$0xff] }
 0x147   : > { %5469 = vst [vmem:[#allocation51_spill] sm:$0xff] %v4595_v3  ;;  %v1631_v40 = vrot.slane %v1630_v52, 4  ;;  %v4626_v23 = vsel %vm1291_vm13, 1.0, %v5388_v9  ;;  %3240 = vlog2.f32 %v4551_v7 }
 0x148   : > { %v3235_v12 = vpop.eup %3234 }
 0x149   : > { %v2163_v4 = vmul.f32 %v3235_v12, %v2131_v15  ;;  %v2171_v62 = vmul.f32 %v3235_v12, %v2139_v6  ;;  %v1632_v24 = vadd.f32 %v1631_v40, %v1630_v52 }
 0x14a   : > { %v3237_v53 = vpop.eup %3236 }
 0x14b   : > { %v2164_v54 = vmul.f32 %v3237_v53, %v2132_v0  ;;  %v2172_v28 = vmul.f32 %v3237_v53, %v2140_v14  ;;  %v2180_v15 = vmul.f32 %v3237_v53, %v2148_v57  ;;  %v2195_v13 = vpack.c.bf16 %v2171_v62, %v2163_v4 }
 0x14c   : > { %v2188_v44 = vmul.f32 %v3237_v53, %v2156_v35  ;;  %v1633_v6 = vrot.slane %v1632_v24, 2  ;;  %v3239_v52 = vpop.eup %3238  ;;  %v1611_v0 = vadd.f32 %v1610_v59, %v1609_v31  ;;  %v4634_v14 = vsel %vm1315_vm11, %v2997_v50, %v4626_v23 }
 0x14d   : > { %v2196_v40 = vpack.c.bf16 %v2172_v28, %v2164_v54  ;;  %2220 = vmatpush1.bf16.xpose.msra.mxu0 %v2201_v10  ;;  %v1074_v57 = vrot.slane %v1073_v8, 4  ;;  %v1445_v62 = vmul.f32 0.6931472, %v3239_v52  ;;  %v1080_v53 = vsel %vm755_vm0, %v4610_v29, -inf }
 0x14e   : > { %v2204_v4 = vpack.c.bf16 %v2188_v44, %v2180_v15  ;;  %v1634_v35 = vadd.f32 %v1633_v6, %v1632_v24  ;;  %v2109_v54 = vsel %vm755_vm0, %v4487_v48, 0.0  ;;  %v2110_v28 = vsel %vm755_vm0, %v4493_v5, 0.0 }
 0x14f   : > { %2257 = vmatprep.subr.bf16.mxu1 %v2196_v40  ;;  %v1612_v31 = vrot.slane %v1611_v0, 2  ;;  %v2179_v10 = vmul.f32 %v3235_v12, %v2147_v22  ;;  %v2187_v59 = vmul.f32 %v3235_v12, %v2155_v61  ;;  %v4644_v15 = vadd.f32 %v1445_v62, %v4449_v36  ;;  %v4656_v36 = vld [vmem:[%s4058_s5 + $0x18] sm:$0xff]  ;;  %s2512_s5 = sshll.u32 %s676_s12, 4  ;;  %s2513_s5 = int_to_ptr.vmem [resolvable:$true] %s2512_s5 }
 0x150   : > { %2258 = vmatpush1.bf16.xpose.msra.mxu1 %v2195_v13  ;;  %v1635_v24 = vrot.slane %v1634_v35, 1  ;;  %v1603_v48 = vmul.f32 %v4634_v14, %v4348_v16  ;;  %v1075_v5 = vmax.f32 %v1073_v8, %v1074_v57  ;;  %v1081_v6 = vrot.slane %v1080_v53, 4  ;;  %s3430_s17 = scalar_lea.vmem %s2513_s5, 128  ;;  %p3437_p13 = scmp.lt.s32.totalorder %s2513_s5, %s3435_s20 }
 0x151   : > { %5470 = vst [vmem:[#allocation52_spill] sm:$0xff] %v4644_v15  ;;  %2259 = vmatprep.subr.bf16.mxu1 %v2204_v4  ;;  %v1613_v44 = vadd.f32 %v1612_v31, %v1611_v0  ;;  %v2111_v12 = vadd.f32 %v2110_v28, %v2109_v54  ;;  %v2203_v52 = vpack.c.bf16 %v2187_v59, %v2179_v10  ;;  %v2112_v22 = vsel %vm755_vm0, %v2997_v50, 0.0  ;;  %p3431_p10 = scmp.ne.s32.totalorder %s2513_s5, %s3430_s17  ;;  %p3438_p0 = scmp.lt.s32.totalorder %s3436_s13, %s3430_s17 }
 0x152   : > { %v4652_v7 = vadd.f32 %v1635_v24, %v1634_v35  ;;  %v1623_v61 = vsel %vm755_vm0, %v1603_v48, 0.0  ;;  %v1076_v8 = vrot.slane %v1075_v5, 2  ;;  %v1082_v0 = vmax.f32 %v1080_v53, %v1081_v6  ;;  %v3241_v24 = vpop.eup %3240 }
 0x153   : > { %v1614_v13 = vrot.slane %v1613_v44, 1  ;;  %v1624_v11 = vrot.slane %v1623_v61, 4  ;;  %v4666_v4 = vcombine.high %v4656_v36, %v4656_v36  ;;  %v1087_v62 = vsel %vm755_vm0, %v4656_v36, -inf  ;;  %p3432_p7 = pnand %p3431_p10, %p5522_p12  ;;  %p3439_p2 = por %p3438_p0, %p3437_p13 }
 0x154   : > { %5471 = vst [vmem:[#allocation53_spill] sm:$0xff] %v4652_v7  ;;  %3030 = vmatmul.mubr.msk.bf16.vlgmr.msra.gmra.mrb[8].mxu0 %vm3029_vm15, %v5464_v34  ;;  %v2114_v35 = vsel %vm755_vm0, %v4568_v58, 0.0  ;;  %v1077_v28 = vmax.f32 %v1075_v5, %v1076_v8  ;;  %v1083_v50 = vrot.slane %v1082_v0, 2  ;;  %v2113_v31 = vadd.f32 %v2112_v22, %v2111_v12  ;;  %v2144_v7 = vld [vmem:[%s4544_s14 + $0x78] sm:$0xff] }
 0x155   : > { %v4662_v16 = vadd.f32 %v1614_v13, %v1613_v44  ;;  %v1625_v57 = vadd.f32 %v1624_v11, %v1623_v61  ;;  %v1088_v53 = vrot.slane %v1087_v62, 4  ;;  %v1094_v59 = vsel %vm755_vm0, %v4666_v4, -inf  ;;  %v742_v13 = vld [vmem:[#allocation2] sm:$0xf]  ;;  %p3433_p4 = pneg %p3432_p7 }
 0x156   : > { %v4680_v44 = vsel %vm1013_vm2, 1.0, %v5388_v9  ;;  %v1078_v58 = vrot.slane %v1077_v28, 1  ;;  %v1084_v48 = vmax.f32 %v1082_v0, %v1083_v50  ;;  %v1095_v6 = vrot.slane %v1094_v59, 4  ;;  %vm3033_vm2 = vmpackc.low %vm1291_vm13, %vm1291_vm13 }
 0x157   : > { %v1626_v10 = vrot.slane %v1625_v57, 2  ;;  %v1443_v5 = vmul.f32 0.6931472, %v3241_v24  ;;  %v1089_v12 = vmax.f32 %v1087_v62, %v1088_v53  ;;  %v3685_v8 = vmov 0   ;;  %p3440_p3 = pnand %p3439_p2, %p3433_p4 }
 0x158   : > { %2260 = vmatpush1.bf16.xpose.msra.mxu1 %v2203_v52  ;;  %v4682_v52 = vmax.f32 %v1077_v28, %v1078_v58  ;;  %v1085_v11 = vrot.slane %v1084_v48, 1  ;;  %v1096_v22 = vmax.f32 %v1094_v59, %v1095_v6  ;;  %3189 = vset.pattern.permute.xlu0 %v3685_v8  ;;  %v2115_v40 = vadd.f32 %v2114_v35, %v2113_v31 }
 0x159   : > { %v1627_v61 = vadd.f32 %v1626_v10, %v1625_v57  ;;  %v4685_v54 = vadd.f32 %v1443_v5, %v4440_v20  ;;  %v1090_v0 = vrot.slane %v1089_v12, 2  ;;  %1347 = vperm.xlu0 %3189, %v742_v13   ;;  %v2116_v57 = vsel %vm755_vm0, %v4680_v44, 0.0 }
 0x15a   : > { %v4693_v62 = vmax.f32 %v1084_v48, %v1085_v11  ;;  %v1097_v28 = vrot.slane %v1096_v22, 2  ;;  %v2382_v20 = vsel %vm755_vm0, %v4501_v42, 0.0  ;;  %v2381_v31 = vsel %vm755_vm0, %v4521_v47, 0.0 }
 0x15b   : > { %5472 = vst [vmem:[#allocation54_spill] sm:$0xff] %v4685_v54  ;;  %v1628_v32 = vrot.slane %v1627_v61, 1  ;;  %v1091_v35 = vmax.f32 %v1089_v12, %v1090_v0  ;;  %v2117_v53 = vadd.f32 %v2116_v57, %v2115_v40  ;;  %v4710_v58 = vsel %vm1014_vm6, 1.0, %v5388_v9 }
 0x15c   : > { %v1111_v37 = vcombine.low %v4682_v52, %v4693_v62  ;;  %v1098_v10 = vmax.f32 %v1096_v22, %v1097_v28  ;;  %v2383_v48 = vadd.f32 %v2382_v20, %v2381_v31  ;;  %v2384_v6 = vsel %vm755_vm0, %v4626_v23, 0.0 }
 0x15d   : > { %v4695_v50 = vadd.f32 %v1628_v32, %v1627_v61  ;;  %v1092_v24 = vrot.slane %v1091_v35, 1  ;;  %v2386_v11 = vsel %vm755_vm0, %v4574_v27, 0.0  ;;  %v2118_v8 = vsel %vm755_vm0, %v4710_v58, 0.0 }
 0x15e   : > { %v1119_v42 = vsub.f32 %v4591_v51, %v1111_v37  ;;  %v1099_v47 = vrot.slane %v1098_v10, 1  ;;  %vm1199_vm12 = vcmp.ge.f32.partialorder %v4591_v51, %v1111_v37  ;;  %v4733_v0 = vsel %vm1015_vm9, 1.0, %v5388_v9 }
 0x15f   : > { %5473 = vst [vmem:[#allocation55_spill] sm:$0xff] %v4695_v50  ;;  %3034 = vmatmul.mubr.msk.bf16.vlgmr.msra.gmra.mrb[8].mxu1 %vm3033_vm2, %v5464_v34  ;;  %v4716_v40 = vmax.f32 %v1091_v35, %v1092_v24  ;;  %v1203_v13 = vsel %vm1199_vm12, %v4127_v55, 4  ;;  %v2385_v57 = vadd.f32 %v2384_v6, %v2383_v48  ;;  %v4739_v27 = vsel %vm1016_vm14, 1.0, %v5388_v9 }
 0x160   : > { %v1125_v5 = vmul.f32 1.442695, %v1119_v42  ;;  %v4719_v61 = vmax.f32 %v1098_v10, %v1099_v47  ;;  %v1207_v12 = vcombine.high %v1203_v13, %v1203_v13  ;;  %v1249_v45 = vsel %vm755_vm0, %v1203_v13, 2147483647 }
 0x161   : > { %v1250_v22 = vrot.slane %v1249_v45, 4  ;;  %v2119_v31 = vadd.f32 %v2118_v8, %v2117_v53  ;;  %v2120_v10 = vsel %vm755_vm0, %v4733_v0, 0.0  ;;  %v2122_v13 = vsel %vm755_vm0, %v4739_v27, 0.0 }
 0x162   : > { %3242 = vpow2.f32 %v1125_v5  ;;  %v1112_v23 = vcombine.low %v4716_v40, %v4719_v61  ;;  %v1259_v32 = vsel %vm755_vm0, %v1207_v12, 2147483647  ;;  %v2387_v59 = vadd.f32 %v2386_v11, %v2385_v57 }
 0x163   : > { %vm1251_vm6 = vcmp.lt.s32.totalorder %v1249_v45, %v1250_v22  ;;  %v1260_v28 = vrot.slane %v1259_v32, 4  ;;  %v2121_v12 = vadd.f32 %v2120_v10, %v2119_v31 }
 0x164   : > { %v1120_v35 = vsub.f32 %v4656_v36, %v1112_v23  ;;  %v1252_v20 = vsel %vm1251_vm6, %v1249_v45, %v1250_v22  ;;  %vm1200_vm1 = vcmp.ge.f32.partialorder %v4656_v36, %v1112_v23 }
 0x165   : > { %v1253_v37 = vrot.slane %v1252_v20, 2  ;;  %vm1261_vm3 = vcmp.lt.s32.totalorder %v1259_v32, %v1260_v28  ;;  %v1204_v21 = vsel %vm1200_vm1, %v4127_v55, 4 }
 0x166   : > { %v1127_v24 = vmul.f32 1.442695, %v1120_v35  ;;  %v1262_v42 = vsel %vm1261_vm3, %v1259_v32, %v1260_v28  ;;  %v1208_v47 = vcombine.high %v1204_v21, %v1204_v21  ;;  %v1269_v38 = vsel %vm755_vm0, %v1204_v21, 2147483647 }
 0x167   : > { %vm1254_vm14 = vcmp.lt.s32.totalorder %v1252_v20, %v1253_v37  ;;  %v1263_v48 = vrot.slane %v1262_v42, 2  ;;  %v1270_v6 = vrot.slane %v1269_v38, 4 }
 0x168   : > { %3244 = vpow2.f32 %v1127_v24  ;;  %v1255_v53 = vsel %vm1254_vm14, %v1252_v20, %v1253_v37  ;;  %v1279_v5 = vsel %vm755_vm0, %v1208_v47, 2147483647  ;;  %v2123_v24 = vadd.f32 %v2122_v13, %v2121_v12 }
 0x169   : > { %v1256_v55 = vrot.slane %v1255_v53, 1  ;;  %vm1264_vm9 = vcmp.lt.s32.totalorder %v1262_v42, %v1263_v48  ;;  %vm1271_vm4 = vcmp.lt.s32.totalorder %v1269_v38, %v1270_v6  ;;  %v1280_v45 = vrot.slane %v1279_v5, 4 }
 0x16a   : > { %v1265_v22 = vsel %vm1264_vm9, %v1262_v42, %v1263_v48  ;;  %v1272_v8 = vsel %vm1271_vm4, %v1269_v38, %v1270_v6 }
 0x16b   : > { %vm1257_vm7 = vcmp.lt.s32.totalorder %v1255_v53, %v1256_v55  ;;  %v1266_v23 = vrot.slane %v1265_v22, 1  ;;  %v1273_v32 = vrot.slane %v1272_v8, 2  ;;  %vm1281_vm8 = vcmp.lt.s32.totalorder %v1279_v5, %v1280_v45 }
 0x16c   : > { %v3243_v28 = vpop.eup %3242  ;;  %v4750_v35 = vsel %vm1257_vm7, %v1255_v53, %v1256_v55  ;;  %v1282_v21 = vsel %vm1281_vm8, %v1279_v5, %v1280_v45  ;;  %vm728_vm7 = vcmask 257024  }
 0x16d   : > { %v1135_v20 = vcombine.high %v3243_v28, %v3243_v28  ;;  %v1169_v37 = vsel %vm755_vm0, %v3243_v28, 0.0  ;;  %vm1267_vm10 = vcmp.lt.s32.totalorder %v1265_v22, %v1266_v23  ;;  %vm1274_vm5 = vcmp.lt.s32.totalorder %v1272_v8, %v1273_v32 }
 0x16e   : > { %v1170_v31 = vrot.slane %v1169_v37, 4  ;;  %v1268_v10 = vsel %vm1267_vm10, %v1265_v22, %v1266_v23  ;;  %v1275_v47 = vsel %vm1274_vm5, %v1272_v8, %v1273_v32  ;;  %v1283_v42 = vrot.slane %v1282_v21, 2 }
 0x16f   : > { %v1176_v38 = vsel %vm755_vm0, %v1135_v20, 0.0  ;;  %vm1294_vm11 = vcmp.eq.s32.totalorder %v4091_v19, %v1268_v10  ;;  %v1792_v48 = vcombine.low %v4750_v35, %v1268_v10  ;;  %v1276_v6 = vrot.slane %v1275_v47, 1 }
 0x170   : > { %v1177_v53 = vrot.slane %v1176_v38, 4  ;;  %v1171_v5 = vadd.f32 %v1170_v31, %v1169_v37  ;;  %v3008_v11 = vsel %vm1294_vm11, 1.0, %v5388_v9  ;;  %vm3035_vm13 = vmpackc.low %vm1294_vm11, %vm1294_vm11  ;;  %vm1284_vm15 = vcmp.lt.s32.totalorder %v1282_v21, %v1283_v42 }
 0x171   : > { %v4758_v57 = vrot.slane %v1792_v48, %v4162_v43  ;;  %3036 = vmatprep.mubr.msk.bf16.mxu0 %vm3035_vm13, %v5464_v34  ;;  %vm1277_vm2 = vcmp.lt.s32.totalorder %v1275_v47, %v1276_v6  ;;  %v1285_v13 = vsel %vm1284_vm15, %v1282_v21, %v1283_v42  ;;  %vm1293_vm12 = vcmp.eq.s32.totalorder %v4091_v19, %v4750_v35 }
 0x172   : > { %v3245_v12 = vpop.eup %3244  ;;  %v1178_v55 = vadd.f32 %v1177_v53, %v1176_v38  ;;  %v1172_v45 = vrot.slane %v1171_v5, 2  ;;  %v4763_v22 = vsel %vm1277_vm2, %v1275_v47, %v1276_v6  ;;  %v1286_v8 = vrot.slane %v1285_v13, 1  ;;  %vm3037_vm5 = vmpackc.low %vm1293_vm12, %vm1293_vm12 }
 0x173   : > { %5474 = vst [vmem:[#allocation56_spill] sm:$0xff] %v4758_v57  ;;  %v1136_v23 = vcombine.high %v3245_v12, %v3245_v12  ;;  %v1183_v32 = vsel %vm755_vm0, %v3245_v12, 0.0  ;;  %v3007_v28 = vsel %vm1293_vm12, 1.0, %v5388_v9  ;;  %vm1295_vm6 = vcmp.eq.s32.totalorder %v4091_v19, %v4763_v22  ;;  %v2149_v57 = vld [vmem:[%s4544_s14 + $0xa0] sm:$0xff] }
 0x174   : > { %v1179_v21 = vrot.slane %v1178_v55, 2  ;;  %v1173_v20 = vadd.f32 %v1172_v45, %v1171_v5  ;;  %v1184_v37 = vrot.slane %v1183_v32, 4  ;;  %vm1287_vm1 = vcmp.lt.s32.totalorder %v1285_v13, %v1286_v8  ;;  %vm3041_vm11 = vmpackc.low %vm1295_vm6, %vm1295_vm6 }
 0x175   : > { %v1190_v31 = vsel %vm755_vm0, %v1136_v23, 0.0  ;;  %v1288_v10 = vsel %vm1287_vm1, %v1285_v13, %v1286_v8  ;;  %v3009_v47 = vsel %vm1295_vm6, 1.0, %v5388_v9  ;;  %v2388_v42 = vsel %vm755_vm0, %v3007_v28, 0.0 }
 0x176   : > { %v1180_v38 = vadd.f32 %v1179_v21, %v1178_v55  ;;  %v1191_v48 = vrot.slane %v1190_v31, 4  ;;  %v1174_v6 = vrot.slane %v1173_v20, 1  ;;  %v1185_v53 = vadd.f32 %v1184_v37, %v1183_v32 }
 0x177   : > { %vm1296_vm3 = vcmp.eq.s32.totalorder %v4091_v19, %v1288_v10  ;;  %v1793_v5 = vcombine.low %v4763_v22, %v1288_v10  ;;  %v2389_v12 = vadd.f32 %v2388_v42, %v2387_v59  ;;  %v2390_v45 = vsel %vm755_vm0, %v3008_v11, 0.0  ;;  %v3278_v19 = vld [vmem:[%s4051_s26] sm:$0xff] }
 0x178   : > { %v1181_v13 = vrot.slane %v1180_v38, 1  ;;  %v1192_v8 = vadd.f32 %v1191_v48, %v1190_v31  ;;  %v1175_v23 = vadd.f32 %v1174_v6, %v1173_v20  ;;  %v1186_v46 = vrot.slane %v1185_v53, 2  ;;  %vm3039_vm14 = vmpackc.low %vm1296_vm3, %vm1296_vm3  ;;  %2124 = vadd.xlane.f32.xlu0 %v2123_v24  ;;  %v2135_v20 = vld [vmem:[%s4544_s14 + $0x30] sm:$0xff] }
 0x179   : > { %v4782_v9 = vrot.slane %v1793_v5, %v4162_v43  ;;  %3040 = vmatprep.mubr.msk.bf16.mxu1 %vm3039_vm14, %v5464_v34  ;;  %v5476_v55 = vmov 0.0   ;;  %v2391_v21 = vadd.f32 %v2390_v45, %v2389_v12  ;;  %v2392_v37 = vsel %vm755_vm0, %v3009_v47, 0.0 }
 0x17a   : > { %v3010_v32 = vsel %vm1296_vm3, 1.0, %v5476_v55  ;;  %v1182_v59 = vadd.f32 %v1181_v13, %v1180_v38  ;;  %v1193_v10 = vrot.slane %v1192_v8, 2  ;;  %3246 = vrcp.f32 %v1175_v23  ;;  %729 = vst.msk [vmem:[%s4808_s18] sm:$0xf] %vm728_vm7, %v5476_v55  ;;  %v2157_v55 = vld [vmem:[%s4544_s14 + $0xe0] sm:$0xff] }
 0x17b   : > { %5475 = vst [vmem:[#allocation57_spill] sm:$0xff] %v4782_v9  ;;  %v1187_v42 = vadd.f32 %v1186_v46, %v1185_v53  ;;  %vm1317_vm9 = vcmp.le.f32.partialorder %v4241_v17, %v1175_v23  ;;  %3248 = vlog2.f32 %v1175_v23  ;;  %v2393_v24 = vadd.f32 %v2392_v37, %v2391_v21 }
 0x17c   : > { %3250 = vrcp.f32 %v1182_v59  ;;  %v1194_v31 = vadd.f32 %v1193_v10, %v1192_v8  ;;  %vm1318_vm4 = vcmp.le.f32.partialorder %v4259_v30, %v1182_v59  ;;  %v4796_v46 = vsel %vm1317_vm9, %v4680_v44, %v3007_v28  ;;  %v2141_v28 = vld [vmem:[%s4544_s14 + $0x60] sm:$0xff]  ;;  %v2142_v10 = vld [vmem:[%s4544_s14 + $0x68] sm:$0xff] }
 0x17d   : > { %v1188_v48 = vrot.slane %v1187_v42, 1  ;;  %v4793_v6 = vsel %vm1318_vm4, %v4710_v58, %v3008_v11  ;;  %3252 = vlog2.f32 %v1182_v59  ;;  %v2394_v38 = vsel %vm755_vm0, %v3010_v32, 0.0  ;;  %v2133_v11 = vld [vmem:[%s4544_s14 + $0x20] sm:$0xff]  ;;  %v2134_v59 = vld [vmem:[%s4544_s14 + $0x28] sm:$0xff] }
 0x17e   : > { %v1195_v53 = vrot.slane %v1194_v31, 1  ;;  %v1606_v12 = vmul.f32 %v4793_v6, %v4610_v29  ;;  %v1605_v45 = vmul.f32 %v4796_v46, %v4591_v51  ;;  %v2395_v13 = vadd.f32 %v2394_v38, %v2393_v24 }
 0x17f   : > { %v1189_v5 = vadd.f32 %v1188_v48, %v1187_v42  ;;  %v2150_v42 = vld [vmem:[%s4544_s14 + $0xa8] sm:$0xff]  ;;  %v1462_v22 = vmul.f32 %v3278_v19, %v4527_v2 }
 0x180   : > { %v4803_v58 = vadd.f32 %v1195_v53, %v1194_v31  ;;  %v1644_v44 = vsel %vm755_vm0, %v1606_v12, 0.0  ;;  %v1637_v51 = vsel %vm755_vm0, %v1605_v45, 0.0  ;;  %2396 = vadd.xlane.f32.xlu1 %v2395_v13  ;;  %v2158_v53 = vld [vmem:[%s4544_s14 + $0xe8] sm:$0xff] }
 0x181   : > { %3254 = vrcp.f32 %v1189_v5  ;;  %v1645_v29 = vrot.slane %v1644_v44, 4  ;;  %v1638_v8 = vrot.slane %v1637_v51, 4  ;;  %vm1319_vm8 = vcmp.le.f32.partialorder %v4438_v18, %v1189_v5 }
 0x182   : > { %3256 = vrcp.f32 %v4803_v58  ;;  %vm1320_vm10 = vcmp.le.f32.partialorder %v4442_v41, %v4803_v58  ;;  %v4821_v21 = vsel %vm1319_vm8, %v4733_v0, %v3009_v47 }
 0x183   : > { %v1646_v23 = vadd.f32 %v1645_v29, %v1644_v44  ;;  %v4827_v24 = vsel %vm1320_vm10, %v4739_v27, %v3010_v32  ;;  %3258 = vlog2.f32 %v1189_v5  ;;  %v1639_v47 = vadd.f32 %v1638_v8, %v1637_v51  ;;  %v2143_v5 = vld [vmem:[%s4544_s14 + $0x70] sm:$0xff]  ;;  %v2136_v8 = vld [vmem:[%s4544_s14 + $0x38] sm:$0xff] }
 0x184   : > { %v3247_v37 = vpop.eup %3246  ;;  %3260 = vlog2.f32 %v4803_v58 }
 0x185   : > { %v3249_v31 = vpop.eup %3248  ;;  %v2165_v48 = vmul.f32 %v3247_v37, %v2133_v11  ;;  %v2173_v38 = vmul.f32 %v3247_v37, %v2141_v28  ;;  %v1647_v45 = vrot.slane %v1646_v23, 2  ;;  %3262 = vlog2.f32 %v4213_v60 }
 0x186   : > { %v3251_v12 = vpop.eup %3250  ;;  %v1447_v0 = vmul.f32 0.6931472, %v3249_v31  ;;  %3264 = vlog2.f32 %v4216_v39 }
 0x187   : > { %v3253_v13 = vpop.eup %3252  ;;  %v2166_v44 = vmul.f32 %v3251_v12, %v2134_v59  ;;  %v2174_v29 = vmul.f32 %v3251_v12, %v2142_v10  ;;  %v2182_v27 = vmul.f32 %v3251_v12, %v2150_v42  ;;  %v2197_v32 = vpack.c.bf16 %v2173_v38, %v2165_v48  ;;  %v2152_v10 = vld [vmem:[%s4544_s14 + $0xb8] sm:$0xff] }
 0x188   : > { %v2190_v9 = vmul.f32 %v3251_v12, %v2158_v53  ;;  %v1449_v11 = vmul.f32 0.6931472, %v3253_v13  ;;  %v1648_v43 = vadd.f32 %v1647_v45, %v1646_v23  ;;  %v4835_v31 = vadd.f32 %v1447_v0, %v4682_v52  ;;  %v2160_v12 = vld [vmem:[%s4544_s14 + $0xf8] sm:$0xff] }
 0x189   : > { %v2198_v28 = vpack.c.bf16 %v2174_v29, %v2166_v44  ;;  %v1640_v48 = vrot.slane %v1639_v47, 2  ;;  %v2181_v23 = vmul.f32 %v3247_v37, %v2149_v57  ;;  %v2189_v52 = vmul.f32 %v3247_v37, %v2157_v55 }
 0x18a   : > { %v2206_v59 = vpack.c.bf16 %v2190_v9, %v2182_v27  ;;  %v4841_v42 = vadd.f32 %v1449_v11, %v4693_v62  ;;  %v1649_v45 = vrot.slane %v1648_v43, 1  ;;  %3266 = vlog2.f32 %v4209_v49 }
 0x18b   : > { %v3255_v51 = vpop.eup %3254  ;;  %2297 = vmatprep.subr.bf16.mxu0 %v2198_v28  ;;  %v1641_v0 = vadd.f32 %v1640_v48, %v1639_v47  ;;  %v2159_v28 = vld [vmem:[%s4544_s14 + $0xf0] sm:$0xff]  ;;  %v1607_v47 = vmul.f32 %v4821_v21, %v4656_v36  ;;  %3268 = vlog2.f32 %v4211_v56 }
 0x18c   : > { %v2167_v38 = vmul.f32 %v3255_v51, %v2135_v20  ;;  %v2175_v53 = vmul.f32 %v3255_v51, %v2143_v5  ;;  %v3257_v13 = vpop.eup %3256  ;;  %2298 = vmatpush1.bf16.xpose.msra.mxu0 %v2197_v32  ;;  %v4844_v15 = vadd.f32 %v1649_v45, %v1648_v43  ;;  %v2151_v5 = vld [vmem:[%s4544_s14 + $0xb0] sm:$0xff]  ;;  %v2205_v32 = vpack.c.bf16 %v2189_v52, %v2181_v23  ;;  %s5117_s14 = scalar_lea.hbm %s5341_s10, %s5111_s15 }
 0x18d   : > { %v2168_v44 = vmul.f32 %v3257_v13, %v2136_v8  ;;  %v2176_v29 = vmul.f32 %v3257_v13, %v2144_v7  ;;  %2299 = vmatprep.subr.bf16.mxu0 %v2206_v59  ;;  %v2184_v9 = vmul.f32 %v3257_v13, %v2152_v10  ;;  %v3259_v27 = vpop.eup %3258  ;;  %v2192_v11 = vmul.f32 %v3257_v13, %v2160_v12 }
 0x18e   : > { %v2199_v62 = vpack.c.bf16 %v2175_v53, %v2167_v38  ;;  %v1642_v50 = vrot.slane %v1641_v0, 1  ;;  %v1451_v54 = vmul.f32 0.6931472, %v3259_v27  ;;  %v2183_v43 = vmul.f32 %v3255_v51, %v2151_v5  ;;  %v3279_v27 = vld [vmem:[%s4051_s26 + $0x8] sm:$0xff] }
 0x18f   : > { %v2200_v20 = vpack.c.bf16 %v2176_v29, %v2168_v44  ;;  %v2208_v3 = vpack.c.bf16 %v2192_v11, %v2184_v9  ;;  %v2191_v37 = vmul.f32 %v3255_v51, %v2159_v28  ;;  %v1608_v8 = vmul.f32 %v4827_v24, %v4666_v4  ;;  %v3261_v4 = vpop.eup %3260  ;;  %v5477_v29 = vld [vmem:[#allocation33_spill] sm:$0xff] }
 0x190   : > { %v4851_v7 = vadd.f32 %v1642_v50, %v1641_v0  ;;  %v4854_v55 = vadd.f32 %v1451_v54, %v4716_v40  ;;  %v1651_v50 = vsel %vm755_vm0, %v1607_v47, 0.0  ;;  %v1453_v38 = vmul.f32 0.6931472, %v3261_v4  ;;  %v3280_v28 = vld [vmem:[%s4051_s26 + $0x10] sm:$0xff] }
 0x191   : > { %2337 = vmatprep.subr.bf16.mxu1 %v2200_v20  ;;  %v1658_v58 = vsel %vm755_vm0, %v1608_v8, 0.0  ;;  %v1652_v54 = vrot.slane %v1651_v50, 4  ;;  %v2207_v10 = vpack.c.bf16 %v2191_v37, %v2183_v43  ;;  %v1463_v44 = vmul.f32 %v4511_v25, %v4074_v1  ;;  %v5478_v20 = vld [vmem:[#allocation34_spill] sm:$0xff]  ;;  %v5479_v37 = vld [vmem:[#allocation35_spill] sm:$0xff] }
 0x192   : > { %2338 = vmatpush1.bf16.xpose.msra.mxu1 %v2199_v62  ;;  %v1659_v40 = vrot.slane %v1658_v58, 4  ;;  %v4870_v13 = vadd.f32 %v1453_v38, %v4719_v61  ;;  %v1465_v9 = vmul.f32 %v4586_v33, %v5477_v29  ;;  %v1464_v62 = vmul.f32 %v3279_v27, %v4634_v14 }
 0x193   : > { %2339 = vmatprep.subr.bf16.mxu1 %v2208_v3  ;;  %v1653_v48 = vadd.f32 %v1652_v54, %v1651_v50  ;;  %v1470_v11 = vsel %vm755_vm0, %v1462_v22, 0.0  ;;  %v1467_v5 = vmul.f32 %v4793_v6, %v5478_v20  ;;  %v1466_v1 = vmul.f32 %v3280_v28, %v4796_v46 }
 0x194   : > { %2300 = vmatpush1.bf16.xpose.msra.mxu0 %v2205_v32  ;;  %v1660_v51 = vadd.f32 %v1659_v40, %v1658_v58  ;;  %v3281_v32 = vld [vmem:[%s4051_s26 + $0x18] sm:$0xff]  ;;  %v1469_v47 = vmul.f32 %v4827_v24, %v5479_v37  ;;  %v1491_v60 = vsel %vm755_vm0, %v1465_v9, 0.0  ;;  %v1484_v8 = vsel %vm755_vm0, %v1464_v62, 0.0  ;;  %s669_s26 = scalar_lea.vmem [#allocation14], %s5062_s3 }
 0x195   : > { %v1654_v36 = vrot.slane %v1653_v48, 2  ;;  %v1468_v43 = vmul.f32 %v3281_v32, %v4821_v21  ;;  %v1471_v58 = vrot.slane %v1470_v11, 4  ;;  %v1505_v54 = vsel %vm755_vm0, %v1467_v5, 0.0 }
 0x196   : > { %v1661_v3 = vrot.slane %v1660_v51, 2  ;;  %v1498_v40 = vsel %vm755_vm0, %v1466_v1, 0.0  ;;  %v1485_v39 = vrot.slane %v1484_v8, 4  ;;  %3270 = vlog2.f32 %v4259_v30 }
 0x197   : > { %v1655_v53 = vadd.f32 %v1654_v36, %v1653_v48  ;;  %v1519_v48 = vsel %vm755_vm0, %v1469_v47, 0.0  ;;  %3272 = vlog2.f32 %v4241_v17  ;;  %v1506_v49 = vrot.slane %v1505_v54, 4 }
 0x198   : > { %v1662_v12 = vadd.f32 %v1661_v3, %v1660_v51  ;;  %v1492_v51 = vrot.slane %v1491_v60, 4  ;;  %v1499_v36 = vrot.slane %v1498_v40, 4  ;;  %v1520_v4 = vrot.slane %v1519_v48, 4 }
 0x199   : > { %v1656_v23 = vrot.slane %v1655_v53, 1  ;;  %v1472_v56 = vadd.f32 %v1471_v58, %v1470_v11  ;;  %3274 = vlog2.f32 %v4438_v18 }
 0x19a   : > { %2340 = vmatpush1.bf16.xpose.msra.mxu1 %v2207_v10  ;;  %v1663_v52 = vrot.slane %v1662_v12, 1  ;;  %v1512_v10 = vsel %vm755_vm0, %v1468_v43, 0.0  ;;  %3276 = vlog2.f32 %v4442_v41  ;;  %v1500_v19 = vadd.f32 %v1499_v36, %v1498_v40 }
 0x19b   : > { %3038 = vmatmul.mubr.msk.bf16.vlgmr.msra.gmra.mrb[12].mxu0 %vm3037_vm5, %v5464_v34  ;;  %v4876_v35 = vadd.f32 %v1656_v23, %v1655_v53  ;;  %v1513_v3 = vrot.slane %v1512_v10, 4  ;;  %v3263_v53 = vpop.eup %3262  ;;  %v1486_v23 = vadd.f32 %v1485_v39, %v1484_v8  ;;  %v1521_v30 = vadd.f32 %v1520_v4, %v1519_v48 }
 0x19c   : > { %v4878_v45 = vadd.f32 %v1663_v52, %v1662_v12  ;;  %v1493_v12 = vadd.f32 %v1492_v51, %v1491_v60  ;;  %v3265_v52 = vpop.eup %3264  ;;  %v1473_v9 = vrot.slane %v1472_v56, 2  ;;  %v1501_v5 = vrot.slane %v1500_v19, 2 }
 0x19d   : > { %v1514_v22 = vadd.f32 %v1513_v3, %v1512_v10  ;;  %v3267_v29 = vpop.eup %3266  ;;  %v1487_v20 = vrot.slane %v1486_v23, 2  ;;  %v1522_v28 = vrot.slane %v1521_v30, 2  ;;  %v1417_v60 = vmul.f32 0.6931472, %v3263_v53 }
 0x19e   : > { %v3269_v27 = vpop.eup %3268  ;;  %v1494_v62 = vrot.slane %v1493_v12, 2  ;;  %v1474_v43 = vadd.f32 %v1473_v9, %v1472_v56  ;;  %v1502_v58 = vadd.f32 %v1501_v5, %v1500_v19  ;;  %v1421_v48 = vmul.f32 0.6931472, %v3265_v52  ;;  %v5480_v9 = vld [vmem:[#allocation38_spill] sm:$0xff]  ;;  %v5484_v5 = vld [vmem:[#allocation41_spill] sm:$0xff] }
 0x19f   : > { %v1515_v18 = vrot.slane %v1514_v22, 2  ;;  %v1488_v37 = vadd.f32 %v1487_v20, %v1486_v23  ;;  %v1523_v40 = vadd.f32 %v1522_v28, %v1521_v30  ;;  %v1415_v51 = vmul.f32 0.6931472, %v3267_v29  ;;  %v5482_v30 = vld [vmem:[#allocation36_spill] sm:$0xff]  ;;  %v5483_v20 = vld [vmem:[#allocation37_spill] sm:$0xff] }
 0x1a0   : > { %v1495_v41 = vadd.f32 %v1494_v62, %v1493_v12  ;;  %v1475_v39 = vrot.slane %v1474_v43, 1  ;;  %v1419_v36 = vmul.f32 0.6931472, %v3269_v27  ;;  %v1503_v23 = vrot.slane %v1502_v58, 1  ;;  %v5485_v28 = vld [vmem:[#allocation40_spill] sm:$0xff] }
 0x1a1   : > { %3042 = vmatmul.mubr.msk.bf16.vlgmr.msra.gmra.mrb[12].mxu1 %vm3041_vm11, %v5464_v34  ;;  %v1477_v34 = vsel %vm755_vm0, %v1463_v44, 0.0  ;;  %v1507_v44 = vadd.f32 %v1506_v49, %v1505_v54  ;;  %v1516_v54 = vadd.f32 %v1515_v18, %v1514_v22  ;;  %v1489_v3 = vrot.slane %v1488_v37, 1  ;;  %v5481_v22 = vld [vmem:[#allocation39_spill] sm:$0xff] }
 0x1a2   : > { %v1478_v50 = vrot.slane %v1477_v34, 4  ;;  %v1496_v49 = vrot.slane %v1495_v41, 1  ;;  %v1524_v53 = vrot.slane %v1523_v40, 1  ;;  %v4923_v52 = vadd.f32 %v1421_v48, %v5481_v22 }
 0x1a3   : > { %v1508_v11 = vrot.slane %v1507_v44, 2  ;;  %v4926_v29 = vadd.f32 %v1415_v51, %v5482_v30  ;;  %v4930_v62 = vadd.f32 %v1475_v39, %v1474_v43  ;;  %v4951_v43 = vadd.f32 %v1503_v23, %v1502_v58 }
 0x1a4   : > { %v1479_v38 = vadd.f32 %v1478_v50, %v1477_v34  ;;  %v3271_v34 = vpop.eup %3270  ;;  %v4928_v27 = vadd.f32 %v1496_v49, %v1495_v41 }
 0x1a5   : > { %v3273_v1 = vpop.eup %3272  ;;  %v1509_v50 = vadd.f32 %v1508_v11, %v1507_v44  ;;  %v1425_v4 = vmul.f32 0.6931472, %v3271_v34  ;;  %v4918_v44 = vadd.f32 %v1417_v60, %v5480_v9  ;;  %v4933_v34 = vadd.f32 %v1419_v36, %v5483_v20  ;;  %v5487_v60 = vld [vmem:[#allocation46_spill] sm:$0xff] }
 0x1a6   : > { %v1480_v17 = vrot.slane %v1479_v38, 2  ;;  %v3275_v47 = vpop.eup %3274  ;;  %v1423_v61 = vmul.f32 0.6931472, %v3273_v1  ;;  %v4935_v11 = vadd.f32 %v1489_v3, %v1488_v37  ;;  %v4955_v37 = vadd.f32 %v1524_v53, %v1523_v40 }
 0x1a7   : > { %v3277_v8 = vpop.eup %3276  ;;  %v1510_v12 = vrot.slane %v1509_v50, 1  ;;  %v4938_v18 = vadd.f32 %v1425_v4, %v5484_v5  ;;  %v1526_v51 = vsub.f32 %v4926_v29, %v4930_v62  ;;  %v5501_v29 = vsub.f32 %v4870_v13, %v4878_v45 }
 0x1a8   : > { %v1481_v32 = vadd.f32 %v1480_v17, %v1479_v38  ;;  %v1427_v38 = vmul.f32 0.6931472, %v3275_v47  ;;  %v1429_v56 = vmul.f32 0.6931472, %v3277_v8  ;;  %v1517_v17 = vrot.slane %v1516_v54, 1 }
 0x1a9   : > { %v4941_v1 = vadd.f32 %v1423_v61, %v5485_v28  ;;  %v4949_v41 = vadd.f32 %v1510_v12, %v1509_v50 }
 0x1aa   : > { %v1482_v10 = vrot.slane %v1481_v32, 1  ;;  %v4947_v8 = vadd.f32 %v1429_v56, %v5487_v60 }
 0x1ab   : > { %v5505_v13 = vsub.f32 %v4941_v1, %v4951_v43  ;;  %v5506_v45 = vsub.f32 %v4938_v18, %v4949_v41  ;;  %v5509_v18 = vmov 0.0  }
 0x1ac   : > { %v4920_v19 = vadd.f32 %v1482_v10, %v1481_v32  ;;  %v5486_v32 = vld [vmem:[#allocation45_spill] sm:$0xff]  ;;  %v4953_v10 = vadd.f32 %v1517_v17, %v1516_v54  ;;  %732 = vst.msk [vmem:[%s5045_s16] sm:$0xf] %vm728_vm7, %v5509_v18 }
 0x1ad   : > { %v4944_v47 = vadd.f32 %v1427_v38, %v5486_v32 }
 0x1d8   : > { %v1348_v49 = vpop.permute.xlu0 %1347 }
 0x1d9   : > { %v1350_v36 = vmul.f32 %v1348_v49, %v4527_v2  ;;  %v1351_v3 = vmul.f32 %v1348_v49, %v4511_v25  ;;  %v1352_v4 = vmul.f32 %v1348_v49, %v4634_v14  ;;  %v1353_v38 = vmul.f32 %v1348_v49, %v4586_v33 }
 0x1da   : > { %v1354_v56 = vmul.f32 %v1348_v49, %v4796_v46  ;;  %v1355_v12 = vmul.f32 %v1348_v49, %v4793_v6  ;;  %v1356_v23 = vmul.f32 %v1348_v49, %v4821_v21  ;;  %v1357_v17 = vmul.f32 %v1348_v49, %v4827_v24 }
 0x1db   : > { %v1358_v53 = vsel %vm755_vm0, %v1350_v36, 0.0  ;;  %v1365_v9 = vsel %vm755_vm0, %v1351_v3, 0.0  ;;  %v1372_v2 = vsel %vm755_vm0, %v1352_v4, 0.0  ;;  %v1379_v25 = vsel %vm755_vm0, %v1353_v38, 0.0 }
 0x1dc   : > { %v1359_v22 = vrot.slane %v1358_v53, 4  ;;  %v1366_v14 = vrot.slane %v1365_v9, 4  ;;  %v1373_v30 = vrot.slane %v1372_v2, 4  ;;  %v1380_v33 = vrot.slane %v1379_v25, 4 }
 0x1dd   : > { %v1386_v46 = vsel %vm755_vm0, %v1354_v56, 0.0  ;;  %v1393_v6 = vsel %vm755_vm0, %v1355_v12, 0.0  ;;  %v1400_v21 = vsel %vm755_vm0, %v1356_v23, 0.0  ;;  %v1407_v24 = vsel %vm755_vm0, %v1357_v17, 0.0 }
 0x1de   : > { %v1360_v20 = vadd.f32 %v1359_v22, %v1358_v53  ;;  %v1367_v5 = vadd.f32 %v1366_v14, %v1365_v9  ;;  %v1374_v28 = vadd.f32 %v1373_v30, %v1372_v2  ;;  %v1381_v32 = vadd.f32 %v1380_v33, %v1379_v25 }
 0x1df   : > { %v1387_v60 = vrot.slane %v1386_v46, 4  ;;  %v1394_v49 = vrot.slane %v1393_v6, 4  ;;  %v1401_v36 = vrot.slane %v1400_v21, 4  ;;  %v1408_v3 = vrot.slane %v1407_v24, 4 }
 0x1e0   : > { %v1361_v4 = vrot.slane %v1360_v20, 2  ;;  %v1368_v38 = vrot.slane %v1367_v5, 2  ;;  %v1375_v40 = vrot.slane %v1374_v28, 2  ;;  %v1382_v54 = vrot.slane %v1381_v32, 2 }
 0x1e1   : > { %v1388_v56 = vadd.f32 %v1387_v60, %v1386_v46  ;;  %v1395_v58 = vadd.f32 %v1394_v49, %v1393_v6  ;;  %v1402_v12 = vadd.f32 %v1401_v36, %v1400_v21  ;;  %v1409_v61 = vadd.f32 %v1408_v3, %v1407_v24 }
 0x1e2   : > { %v1362_v17 = vadd.f32 %v1361_v4, %v1360_v20  ;;  %v1369_v53 = vadd.f32 %v1368_v38, %v1367_v5  ;;  %v1376_v9 = vadd.f32 %v1375_v40, %v1374_v28  ;;  %v1383_v2 = vadd.f32 %v1382_v54, %v1381_v32  ;;  %v5489_v38 = vld [vmem:[#allocation51_spill] sm:$0xff] }
 0x1e3   : > { %v1389_v30 = vrot.slane %v1388_v56, 2  ;;  %v1396_v33 = vrot.slane %v1395_v58, 2  ;;  %v1403_v0 = vrot.slane %v1402_v12, 2  ;;  %v1410_v59 = vrot.slane %v1409_v61, 2 }
 0x1e4   : > { %v1363_v46 = vrot.slane %v1362_v17, 1  ;;  %v1370_v6 = vrot.slane %v1369_v53, 1  ;;  %v1377_v21 = vrot.slane %v1376_v9, 1  ;;  %v1384_v60 = vrot.slane %v1383_v2, 1 }
 0x1e5   : > { %v1978_v50 = vpop.f32.mrb[0].mxu0  ;;  %v1397_v20 = vadd.f32 %v1396_v33, %v1395_v58  ;;  %v1404_v5 = vadd.f32 %v1403_v0, %v1402_v12  ;;  %v1411_v28 = vadd.f32 %v1410_v59, %v1409_v61  ;;  %v5492_v58 = vld [vmem:[#allocation55_spill] sm:$0xff]  ;;  %vm730_vm0 = vcmask 3072  }
 0x1e6   : > { %v2018_v23 = vpop.f32.mrb[0].mxu1  ;;  %v1980_v39 = vpop.f32.mrb[1].mxu0  ;;  %v1364_v40 = vadd.f32 %v1363_v46, %v1362_v17  ;;  %v1371_v54 = vadd.f32 %v1370_v6, %v1369_v53  ;;  %v1385_v32 = vadd.f32 %v1384_v60, %v1383_v2  ;;  %v5494_v53 = vld [vmem:[#allocation52_spill] sm:$0xff]  ;;  %v5498_v46 = vsub.f32 %v4835_v31, %v4851_v7  ;;  %733 = vst.msk [vmem:[%s5068_s23] sm:$0xf] %vm730_vm0, %v5509_v18 }
 0x1e7   : > { %v4989_v25 = vadd.f32 %v2018_v23, %v1978_v50  ;;  %v2020_v22 = vpop.f32.mrb[1].mxu1  ;;  %v1981_v14 = vpop.f32.mrb[2].mxu0  ;;  %v1390_v39 = vadd.f32 %v1389_v30, %v1388_v56  ;;  %v1378_v50 = vadd.f32 %v1377_v21, %v1376_v9  ;;  %v1398_v36 = vrot.slane %v1397_v20, 1  ;;  %v5491_v56 = vld [vmem:[#allocation54_spill] sm:$0xff]  ;;  %v5495_v9 = vld [vmem:[#allocation53_spill] sm:$0xff] }
 0x1e8   : > { %v2021_v57 = vpop.f32.mrb[2].mxu1  ;;  %v1982_v48 = vpop.f32.mrb[3].mxu0  ;;  %v1405_v3 = vrot.slane %v1404_v5, 1  ;;  %v1412_v4 = vrot.slane %v1411_v28, 1  ;;  %v5490_v23 = vsub.f32 %v4582_v26, %v5489_v38  ;;  %v5493_v0 = vsub.f32 %v5491_v56, %v5492_v58  ;;  %731 = vst.msk [vmem:[%s5073_s19] sm:$0xf] %vm730_vm0, %v5509_v18 }
 0x1e9   : > { %v2022_v24 = vpop.f32.mrb[3].mxu1  ;;  %v1391_v49 = vrot.slane %v1390_v39, 1  ;;  %v5488_v57 = vsub.f32 %v4614_v63, %v4662_v16  ;;  %v1399_v59 = vadd.f32 %v1398_v36, %v1397_v20  ;;  %v5496_v2 = vsub.f32 %v5494_v53, %v5495_v9  ;;  %v5510_v58 = vld [vmem:[#allocation43_spill] sm:$0xff] }
 0x1ea   : > { %v1674_v22 = vmul.f32 %v5490_v23, %v1371_v54  ;;  %v1675_v12 = vmul.f32 %v5493_v0, %v1378_v50  ;;  %v1406_v61 = vadd.f32 %v1405_v3, %v1404_v5  ;;  %v1413_v30 = vadd.f32 %v1412_v4, %v1411_v28  ;;  %v5511_v0 = vld [vmem:[#allocation44_spill] sm:$0xff] }
 0x1eb   : > { %v1673_v48 = vmul.f32 %v5488_v57, %v1364_v40  ;;  %v1392_v17 = vadd.f32 %v1391_v49, %v1390_v39  ;;  %v1676_v14 = vmul.f32 %v5496_v2, %v1385_v32  ;;  %v1534_v63 = vmul.f32 %v1526_v51, %v1364_v40  ;;  %v5502_v51 = vld [vmem:[#allocation42_spill] sm:$0xff] }
 0x1ec   : > { %v5497_v26 = vsub.f32 %v4918_v44, %v4920_v19  ;;  %v5499_v21 = vsub.f32 %v4841_v42, %v4844_v15  ;;  %v5500_v60 = vsub.f32 %v4854_v55, %v4876_v35  ;;  %v1680_v62 = vmul.f32 %v5501_v29, %v1413_v30 }
 0x1ed   : > { %v1689_v33 = vcombine.low %v1673_v48, %v1674_v22  ;;  %v1677_v6 = vmul.f32 %v5498_v46, %v1392_v17  ;;  %v1690_v20 = vcombine.low %v1675_v12, %v1676_v14  ;;  %v5503_v19 = vsub.f32 %v4933_v34, %v4935_v11  ;;  %v5519_v46 = vld [vmem:[#allocation56_spill] sm:$0xff] }
 0x1ee   : > { %v1535_v16 = vmul.f32 %v5497_v26, %v1371_v54  ;;  %v1678_v24 = vmul.f32 %v5499_v21, %v1399_v59  ;;  %v1679_v39 = vmul.f32 %v5500_v60, %v1406_v61  ;;  %v5504_v15 = vsub.f32 %v4923_v52, %v4928_v27 }
 0x1ef   : > { %v1699_v44 = vrot.slane %v1689_v33, %v5502_v51  ;;  %v1536_v31 = vmul.f32 %v5503_v19, %v1378_v50  ;;  %v1706_v55 = vrot.slane %v1690_v20, %v5502_v51  ;;  %v1538_v35 = vmul.f32 %v5505_v13, %v1392_v17  ;;  %v5516_v33 = vld [vmem:[#allocation49_spill] sm:$0xff] }
 0x1f0   : > { %v1537_v42 = vmul.f32 %v5504_v15, %v1385_v32  ;;  %v1691_v7 = vcombine.low %v1677_v6, %v1678_v24  ;;  %v1539_v34 = vmul.f32 %v5506_v45, %v1399_v59  ;;  %v1692_v11 = vcombine.low %v1679_v39, %v1680_v62  ;;  %v5513_v59 = vld [vmem:[#allocation47_spill] sm:$0xff]  ;;  %v5520_v6 = vld [vmem:[#allocation57_spill] sm:$0xff] }
 0x1f1   : > { %v5507_v5 = vsub.f32 %v4944_v47, %v4953_v10  ;;  %v5508_v27 = vsub.f32 %v4947_v8, %v4955_v37  ;;  %v1550_v54 = vcombine.low %v1534_v63, %v1535_v16  ;;  %v1721_v28 = vcombine.low %v1699_v44, %v1706_v55  ;;  %v5517_v63 = vld [vmem:[#allocation50_spill] sm:$0xff] }
 0x1f2   : > { %v1713_v50 = vrot.slane %v1691_v7, %v5502_v51  ;;  %v1551_v32 = vcombine.low %v1536_v31, %v1537_v42  ;;  %v1552_v1 = vcombine.low %v1538_v35, %v1539_v34  ;;  %v1720_v47 = vrot.slane %v1692_v11, %v5502_v51 }
 0x1f3   : > { %v1540_v52 = vmul.f32 %v5507_v5, %v1406_v61  ;;  %v1541_v40 = vmul.f32 %v5508_v27, %v1413_v30  ;;  %v1560_v41 = vrot.slane %v1550_v54, %v5502_v51  ;;  %v1729_v10 = vrot.slane %v1721_v28, %v5502_v51  ;;  %v5514_v61 = vld [vmem:[#allocation48_spill] sm:$0xff] }
 0x1f4   : > { %v1567_v37 = vrot.slane %v1551_v32, %v5502_v51  ;;  %v1574_v49 = vrot.slane %v1552_v1, %v5502_v51  ;;  %v1722_v4 = vcombine.low %v1713_v50, %v1720_v47  ;;  %v5512_v12 = vcombine.low %v5510_v58, %v5511_v0 }
 0x1f5   : > { %v1553_v8 = vcombine.low %v1540_v52, %v1541_v40  ;;  %v2058_v43 = vpop.f32.mrb[4].mxu0  ;;  %v5515_v53 = vcombine.low %v5513_v59, %v5514_v61  ;;  %v5518_v26 = vcombine.low %v5516_v33, %v5517_v63  ;;  %v5521_v21 = vcombine.low %v5519_v46, %v5520_v6 }
 0x1f6   : > { %v5059_v36 = vadd.f32 %v2058_v43, %v4989_v25  ;;  %v2060_v3 = vpop.f32.mrb[5].mxu0  ;;  %v1582_v25 = vcombine.low %v1560_v41, %v1567_v37  ;;  %v1736_v23 = vrot.slane %v1722_v4, %v5502_v51  ;;  %v1780_v17 = vrot.slane %v5512_v12, %v5502_v51 }
 0x1f7   : > { %v1581_v57 = vrot.slane %v1553_v8, %v5502_v51  ;;  %v2061_v48 = vpop.f32.mrb[6].mxu0  ;;  %v1787_v9 = vrot.slane %v5515_v53, %v5502_v51  ;;  %v5097_v16 = vrot.slane %v5518_v26, %v5502_v51  ;;  %v5103_v24 = vrot.slane %v5521_v21, %v5502_v51 }
 0x1f8   : > { %v2062_v38 = vpop.f32.mrb[7].mxu0  ;;  %v1590_v56 = vrot.slane %v1582_v25, %v5502_v51  ;;  %v1737_v2 = vcombine.low %v1729_v10, %v1736_v23 }
 0x1f9   : > { %v1583_v22 = vcombine.low %v1574_v49, %v1581_v57  ;;  %v1788_v60 = vcombine.low %v1780_v17, %v1787_v9  ;;  %v1838_v39 = vcombine.low %v5097_v16, %v5103_v24 }
 0x1fa   : > { %1739 = vst [vmem:[%s676_s12] sm:$0xff] %v1737_v2 }
 0x1fb   : > { %v1597_v14 = vrot.slane %v1583_v22, %v5502_v51 }
 0x1fd   : > { %v1598_v30 = vcombine.low %v1590_v56, %v1597_v14 }
 0x1ff   : > { %1600 = vst [vmem:[%s669_s26] sm:$0xff] %v1598_v30 }
 0x200   : > { %3443 = shalt.err (!%p3440_p3)
}
 0x201   : > { %s3444_s29 = scalar_lea.hbm %s5117_s14, 128  ;;  %s3448_s30 = scalar_lea.hbm %s5341_s10, 256 }
 0x202   : > { %p3445_p11 = scmp.ne.s32.totalorder %s5117_s14, %s3444_s29  ;;  %p3449_p1 = scmp.lt.u32.totalorder %s5117_s14, %s5341_s10 }
 0x203   : > { %p3450_p8 = scmp.lt.u32.totalorder %s3448_s30, %s3444_s29  ;;  %p3452_p10 = scmp.lt.u32.totalorder %s3444_s29, %s5117_s14 }
 0x204   : > { %p3446_p9 = pnand %p3445_p11, %p5522_p12 }
 0x205   : > { %p3451_p5 = por %p3450_p8, %p3449_p1 }
 0x206   : > { %p3447_p6 = pneg %p3446_p9 }
 0x207   : > { %p3453_p7 = por %p3452_p10, %p3451_p5 }
 0x209   : > { %p3454_p4 = pnand %p3453_p7, %p3447_p6 }
 0x20b   : > { %3457 = shalt.err (!%p3454_p4)
}
 0x20c   : > { %3084 = dma.vmem_to_hbm [thread:$0]  (%p5522_p12), %s2513_s5, 128, %s5117_s14, %s2432_s11   ;;  %v2108_v20 = vld [vmem:[%s5073_s19] sm:$0xf]  ;;  %v2125_v29 = vpop.xlane.xlu0 %2124 }
 0x20d   : > { %s683_s17 = scalar_lea.vmem [#allocation17], %s5062_s3  ;;  %s5523_s27 = sld [smem:[#allocation63_spill]] }
 0x20e   : > { %1789 = vst [vmem:[%s683_s17] sm:$0xff] %v1788_v60  ;;  %s2529_s12 = sshll.u32 %s683_s17, 4  ;;  %s3687_s21 = smov [#allocation17]   ;;  %s2530_s12 = int_to_ptr.vmem [resolvable:$true] %s2529_s12 }
 0x20f   : > { %s3458_s30 = scalar_lea.vmem %s2530_s12, 128  ;;  %s3462_s28 = sshll.u32 %s3687_s21, 4  ;;  %s3463_s28 = int_to_ptr.vmem [resolvable:$false] %s3462_s28 }
 0x210   : > { %p3459_p13 = scmp.ne.s32.totalorder %s2530_s12, %s3458_s30  ;;  %s3464_s5 = scalar_lea.vmem %s3463_s28, 256 }
 0x211   : > { %p3465_p3 = scmp.lt.s32.totalorder %s2530_s12, %s3463_s28  ;;  %p3466_p11 = scmp.lt.s32.totalorder %s3464_s5, %s3458_s30 }
 0x212   : > { %p3460_p0 = pnand %p3459_p13, %p5522_p12 }
 0x213   : > { %s5145_s29 = scalar_lea.hbm %s5523_s27, %s5111_s15  ;;  %p3467_p9 = por %p3466_p11, %p3465_p3 }
 0x214   : > { %p3461_p2 = pneg %p3460_p0 }
 0x216   : > { %p3468_p6 = pnand %p3467_p9, %p3461_p2 }
 0x218   : > { %3471 = shalt.err (!%p3468_p6)
}
 0x219   : > { %s3472_s14 = scalar_lea.hbm %s5145_s29, 128  ;;  %s3476_s13 = scalar_lea.hbm %s5523_s27, 256 }
 0x21a   : > { %p3473_p1 = scmp.ne.s32.totalorder %s5145_s29, %s3472_s14  ;;  %p3477_p10 = scmp.lt.u32.totalorder %s5145_s29, %s5523_s27 }
 0x21b   : > { %p3478_p7 = scmp.lt.u32.totalorder %s3476_s13, %s3472_s14  ;;  %p3480_p13 = scmp.lt.u32.totalorder %s3472_s14, %s5145_s29 }
 0x21c   : > { %p3474_p8 = pnand %p3473_p1, %p5522_p12 }
 0x21d   : > { %p3479_p4 = por %p3478_p7, %p3477_p10 }
 0x21e   : > { %p3475_p5 = pneg %p3474_p8 }
 0x21f   : > { %p3481_p0 = por %p3480_p13, %p3479_p4 }
 0x221   : > { %p3482_p2 = pnand %p3481_p0, %p3475_p5 }
 0x223   : > { %3485 = shalt.err (!%p3482_p2)
}
 0x224   : > { %3085 = dma.vmem_to_hbm [thread:$0]  (%p5522_p12), %s2530_s12, 128, %s5145_s29, %s2432_s11   ;;  %v2126_v62 = vadd.f32 %v2125_v29, %v2108_v20 }
 0x225   : > { %s690_s30 = scalar_lea.vmem [#allocation18], %s5062_s3  ;;  %s5524_s17 = sld [smem:[#allocation64_spill]] }
 0x226   : > { %1839 = vst [vmem:[%s690_s30] sm:$0xff] %v1838_v39  ;;  %s2546_s13 = sshll.u32 %s690_s30, 4  ;;  %2128 = vst.msk [vmem:[%s5073_s19] sm:$0xf] %vm730_vm0, %v2126_v62  ;;  %s2442_s21 = scalar_lea.sflag [#allocation19], %s4047_s1  ;;  %s2547_s13 = int_to_ptr.vmem [resolvable:$true] %s2546_s13 }
 0x227   : > { %s3486_s28 = scalar_lea.vmem %s2547_s13, 128  ;;  %s3688_s11 = smov [#allocation18]  }
 0x228   : > { %p3487_p3 = scmp.ne.s32.totalorder %s2547_s13, %s3486_s28  ;;  %s3490_s29 = sshll.u32 %s3688_s11, 4  ;;  %s3491_s29 = int_to_ptr.vmem [resolvable:$false] %s3490_s29 }
 0x229   : > { %s3492_s12 = scalar_lea.vmem %s3491_s29, 256  ;;  %p3493_p6 = scmp.lt.s32.totalorder %s2547_s13, %s3491_s29 }
 0x22a   : > { %p3488_p11 = pnand %p3487_p3, %p5522_p12  ;;  %p3494_p1 = scmp.lt.s32.totalorder %s3492_s12, %s3486_s28 }
 0x22b   : > { %s5174_s20 = scalar_lea.hbm %s5524_s17, %s5111_s15 }
 0x22c   : > { %p3489_p9 = pneg %p3488_p11  ;;  %p3495_p8 = por %p3494_p1, %p3493_p6 }
 0x22e   : > { %p3496_p5 = pnand %p3495_p8, %p3489_p9 }
 0x230   : > { %3499 = shalt.err (!%p3496_p5)
}
 0x231   : > { %s3500_s19 = scalar_lea.hbm %s5174_s20, 128  ;;  %s3504_s14 = scalar_lea.hbm %s5524_s17, 256 }
 0x232   : > { %p3501_p10 = scmp.ne.s32.totalorder %s5174_s20, %s3500_s19  ;;  %p3505_p13 = scmp.lt.u32.totalorder %s5174_s20, %s5524_s17 }
 0x233   : > { %p3506_p0 = scmp.lt.u32.totalorder %s3504_s14, %s3500_s19  ;;  %p3508_p3 = scmp.lt.u32.totalorder %s3500_s19, %s5174_s20 }
 0x234   : > { %p3502_p7 = pnand %p3501_p10, %p5522_p12 }
 0x235   : > { %p3507_p2 = por %p3506_p0, %p3505_p13 }
 0x236   : > { %p3503_p4 = pneg %p3502_p7 }
 0x237   : > { %p3509_p11 = por %p3508_p3, %p3507_p2 }
 0x239   : > { %p3510_p9 = pnand %p3509_p11, %p3503_p4 }
 0x23b   : > { %3513 = shalt.err (!%p3510_p9)
}
 0x23c   : > { %3086 = dma.vmem_to_hbm [thread:$0]  (%p5522_p12), %s2547_s13, 128, %s5174_s20, %s2442_s21   ;;  %v2380_v51 = vld [vmem:[%s5068_s23] sm:$0xf]  ;;  %v2098_v44 = vpop.f32.mrb[4].mxu1  ;;  %v2104_v19 = vld [vmem:[%s4808_s18] sm:$0xf]  ;;  %v2397_v31 = vpop.xlane.xlu1 %2396 }
 0x23d   : > { %s3049_s28 = sshll.u32 %s3664_s24, 6  ;;  %s2457_s12 = sshll.u32 %s4808_s18, 4  ;;  %v2099_v15 = vadd.f32 %v2098_v44, %v5059_v36  ;;  %v2100_v42 = vpop.f32.mrb[5].mxu1  ;;  %v2398_v7 = vadd.f32 %v2397_v31, %v2380_v51  ;;  %s5210_s12 = int_to_ptr.vmem [resolvable:$true] %s2457_s12 }
 0x23e   : > { %v2101_v55 = vpop.f32.mrb[6].mxu1  ;;  %s5525_s21 = sld [smem:[#allocation60_spill]]  ;;  %s2401_s5 = scalar_lea.sflag [#allocation4], %s4047_s1 }
 0x23f   : > { %v2105_v13 = vadd.f32 %v2104_v19, %v2099_v15  ;;  %v2102_v35 = vpop.f32.mrb[7].mxu1  ;;  %2399 = vst.msk [vmem:[%s5068_s23] sm:$0xf] %vm730_vm0, %v2398_v7  ;;  %s3514_s14 = scalar_lea.vmem %s5210_s12, 64  ;;  %s3689_s23 = smov [#allocation11]  }
 0x240   : > { %p3515_p6 = scmp.ne.s32.totalorder %s5210_s12, %s3514_s14  ;;  %s3518_s11 = sshll.u32 %s3689_s23, 4  ;;  %s3519_s11 = int_to_ptr.vmem [resolvable:$false] %s3518_s11 }
 0x241   : > { %2107 = vst.msk [vmem:[%s4808_s18] sm:$0xf] %vm728_vm7, %v2105_v13  ;;  %s3520_s29 = scalar_lea.vmem %s3519_s11, 128  ;;  %p3521_p5 = scmp.lt.s32.totalorder %s5210_s12, %s3519_s11 }
 0x242   : > { %p3516_p1 = pnand %p3515_p6, %p5522_p12  ;;  %p3522_p10 = scmp.lt.s32.totalorder %s3520_s29, %s3514_s14 }
 0x244   : > { %s5526_s19 = smov %s5525_s21  ;;  %s5208_s30 = scalar_lea.hbm %s5525_s21, %s3049_s28 }
 0x245   : > { %p3517_p8 = pneg %p3516_p1  ;;  %p3523_p7 = por %p3522_p10, %p3521_p5 }
 0x247   : > { %p3524_p4 = pnand %p3523_p7, %p3517_p8 }
 0x249   : > { %3527 = shalt.err (!%p3524_p4)
}
 0x24a   : > { %s3528_s1 = scalar_lea.hbm %s5208_s30, 64  ;;  %s3532_s13 = scalar_lea.hbm %s5526_s19, 128 }
 0x24b   : > { %p3529_p13 = scmp.ne.s32.totalorder %s5208_s30, %s3528_s1  ;;  %p3533_p3 = scmp.lt.u32.totalorder %s5208_s30, %s5526_s19 }
 0x24c   : > { %p3534_p11 = scmp.lt.u32.totalorder %s3532_s13, %s3528_s1  ;;  %p3536_p6 = scmp.lt.u32.totalorder %s3528_s1, %s5208_s30 }
 0x24d   : > { %p3530_p0 = pnand %p3529_p13, %p5522_p12 }
 0x24e   : > { %p3535_p9 = por %p3534_p11, %p3533_p3 }
 0x24f   : > { %p3531_p2 = pneg %p3530_p0 }
 0x250   : > { %p3537_p1 = por %p3536_p6, %p3535_p9 }
 0x252   : > { %p3538_p8 = pnand %p3537_p1, %p3531_p2 }
 0x254   : > { %3541 = shalt.err (!%p3538_p8)
}
 0x255   : > { %3081 = dma.vmem_to_hbm [thread:$0]  (%p5522_p12), %s5210_s12, 64, %s5208_s30, %s2401_s5   ;;  %v2251_v45 = vpop.f32.mrb[8].mxu0  ;;  %v2291_v52 = vpop.f32.mrb[8].mxu1  ;;  %v2377_v41 = vld [vmem:[%s5045_s16] sm:$0xf] }
 0x256   : > { %v2253_v34 = vpop.f32.mrb[9].mxu0  ;;  %v2292_v27 = vadd.f32 %v2291_v52, %v2251_v45  ;;  %v2293_v40 = vpop.f32.mrb[9].mxu1  ;;  %s2475_s12 = sshll.u32 %s5045_s16, 4  ;;  %s2495_s30 = sshll.u32 %s669_s26, 4  ;;  %s5247_s12 = int_to_ptr.vmem [resolvable:$true] %s2475_s12  ;;  %s5255_s30 = int_to_ptr.vmem [resolvable:$true] %s2495_s30 }
 0x257   : > { %v2254_v11 = vpop.f32.mrb[10].mxu0  ;;  %v2294_v54 = vpop.f32.mrb[10].mxu1  ;;  %s5527_s11 = sld [smem:[#allocation61_spill]]  ;;  %s5528_s20 = sld [smem:[#allocation62_spill]] }
 0x258   : > { %v2255_v5 = vpop.f32.mrb[11].mxu0  ;;  %v2295_v50 = vpop.f32.mrb[11].mxu1  ;;  %s2414_s24 = scalar_lea.sflag [#allocation13], %s4044_s9  ;;  %s3542_s3 = scalar_lea.vmem %s5247_s12, 64 }
 0x259   : > { %p3543_p5 = scmp.ne.s32.totalorder %s5247_s12, %s3542_s3  ;;  %s3690_s26 = smov [#allocation12]  }
 0x25b   : > { %p3544_p10 = pnand %p3543_p5, %p5522_p12 }
 0x25d   : > { %s5245_s29 = scalar_lea.hbm %s5527_s11, %s3049_s28  ;;  %s5253_s13 = scalar_lea.hbm %s5528_s20, %s5111_s15 }
 0x25e   : > { %p3545_p7 = pneg %p3544_p10  ;;  %s3546_s28 = sshll.u32 %s3690_s26, 4  ;;  %s3547_s28 = int_to_ptr.vmem [resolvable:$false] %s3546_s28 }
 0x25f   : > { %s3548_s21 = scalar_lea.vmem %s3547_s28, 128  ;;  %p3549_p4 = scmp.lt.s32.totalorder %s5247_s12, %s3547_s28 }
 0x260   : > { %p3550_p13 = scmp.lt.s32.totalorder %s3548_s21, %s3542_s3 }
 0x262   : > { %p3551_p0 = por %p3550_p13, %p3549_p4 }
 0x264   : > { %p3552_p2 = pnand %p3551_p0, %p3545_p7 }
 0x26e   : > { %v2331_v28 = vpop.f32.mrb[12].mxu0 }
 0x26f   : > { %v2332_v32 = vadd.f32 %v2331_v28, %v2292_v27  ;;  %v2333_v1 = vpop.f32.mrb[13].mxu0 }
 0x270   : > { %v2334_v18 = vpop.f32.mrb[14].mxu0 }
 0x271   : > { %v2335_v47 = vpop.f32.mrb[15].mxu0 }
 0x274   : > { %v2371_v8 = vpop.f32.mrb[12].mxu1 }
 0x275   : > { %v2372_v43 = vadd.f32 %v2371_v8, %v2332_v32  ;;  %v2373_v10 = vpop.f32.mrb[13].mxu1 }
 0x276   : > { %v2374_v37 = vpop.f32.mrb[14].mxu1 }
 0x277   : > { %v2378_v49 = vadd.f32 %v2377_v41, %v2372_v43  ;;  %v2375_v36 = vpop.f32.mrb[15].mxu1 }
 0x279   : > { %2379 = vst.msk [vmem:[%s5045_s16] sm:$0xf] %vm728_vm7, %v2378_v49 }
 0x27a   : > { %3555 = shalt.err (!%p3552_p2)
}
 0x27b   : > { %s3556_s16 = scalar_lea.hbm %s5245_s29, 64  ;;  %s3560_s5 = scalar_lea.hbm %s5527_s11, 128 }
 0x27c   : > { %p3557_p3 = scmp.ne.s32.totalorder %s5245_s29, %s3556_s16  ;;  %p3561_p6 = scmp.lt.u32.totalorder %s5245_s29, %s5527_s11 }
 0x27d   : > { %p3562_p1 = scmp.lt.u32.totalorder %s3560_s5, %s3556_s16  ;;  %p3564_p5 = scmp.lt.u32.totalorder %s3556_s16, %s5245_s29 }
 0x27e   : > { %p3558_p11 = pnand %p3557_p3, %p5522_p12 }
 0x27f   : > { %p3563_p8 = por %p3562_p1, %p3561_p6 }
 0x280   : > { %p3559_p9 = pneg %p3558_p11 }
 0x281   : > { %p3565_p10 = por %p3564_p5, %p3563_p8 }
 0x283   : > { %p3566_p7 = pnand %p3565_p10, %p3559_p9 }
 0x285   : > { %3569 = shalt.err (!%p3566_p7)
}
 0x286   : > { %3082 = dma.vmem_to_hbm [thread:$0]  (%p5522_p12), %s5247_s12, 64, %s5245_s29, %s2414_s24  }
 0x287   : > { %s3570_s18 = scalar_lea.vmem %s5255_s30, 128  ;;  %s3691_s3 = smov [#allocation14]  }
 0x288   : > { %p3571_p4 = scmp.ne.s32.totalorder %s5255_s30, %s3570_s18  ;;  %s3574_s26 = sshll.u32 %s3691_s3, 4  ;;  %s3575_s26 = int_to_ptr.vmem [resolvable:$false] %s3574_s26 }
 0x289   : > { %s3576_s28 = scalar_lea.vmem %s3575_s26, 256  ;;  %p3577_p2 = scmp.lt.s32.totalorder %s5255_s30, %s3575_s26 }
 0x28a   : > { %p3572_p13 = pnand %p3571_p4, %p5522_p12  ;;  %p3578_p3 = scmp.lt.s32.totalorder %s3576_s28, %s3570_s18 }
 0x28c   : > { %p3573_p0 = pneg %p3572_p13  ;;  %p3579_p11 = por %p3578_p3, %p3577_p2 }
 0x28e   : > { %p3580_p9 = pnand %p3579_p11, %p3573_p0 }
 0x290   : > { %3583 = shalt.err (!%p3580_p9)
}
 0x291   : > { %s3584_s12 = scalar_lea.hbm %s5253_s13, 128  ;;  %s3588_s16 = scalar_lea.hbm %s5528_s20, 256 }
 0x292   : > { %p3585_p6 = scmp.ne.s32.totalorder %s5253_s13, %s3584_s12  ;;  %p3589_p5 = scmp.lt.u32.totalorder %s5253_s13, %s5528_s20 }
 0x293   : > { %p3590_p10 = scmp.lt.u32.totalorder %s3588_s16, %s3584_s12  ;;  %p3592_p4 = scmp.lt.u32.totalorder %s3584_s12, %s5253_s13 }
 0x294   : > { %p3586_p1 = pnand %p3585_p6, %p5522_p12 }
 0x295   : > { %p3591_p7 = por %p3590_p10, %p3589_p5 }
 0x296   : > { %p3587_p8 = pneg %p3586_p1 }
 0x297   : > { %p3593_p13 = por %p3592_p4, %p3591_p7 }
 0x299   : > { %p3594_p0 = pnand %p3593_p13, %p3587_p8 }
 0x29b   : > { %3597 = shalt.err (!%p3594_p0)
}
 0x29c   : > { %3083 = dma.vmem_to_hbm [thread:$0]  (%p5522_p12), %s5255_s30, 128, %s5253_s13, %s2414_s24  }
 0x29d PF: > { %s5529_s5 = sld [smem:[#allocation27_spill]]  ;;  %s5530_s14 = sld [smem:[#allocation32_spill]] }
 0x29e   : > { %s5531_s1 = sld [smem:[#allocation29_spill]] }
 0x2a3   : > { %s2558_s18 = sand.u32 1, %s5529_s5   ;;  %p5532_p2 = scmp.ne.s32.totalorder %s5530_s14, 0 }
 0x2a4   : > { %p5533_p3 = scmp.ge.s32.totalorder %s5531_s1, 2  ;;  %s2559_s3 = scalar_lea.sflag [#allocation4], %s2558_s18 }
 0x2a6   : > { %p3111_p11 = pnand %p5533_p3, %p5532_p2 }
 0x2a8   : > { %3635 = dma.done.wait (!%p3111_p11), %s2559_s3, 64  }
 0x2a9   : > { %3637 = vsyncadd (!%p3111_p11), %s2559_s3, 4294967232  ;;  %s5534_s26 = sadd.s32 4294967294, %s5531_s1  }
 0x2aa   : > { %s2578_s28 = sand.u32 1, %s5534_s26  }
 0x2ab   : > { %s2579_s7 = scalar_lea.sflag [#allocation13], %s2578_s28 }
 0x2ac   : > { %3639 = dma.done.wait (!%p3111_p11), %s2579_s7, 192  }
 0x2ad   : > { %3641 = vsyncadd (!%p3111_p11), %s2579_s7, 4294967104  ;;  %s2608_s9 = scalar_lea.sflag [#allocation16], %s2578_s28 }
 0x2ae   : > { %3643 = dma.done.wait (!%p3111_p11), %s2608_s9, 256  }
 0x2af   : > { %3645 = vsyncadd (!%p3111_p11), %s2608_s9, 4294967040  ;;  %s2626_s30 = scalar_lea.sflag [#allocation19], %s2558_s18 }
 0x2b0   : > { %3647 = dma.done.wait (!%p3111_p11), %s2626_s30, 128  }
 0x2b1   : > { %3649 = vsyncadd (!%p3111_p11), %s2626_s30, 4294967168  ;;  %s42_s26 = sadd.s32 1, %s5531_s1   ;;  %s5535_s13 = sld [smem:[#allocation28_spill]] }
 0x2b2   : > { %p39_p12 = scmp.ge.s32.totalorder %s42_s26, 4   ;;  %s5536_s23 = sld [smem:[#allocation31_spill]] }
 0x2b3   : > { %s5537_s12 = sld [smem:[#allocation30_spill]]  ;;  %s5538_s21 = smov %s3656_s22 }
 0x2b4   : > { %s5540_s24 = smov %s3668_s25  ;;  %41 = sbr.rel (!%p39_p12) target bundleno = 23 (0x17), region = 234 }
 0x2b7   : > { %s5539_s22 = smov %s5535_s13 }
 0x2b9   : > { %s5541_s25 = smov %s5537_s12 }
 0x2bb   :  { %2631 = vsyncpa [#allocation3], 1 }
 0x2bc   :  { %2633 = vsyncpa [#allocation3 + $0x1], 1 }
 0x2bd   :  { %2634 = vsyncpa [#allocation6], 1 }
 0x2be   :  { %2636 = vsyncpa [#allocation6 + $0x1], 1 }
 0x2bf   :  { %2637 = vsyncpa [#allocation9], 1 }
 0x2c0   :  { %2639 = vsyncpa [#allocation9 + $0x1], 1 }
 0x2c1   :  { %2640 = vsyncpa [#allocation4], 1 }
 0x2c2   :  { %2642 = vsyncpa [#allocation4 + $0x1], 1 }
 0x2c3   :  { %2643 = vsyncpa [#allocation13], 1 }
 0x2c4   :  { %2645 = vsyncpa [#allocation13 + $0x1], 1 }
 0x2c5   :  { %2646 = vsyncpa [#allocation16], 1 }
 0x2c6   :  { %2648 = vsyncpa [#allocation16 + $0x1], 1 }
 0x2c7   :  { %2649 = vsyncpa [#allocation19], 1 }
 0x2c8   :  { %2651 = vsyncpa [#allocation19 + $0x1], 1 }

</bundles_post_ra>
